<compile_context>
chip_gen: v5e
topology: v5e:2x2
jax: 0.10.0
libtpu: 0.0.40
codegen_flags: <defaults>
</compile_context>

<pallas_src>
import functools

import numpy as np

import jax
import jax.numpy as jnp
from jax.experimental import pallas as pl
from jax.experimental.pallas import tpu as pltpu


# ----------------------------------------------------------------------------
# Fused Block35 kernel (one grid step == `bb` batch images)
# ----------------------------------------------------------------------------
def _block35_kernel(x_ref, mask_ref, ws_ref, ss_ref, w3a_ref, s3a_ref,
                    w2c_ref, s2c_ref, wf0_ref, wf1_ref, wf2_ref, bf_ref,
                    o_ref, h1, h2, *, bb, hh, ww):
    wp = ww + 2                      # padded row width
    rimg = (hh + 2) * wp             # padded rows per image
    rp = bb * rimg                   # padded rows per grid block
    m = bb * hh * ww                 # compact pixels per grid block

    # ---- stem: the three 1x1 convs fused into one matmul --------------------
    # output lanes: [b1a 0:32 | b2a 32:64 | b0 64:96]
    x2d = x_ref[...].reshape(m, 320).astype(jnp.bfloat16)
    stem = jnp.dot(x2d, ws_ref[...], preferred_element_type=jnp.float32)
    stem = jnp.maximum(stem + ss_ref[...], 0.0)                    # (m, 96)

    # ---- halo 1: stem scattered into flat padded-row space ------------------
    # Full zeroing of h1 (incl. slack rows) keeps every value finite so the
    # masked store into h2 below can never produce 0*Inf = NaN.
    h1[...] = jnp.zeros(h1.shape, jnp.float32)
    # h2: rows [wp+1, rp) are fully overwritten every step -> zero prefix only.
    h2[0:wp + 1, :] = jnp.zeros((wp + 1, 48), jnp.float32)
    for b in range(bb):
        for y in range(hh):
            dst = b * rimg + (y + 1) * wp + 1
            src = (b * hh + y) * ww
            h1[dst:dst + ww, :] = stem[src:src + ww, :]

    # ---- 3x3 convs: 9 accumulating matmuls over contiguous row-offset taps --
    def conv3x3(h_ref, klanes, w_ref, sh_ref):
        acc = None
        for dy in range(3):
            for dx in range(3):
                off = dy * wp + dx
                taps = h_ref[off:off + rp, 0:klanes]            # contiguous
                p = jnp.dot(taps.astype(jnp.bfloat16), w_ref[dy * 3 + dx],
                            preferred_element_type=jnp.float32)
                acc = p if acc is None else acc + p
        return jnp.maximum(acc + sh_ref[...], 0.0)

    # branch1 3x3 and branch2 first 3x3 fused (block-diagonal weights).
    # output lanes: [b2b 0:48 | b1 48:80]
    f80 = conv3x3(h1, 64, w3a_ref, s3a_ref)                        # (rp, 80)

    # ---- halo 2: b2b shifted by (wp+1) rows, borders/garbage zeroed by mask -
    nsh = rp - wp - 1
    h2[wp + 1:wp + 1 + nsh, :] = f80[0:nsh, 0:48] * mask_ref[wp + 1:rp, :]
    b2 = conv3x3(h2, 48, w2c_ref, s2c_ref)                         # (rp, 64)

    # ---- final 1x1 conv (BN/scale/bias folded) over padded rows -------------
    b0taps = h1[wp + 1:wp + 1 + rp, :]          # b0 lives in lanes 64:96
    y_pad = (jnp.dot(b0taps.astype(jnp.bfloat16), wf0_ref[...],
                     preferred_element_type=jnp.float32)
             + jnp.dot(f80.astype(jnp.bfloat16), wf1_ref[...],
                       preferred_element_type=jnp.float32)
             + jnp.dot(b2.astype(jnp.bfloat16), wf2_ref[...],
                       preferred_element_type=jnp.float32)
             + bf_ref[...])                                        # (rp, 320)

    # ---- residual + ReLU + compact NHWC output store (per image row) --------
    for b in range(bb):
        for y in range(hh):
            r0 = b * rimg + y * wp
            o_ref[b, y, :, :] = jnp.maximum(
                y_pad[r0:r0 + ww, :] + x_ref[b, y, :, :], 0.0)


# ----------------------------------------------------------------------------
# Parameter packing: fold BN scale (and the residual `scale`) into the weights
# ----------------------------------------------------------------------------
def _pack_params(p, scale):
    w0, s0, sh0 = p["b0"]
    w1a, s1a, sh1a = p["b1a"]
    w2a, s2a, sh2a = p["b2a"]
    w1b, s1b, sh1b = p["b1b"]
    w2b, s2b, sh2b = p["b2b"]
    w2c, s2c, sh2c = p["b2c"]

    # stem 1x1 convs, output lanes [b1a | b2a | b0]
    ws = jnp.concatenate([w1a * s1a, w2a * s2a, w0 * s0],
                         axis=1).astype(jnp.bfloat16)              # (320, 96)
    ss = jnp.concatenate([sh1a, sh2a, sh0]).reshape(1, 96)

    # fused branch1-3x3 + branch2-3x3a (block diagonal), out lanes [b2b | b1]
    w3a = jnp.zeros((3, 3, 64, 80), jnp.float32)
    w3a = w3a.at[:, :, 0:32, 48:80].set(w1b * s1b)
    w3a = w3a.at[:, :, 32:64, 0:48].set(w2b * s2b)
    w3a = w3a.reshape(9, 64, 80).astype(jnp.bfloat16)
    s3a = jnp.concatenate([sh2b, sh1b]).reshape(1, 80)

    w2c9 = (w2c * s2c).reshape(9, 48, 64).astype(jnp.bfloat16)
    s2c9 = sh2c.reshape(1, 64)

    # final 1x1 conv: residual scale folded; split per branch with zero rows
    # so the kernel never needs lane-offset slices of its operands.
    wf = p["wf"] * scale                                           # (128, 320)
    wf0 = jnp.zeros((96, 320), jnp.float32).at[64:96].set(wf[0:32])
    wf1 = jnp.zeros((80, 320), jnp.float32).at[48:80].set(wf[32:64])
    wf2 = wf[64:128]
    bfv = (p["bf"] * scale).reshape(1, 320)
    return (ws, ss, w3a, s3a, w2c9, s2c9,
            wf0.astype(jnp.bfloat16), wf1.astype(jnp.bfloat16),
            wf2.astype(jnp.bfloat16), bfv)


def _interior_mask(bb, hh, ww):
    """(rp, 1) f32 mask: 1.0 at interior padded positions, 0.0 elsewhere."""
    wp, hp = ww + 2, hh + 2
    idx = np.arange(hp * wp)
    yp, xp = idx // wp, idx % wp
    m = ((yp >= 1) & (yp <= hh) & (xp >= 1) & (xp <= ww)).astype(np.float32)
    return jnp.asarray(np.tile(m, bb).reshape(bb * hp * wp, 1))


# ----------------------------------------------------------------------------
# NHWC-native forward (the form a real network should chain end-to-end)
# ----------------------------------------------------------------------------
def block35_forward_nhwc(x_nhwc, params, scale=1.0, block_batch=1):
    n, hh, ww, c = x_nhwc.shape
    assert c == 320 and n % block_batch == 0
    bb = block_batch
    wp = ww + 2
    rimg = (hh + 2) * wp
    rp = bb * rimg
    rpad = -(-(rp + 2 * wp + 2) // 8) * 8     # halo rows incl. tap slack

    packed = _pack_params(params, scale)
    mask = _interior_mask(bb, hh, ww)
    kernel = functools.partial(_block35_kernel, bb=bb, hh=hh, ww=ww)

    return pl.pallas_call(
        kernel,
        out_shape=jax.ShapeDtypeStruct((n, hh, ww, 320), jnp.float32),
        grid_spec=pltpu.PrefetchScalarGridSpec(
            num_scalar_prefetch=0,
            grid=(n // bb,),
            in_specs=[
                pl.BlockSpec((bb, hh, ww, 320), lambda i: (i, 0, 0, 0)),  # x
                pl.BlockSpec((rp, 1), lambda i: (0, 0)),                  # mask
                pl.BlockSpec((320, 96), lambda i: (0, 0)),                # ws
                pl.BlockSpec((1, 96), lambda i: (0, 0)),                  # ss
                pl.BlockSpec((9, 64, 80), lambda i: (0, 0, 0)),           # w3a
                pl.BlockSpec((1, 80), lambda i: (0, 0)),                  # s3a
                pl.BlockSpec((9, 48, 64), lambda i: (0, 0, 0)),           # w2c
                pl.BlockSpec((1, 64), lambda i: (0, 0)),                  # s2c
                pl.BlockSpec((96, 320), lambda i: (0, 0)),                # wf0
                pl.BlockSpec((80, 320), lambda i: (0, 0)),                # wf1
                pl.BlockSpec((64, 320), lambda i: (0, 0)),                # wf2
                pl.BlockSpec((1, 320), lambda i: (0, 0)),                 # bf
            ],
            out_specs=pl.BlockSpec((bb, hh, ww, 320),
                                   lambda i: (i, 0, 0, 0)),
            scratch_shapes=[
                pltpu.VMEM((rpad, 96), jnp.float32),   # halo 1 (stem)
                pltpu.VMEM((rpad, 48), jnp.float32),   # halo 2 (b2b out)
            ]),
        compiler_params=pltpu.CompilerParams(
            dimension_semantics=("parallel",),
            vmem_limit_bytes=48 * 1024 * 1024),
    )(x_nhwc, mask, *packed)


# ----------------------------------------------------------------------------
# NCHW parity wrapper (matches the PyTorch module's interface).  In a real
# Inception-ResNet stack call block35_forward_nhwc directly so these two
# transposes -- and their extra HBM round trips -- disappear.
# ----------------------------------------------------------------------------
def block35_forward(x_nchw, params, scale=1.0, block_batch=1):
    x = jnp.transpose(x_nchw, (0, 2, 3, 1))
    y = block35_forward_nhwc(x, params, scale, block_batch)
    return jnp.transpose(y, (0, 3, 1, 2))


# ----------------------------------------------------------------------------
# Parameter construction (deterministic, synthetic; BN folded to scale/shift)
# ----------------------------------------------------------------------------
def _bn_fold(key, cout, eps=1e-3):
    k1, k2, k3, k4 = jax.random.split(key, 4)
    gamma = jax.random.uniform(k1, (cout,), jnp.float32, 0.5, 1.5)
    beta = 0.1 * jax.random.normal(k2, (cout,), jnp.float32)
    mean = 0.1 * jax.random.normal(k3, (cout,), jnp.float32)
    var = jax.random.uniform(k4, (cout,), jnp.float32, 0.5, 1.5)
    inv = gamma / jnp.sqrt(var + eps)
    return inv, beta - mean * inv


def _conv_w(key, shape, fan_in):
    return (jax.random.normal(key, shape, jnp.float32) /
            jnp.sqrt(fan_in)).astype(jnp.float32)


def init_block35_params(key):
    ks = jax.random.split(key, 16)
    p = {}
    p["b0"] = (_conv_w(ks[0], (320, 32), 320), *_bn_fold(ks[1], 32))
    p["b1a"] = (_conv_w(ks[2], (320, 32), 320), *_bn_fold(ks[3], 32))
    p["b1b"] = (_conv_w(ks[4], (3, 3, 32, 32), 9 * 32), *_bn_fold(ks[5], 32))
    p["b2a"] = (_conv_w(ks[6], (320, 32), 320), *_bn_fold(ks[7], 32))
    p["b2b"] = (_conv_w(ks[8], (3, 3, 32, 48), 9 * 32), *_bn_fold(ks[9], 48))
    p["b2c"] = (_conv_w(ks[10], (3, 3, 48, 64), 9 * 48), *_bn_fold(ks[11], 64))
    p["wf"] = _conv_w(ks[12], (128, 320), 128)
    p["bf"] = 0.1 * jax.random.normal(ks[13], (320,), jnp.float32)
    return p


# ----------------------------------------------------------------------------
# Pure-JAX float32 reference (same math) for a sanity check
# ----------------------------------------------------------------------------
def _ref_conv(x, w, pad):
    return jax.lax.conv_general_dilated(
        x, w, (1, 1), [(pad, pad), (pad, pad)],
        dimension_numbers=("NHWC", "HWIO", "NHWC"))


def block35_reference(x_nchw, params, scale=1.0):
    x = jnp.transpose(x_nchw, (0, 2, 3, 1))

    def c1(inp, prm):
        w, s, b = prm
        y = _ref_conv(inp, w.reshape(1, 1, *w.shape), 0)
        return jnp.maximum(y * s + b, 0.0)

    def c3(inp, prm):
        w, s, b = prm
        y = _ref_conv(inp, w, 1)
        return jnp.maximum(y * s + b, 0.0)

    b0 = c1(x, params["b0"])
    b1 = c3(c1(x, params["b1a"]), params["b1b"])
    b2 = c3(c3(c1(x, params["b2a"]), params["b2b"]), params["b2c"])
    cat = jnp.concatenate([b0, b1, b2], axis=-1)
    y = _ref_conv(cat, params["wf"].reshape(1, 1, 128, 320), 0) + params["bf"]
    out = jnp.maximum(y * scale + x, 0.0)
    return jnp.transpose(out, (0, 3, 1, 2))


if __name__ == "__main__":
    key = jax.random.PRNGKey(0)
    kx, kp = jax.random.split(key)

    # Small but module-consistent shapes: in-channels must be 320.
    x = jax.random.normal(kx, (2, 320, 8, 8), jnp.float32)
    params = init_block35_params(kp)
    scale = 0.17

    ref = jax.block_until_ready(block35_reference(x, params, scale))
    out = jax.block_until_ready(block35_forward(x, params, scale))
    assert out.shape == (2, 320, 8, 8)
    denom = float(jnp.max(jnp.abs(ref))) + 1e-6
    rel = float(jnp.max(jnp.abs(out - ref))) / denom
    assert rel < 2e-2, rel

    # Multi-image grid blocks (v6e/v7x batching knob) must match too.
    out2 = jax.block_until_ready(
        block35_forward(x, params, scale, block_batch=2))
    rel2 = float(jnp.max(jnp.abs(out2 - ref))) / denom
    assert rel2 < 2e-2, rel2

    print("KERNEL_OK")
</pallas_src>

<mosaic_0001>
module attributes {stable_mosaic.version = 11 : i64} {
  func.func @_block35_kernel(%arg0: i32, %arg1: memref<1x8x8x320xf32, #tpu.memory_space<vmem>>, %arg2: memref<100x1xf32, #tpu.memory_space<vmem>>, %arg3: memref<320x96xbf16, #tpu.memory_space<vmem>>, %arg4: memref<1x96xf32, #tpu.memory_space<vmem>>, %arg5: memref<9x64x80xbf16, #tpu.memory_space<vmem>>, %arg6: memref<1x80xf32, #tpu.memory_space<vmem>>, %arg7: memref<9x48x64xbf16, #tpu.memory_space<vmem>>, %arg8: memref<1x64xf32, #tpu.memory_space<vmem>>, %arg9: memref<96x320xbf16, #tpu.memory_space<vmem>>, %arg10: memref<80x320xbf16, #tpu.memory_space<vmem>>, %arg11: memref<64x320xbf16, #tpu.memory_space<vmem>>, %arg12: memref<1x320xf32, #tpu.memory_space<vmem>>, %arg13: memref<1x8x8x320xf32, #tpu.memory_space<vmem>>, %arg14: memref<128x96xf32, #tpu.memory_space<vmem>>, %arg15: memref<128x48xf32, #tpu.memory_space<vmem>>) attributes {dimension_semantics = [#tpu.dimension_semantics<parallel>], iteration_bounds = array<i64: 2>, scalar_prefetch = 0 : i64, scratch_operands = 2 : i64, tpu.core_type = #tpu.core_type<tc>, window_params = [{transform_indices = @transform_0, window_bounds = array<i64: 1, 8, 8, 320>}, {pipeline_mode = #tpu.pipeline_mode<synchronous>, transform_indices = @transform_1, window_bounds = array<i64: 100, 1>}, {pipeline_mode = #tpu.pipeline_mode<synchronous>, transform_indices = @transform_2, window_bounds = array<i64: 320, 96>}, {pipeline_mode = #tpu.pipeline_mode<synchronous>, transform_indices = @transform_3, window_bounds = array<i64: 1, 96>}, {pipeline_mode = #tpu.pipeline_mode<synchronous>, transform_indices = @transform_4, window_bounds = array<i64: 9, 64, 80>}, {pipeline_mode = #tpu.pipeline_mode<synchronous>, transform_indices = @transform_5, window_bounds = array<i64: 1, 80>}, {pipeline_mode = #tpu.pipeline_mode<synchronous>, transform_indices = @transform_6, window_bounds = array<i64: 9, 48, 64>}, {pipeline_mode = #tpu.pipeline_mode<synchronous>, transform_indices = @transform_7, window_bounds = array<i64: 1, 64>}, {pipeline_mode = #tpu.pipeline_mode<synchronous>, transform_indices = @transform_8, window_bounds = array<i64: 96, 320>}, {pipeline_mode = #tpu.pipeline_mode<synchronous>, transform_indices = @transform_9, window_bounds = array<i64: 80, 320>}, {pipeline_mode = #tpu.pipeline_mode<synchronous>, transform_indices = @transform_10, window_bounds = array<i64: 64, 320>}, {pipeline_mode = #tpu.pipeline_mode<synchronous>, transform_indices = @transform_11, window_bounds = array<i64: 1, 320>}, {transform_indices = @transform_12, window_bounds = array<i64: 1, 8, 8, 320>}]} {
    %c0 = arith.constant 0 : index
    %c0_0 = arith.constant 0 : index
    %c0_1 = arith.constant 0 : index
    %c0_2 = arith.constant 0 : index
    %0 = vector.load %arg1[%c0, %c0_0, %c0_1, %c0_2] : memref<1x8x8x320xf32, #tpu.memory_space<vmem>>, vector<1x8x8x320xf32>
    %1 = vector.shape_cast %0 : vector<1x8x8x320xf32> to vector<64x320xf32>
    %2 = arith.truncf %1 : vector<64x320xf32> to vector<64x320xbf16>
    %c0_3 = arith.constant 0 : index
    %c0_4 = arith.constant 0 : index
    %3 = vector.load %arg3[%c0_3, %c0_4] : memref<320x96xbf16, #tpu.memory_space<vmem>>, vector<320x96xbf16>
    %cst = arith.constant dense<0.000000e+00> : vector<64x96xf32>
    %4 = tpu.matmul %2, %3, %cst {dimension_numbers = #tpu.dot_dimension_numbers<[1], [0], [0], [1], [0, 0, 1, 1], [], []>} : vector<64x320xbf16>, vector<320x96xbf16>, vector<64x96xf32> -> vector<64x96xf32>
    %c0_5 = arith.constant 0 : index
    %c0_6 = arith.constant 0 : index
    %5 = vector.load %arg4[%c0_5, %c0_6] : memref<1x96xf32, #tpu.memory_space<vmem>>, vector<1x96xf32>
    %6 = vector.broadcast %5 : vector<1x96xf32> to vector<64x96xf32>
    %7 = arith.addf %4, %6 : vector<64x96xf32>
    %cst_7 = arith.constant 0.000000e+00 : f32
    %8 = vector.broadcast %cst_7 : f32 to vector<64x96xf32>
    %9 = arith.maximumf %7, %8 : vector<64x96xf32>
    %cst_8 = arith.constant 0.000000e+00 : f32
    %10 = vector.broadcast %cst_8 : f32 to vector<128x96xf32>
    %c0_9 = arith.constant 0 : index
    %c0_10 = arith.constant 0 : index
    %11 = vector.load %arg14[%c0_9, %c0_10] : memref<128x96xf32, #tpu.memory_space<vmem>>, vector<128x96xf32>
    tpu.vector_store %arg14[%c0_9, %c0_10], %10 {strides = array<i32>} : memref<128x96xf32, #tpu.memory_space<vmem>>, vector<128x96xf32>,
    %cst_11 = arith.constant 0.000000e+00 : f32
    %12 = vector.broadcast %cst_11 : f32 to vector<11x48xf32>
    %c0_12 = arith.constant 0 : index
    %c0_13 = arith.constant 0 : index
    %13 = vector.load %arg15[%c0_12, %c0_13] : memref<128x48xf32, #tpu.memory_space<vmem>>, vector<11x48xf32>
    tpu.vector_store %arg15[%c0_12, %c0_13], %12 {strides = array<i32>} : memref<128x48xf32, #tpu.memory_space<vmem>>, vector<11x48xf32>,
    %14 = vector.extract_strided_slice %9 {offsets = [0, 0], sizes = [8, 96], strides = [1, 1]} : vector<64x96xf32> to vector<8x96xf32>
    %c11 = arith.constant 11 : index
    %c0_14 = arith.constant 0 : index
    %15 = vector.load %arg14[%c11, %c0_14] : memref<128x96xf32, #tpu.memory_space<vmem>>, vector<8x96xf32>
    tpu.vector_store %arg14[%c11, %c0_14], %14 {strides = array<i32>} : memref<128x96xf32, #tpu.memory_space<vmem>>, vector<8x96xf32>,
    %16 = vector.extract_strided_slice %9 {offsets = [8, 0], sizes = [8, 96], strides = [1, 1]} : vector<64x96xf32> to vector<8x96xf32>
    %c21 = arith.constant 21 : index
    %c0_15 = arith.constant 0 : index
    %17 = vector.load %arg14[%c21, %c0_15] : memref<128x96xf32, #tpu.memory_space<vmem>>, vector<8x96xf32>
    tpu.vector_store %arg14[%c21, %c0_15], %16 {strides = array<i32>} : memref<128x96xf32, #tpu.memory_space<vmem>>, vector<8x96xf32>,
    %18 = vector.extract_strided_slice %9 {offsets = [16, 0], sizes = [8, 96], strides = [1, 1]} : vector<64x96xf32> to vector<8x96xf32>
    %c31 = arith.constant 31 : index
    %c0_16 = arith.constant 0 : index
    %19 = vector.load %arg14[%c31, %c0_16] : memref<128x96xf32, #tpu.memory_space<vmem>>, vector<8x96xf32>
    tpu.vector_store %arg14[%c31, %c0_16], %18 {strides = array<i32>} : memref<128x96xf32, #tpu.memory_space<vmem>>, vector<8x96xf32>,
    %20 = vector.extract_strided_slice %9 {offsets = [24, 0], sizes = [8, 96], strides = [1, 1]} : vector<64x96xf32> to vector<8x96xf32>
    %c41 = arith.constant 41 : index
    %c0_17 = arith.constant 0 : index
    %21 = vector.load %arg14[%c41, %c0_17] : memref<128x96xf32, #tpu.memory_space<vmem>>, vector<8x96xf32>
    tpu.vector_store %arg14[%c41, %c0_17], %20 {strides = array<i32>} : memref<128x96xf32, #tpu.memory_space<vmem>>, vector<8x96xf32>,
    %22 = vector.extract_strided_slice %9 {offsets = [32, 0], sizes = [8, 96], strides = [1, 1]} : vector<64x96xf32> to vector<8x96xf32>
    %c51 = arith.constant 51 : index
    %c0_18 = arith.constant 0 : index
    %23 = vector.load %arg14[%c51, %c0_18] : memref<128x96xf32, #tpu.memory_space<vmem>>, vector<8x96xf32>
    tpu.vector_store %arg14[%c51, %c0_18], %22 {strides = array<i32>} : memref<128x96xf32, #tpu.memory_space<vmem>>, vector<8x96xf32>,
    %24 = vector.extract_strided_slice %9 {offsets = [40, 0], sizes = [8, 96], strides = [1, 1]} : vector<64x96xf32> to vector<8x96xf32>
    %c61 = arith.constant 61 : index
    %c0_19 = arith.constant 0 : index
    %25 = vector.load %arg14[%c61, %c0_19] : memref<128x96xf32, #tpu.memory_space<vmem>>, vector<8x96xf32>
    tpu.vector_store %arg14[%c61, %c0_19], %24 {strides = array<i32>} : memref<128x96xf32, #tpu.memory_space<vmem>>, vector<8x96xf32>,
    %26 = vector.extract_strided_slice %9 {offsets = [48, 0], sizes = [8, 96], strides = [1, 1]} : vector<64x96xf32> to vector<8x96xf32>
    %c71 = arith.constant 71 : index
    %c0_20 = arith.constant 0 : index
    %27 = vector.load %arg14[%c71, %c0_20] : memref<128x96xf32, #tpu.memory_space<vmem>>, vector<8x96xf32>
    tpu.vector_store %arg14[%c71, %c0_20], %26 {strides = array<i32>} : memref<128x96xf32, #tpu.memory_space<vmem>>, vector<8x96xf32>,
    %28 = vector.extract_strided_slice %9 {offsets = [56, 0], sizes = [8, 96], strides = [1, 1]} : vector<64x96xf32> to vector<8x96xf32>
    %c81 = arith.constant 81 : index
    %c0_21 = arith.constant 0 : index
    %29 = vector.load %arg14[%c81, %c0_21] : memref<128x96xf32, #tpu.memory_space<vmem>>, vector<8x96xf32>
    tpu.vector_store %arg14[%c81, %c0_21], %28 {strides = array<i32>} : memref<128x96xf32, #tpu.memory_space<vmem>>, vector<8x96xf32>,
    %c0_22 = arith.constant 0 : index
    %c0_23 = arith.constant 0 : index
    %30 = vector.load %arg14[%c0_22, %c0_23] : memref<128x96xf32, #tpu.memory_space<vmem>>, vector<100x64xf32>
    %31 = arith.truncf %30 : vector<100x64xf32> to vector<100x64xbf16>
    %c0_24 = arith.constant 0 : index
    %c0_25 = arith.constant 0 : index
    %c0_26 = arith.constant 0 : index
    %32 = vector.load %arg5[%c0_24, %c0_25, %c0_26] : memref<9x64x80xbf16, #tpu.memory_space<vmem>>, vector<1x64x80xbf16>
    %33 = vector.shape_cast %32 : vector<1x64x80xbf16> to vector<64x80xbf16>
    %cst_27 = arith.constant dense<0.000000e+00> : vector<100x80xf32>
    %34 = tpu.matmul %31, %33, %cst_27 {dimension_numbers = #tpu.dot_dimension_numbers<[1], [0], [0], [1], [0, 0, 1, 1], [], []>} : vector<100x64xbf16>, vector<64x80xbf16>, vector<100x80xf32> -> vector<100x80xf32>
    %c1 = arith.constant 1 : index
    %c0_28 = arith.constant 0 : index
    %35 = vector.load %arg14[%c1, %c0_28] : memref<128x96xf32, #tpu.memory_space<vmem>>, vector<100x64xf32>
    %36 = arith.truncf %35 : vector<100x64xf32> to vector<100x64xbf16>
    %c1_29 = arith.constant 1 : index
    %c0_30 = arith.constant 0 : index
    %c0_31 = arith.constant 0 : index
    %37 = vector.load %arg5[%c1_29, %c0_30, %c0_31] : memref<9x64x80xbf16, #tpu.memory_space<vmem>>, vector<1x64x80xbf16>
    %38 = vector.shape_cast %37 : vector<1x64x80xbf16> to vector<64x80xbf16>
    %cst_32 = arith.constant dense<0.000000e+00> : vector<100x80xf32>
    %39 = tpu.matmul %36, %38, %cst_32 {dimension_numbers = #tpu.dot_dimension_numbers<[1], [0], [0], [1], [0, 0, 1, 1], [], []>} : vector<100x64xbf16>, vector<64x80xbf16>, vector<100x80xf32> -> vector<100x80xf32>
    %40 = arith.addf %34, %39 : vector<100x80xf32>
    %c2 = arith.constant 2 : index
    %c0_33 = arith.constant 0 : index
    %41 = vector.load %arg14[%c2, %c0_33] : memref<128x96xf32, #tpu.memory_space<vmem>>, vector<100x64xf32>
    %42 = arith.truncf %41 : vector<100x64xf32> to vector<100x64xbf16>
    %c2_34 = arith.constant 2 : index
    %c0_35 = arith.constant 0 : index
    %c0_36 = arith.constant 0 : index
    %43 = vector.load %arg5[%c2_34, %c0_35, %c0_36] : memref<9x64x80xbf16, #tpu.memory_space<vmem>>, vector<1x64x80xbf16>
    %44 = vector.shape_cast %43 : vector<1x64x80xbf16> to vector<64x80xbf16>
    %cst_37 = arith.constant dense<0.000000e+00> : vector<100x80xf32>
    %45 = tpu.matmul %42, %44, %cst_37 {dimension_numbers = #tpu.dot_dimension_numbers<[1], [0], [0], [1], [0, 0, 1, 1], [], []>} : vector<100x64xbf16>, vector<64x80xbf16>, vector<100x80xf32> -> vector<100x80xf32>
    %46 = arith.addf %40, %45 : vector<100x80xf32>
    %c10 = arith.constant 10 : index
    %c0_38 = arith.constant 0 : index
    %47 = vector.load %arg14[%c10, %c0_38] : memref<128x96xf32, #tpu.memory_space<vmem>>, vector<100x64xf32>
    %48 = arith.truncf %47 : vector<100x64xf32> to vector<100x64xbf16>
    %c3 = arith.constant 3 : index
    %c0_39 = arith.constant 0 : index
    %c0_40 = arith.constant 0 : index
    %49 = vector.load %arg5[%c3, %c0_39, %c0_40] : memref<9x64x80xbf16, #tpu.memory_space<vmem>>, vector<1x64x80xbf16>
    %50 = vector.shape_cast %49 : vector<1x64x80xbf16> to vector<64x80xbf16>
    %cst_41 = arith.constant dense<0.000000e+00> : vector<100x80xf32>
    %51 = tpu.matmul %48, %50, %cst_41 {dimension_numbers = #tpu.dot_dimension_numbers<[1], [0], [0], [1], [0, 0, 1, 1], [], []>} : vector<100x64xbf16>, vector<64x80xbf16>, vector<100x80xf32> -> vector<100x80xf32>
    %52 = arith.addf %46, %51 : vector<100x80xf32>
    %c11_42 = arith.constant 11 : index
    %c0_43 = arith.constant 0 : index
    %53 = vector.load %arg14[%c11_42, %c0_43] : memref<128x96xf32, #tpu.memory_space<vmem>>, vector<100x64xf32>
    %54 = arith.truncf %53 : vector<100x64xf32> to vector<100x64xbf16>
    %c4 = arith.constant 4 : index
    %c0_44 = arith.constant 0 : index
    %c0_45 = arith.constant 0 : index
    %55 = vector.load %arg5[%c4, %c0_44, %c0_45] : memref<9x64x80xbf16, #tpu.memory_space<vmem>>, vector<1x64x80xbf16>
    %56 = vector.shape_cast %55 : vector<1x64x80xbf16> to vector<64x80xbf16>
    %cst_46 = arith.constant dense<0.000000e+00> : vector<100x80xf32>
    %57 = tpu.matmul %54, %56, %cst_46 {dimension_numbers = #tpu.dot_dimension_numbers<[1], [0], [0], [1], [0, 0, 1, 1], [], []>} : vector<100x64xbf16>, vector<64x80xbf16>, vector<100x80xf32> -> vector<100x80xf32>
    %58 = arith.addf %52, %57 : vector<100x80xf32>
    %c12 = arith.constant 12 : index
    %c0_47 = arith.constant 0 : index
    %59 = vector.load %arg14[%c12, %c0_47] : memref<128x96xf32, #tpu.memory_space<vmem>>, vector<100x64xf32>
    %60 = arith.truncf %59 : vector<100x64xf32> to vector<100x64xbf16>
    %c5 = arith.constant 5 : index
    %c0_48 = arith.constant 0 : index
    %c0_49 = arith.constant 0 : index
    %61 = vector.load %arg5[%c5, %c0_48, %c0_49] : memref<9x64x80xbf16, #tpu.memory_space<vmem>>, vector<1x64x80xbf16>
    %62 = vector.shape_cast %61 : vector<1x64x80xbf16> to vector<64x80xbf16>
    %cst_50 = arith.constant dense<0.000000e+00> : vector<100x80xf32>
    %63 = tpu.matmul %60, %62, %cst_50 {dimension_numbers = #tpu.dot_dimension_numbers<[1], [0], [0], [1], [0, 0, 1, 1], [], []>} : vector<100x64xbf16>, vector<64x80xbf16>, vector<100x80xf32> -> vector<100x80xf32>
    %64 = arith.addf %58, %63 : vector<100x80xf32>
    %c20 = arith.constant 20 : index
    %c0_51 = arith.constant 0 : index
    %65 = vector.load %arg14[%c20, %c0_51] : memref<128x96xf32, #tpu.memory_space<vmem>>, vector<100x64xf32>
    %66 = arith.truncf %65 : vector<100x64xf32> to vector<100x64xbf16>
    %c6 = arith.constant 6 : index
    %c0_52 = arith.constant 0 : index
    %c0_53 = arith.constant 0 : index
    %67 = vector.load %arg5[%c6, %c0_52, %c0_53] : memref<9x64x80xbf16, #tpu.memory_space<vmem>>, vector<1x64x80xbf16>
    %68 = vector.shape_cast %67 : vector<1x64x80xbf16> to vector<64x80xbf16>
    %cst_54 = arith.constant dense<0.000000e+00> : vector<100x80xf32>
    %69 = tpu.matmul %66, %68, %cst_54 {dimension_numbers = #tpu.dot_dimension_numbers<[1], [0], [0], [1], [0, 0, 1, 1], [], []>} : vector<100x64xbf16>, vector<64x80xbf16>, vector<100x80xf32> -> vector<100x80xf32>
    %70 = arith.addf %64, %69 : vector<100x80xf32>
    %c21_55 = arith.constant 21 : index
    %c0_56 = arith.constant 0 : index
    %71 = vector.load %arg14[%c21_55, %c0_56] : memref<128x96xf32, #tpu.memory_space<vmem>>, vector<100x64xf32>
    %72 = arith.truncf %71 : vector<100x64xf32> to vector<100x64xbf16>
    %c7 = arith.constant 7 : index
    %c0_57 = arith.constant 0 : index
    %c0_58 = arith.constant 0 : index
    %73 = vector.load %arg5[%c7, %c0_57, %c0_58] : memref<9x64x80xbf16, #tpu.memory_space<vmem>>, vector<1x64x80xbf16>
    %74 = vector.shape_cast %73 : vector<1x64x80xbf16> to vector<64x80xbf16>
    %cst_59 = arith.constant dense<0.000000e+00> : vector<100x80xf32>
    %75 = tpu.matmul %72, %74, %cst_59 {dimension_numbers = #tpu.dot_dimension_numbers<[1], [0], [0], [1], [0, 0, 1, 1], [], []>} : vector<100x64xbf16>, vector<64x80xbf16>, vector<100x80xf32> -> vector<100x80xf32>
    %76 = arith.addf %70, %75 : vector<100x80xf32>
    %c22 = arith.constant 22 : index
    %c0_60 = arith.constant 0 : index
    %77 = vector.load %arg14[%c22, %c0_60] : memref<128x96xf32, #tpu.memory_space<vmem>>, vector<100x64xf32>
    %78 = arith.truncf %77 : vector<100x64xf32> to vector<100x64xbf16>
    %c8 = arith.constant 8 : index
    %c0_61 = arith.constant 0 : index
    %c0_62 = arith.constant 0 : index
    %79 = vector.load %arg5[%c8, %c0_61, %c0_62] : memref<9x64x80xbf16, #tpu.memory_space<vmem>>, vector<1x64x80xbf16>
    %80 = vector.shape_cast %79 : vector<1x64x80xbf16> to vector<64x80xbf16>
    %cst_63 = arith.constant dense<0.000000e+00> : vector<100x80xf32>
    %81 = tpu.matmul %78, %80, %cst_63 {dimension_numbers = #tpu.dot_dimension_numbers<[1], [0], [0], [1], [0, 0, 1, 1], [], []>} : vector<100x64xbf16>, vector<64x80xbf16>, vector<100x80xf32> -> vector<100x80xf32>
    %82 = arith.addf %76, %81 : vector<100x80xf32>
    %c0_64 = arith.constant 0 : index
    %c0_65 = arith.constant 0 : index
    %83 = vector.load %arg6[%c0_64, %c0_65] : memref<1x80xf32, #tpu.memory_space<vmem>>, vector<1x80xf32>
    %84 = vector.broadcast %83 : vector<1x80xf32> to vector<100x80xf32>
    %85 = arith.addf %82, %84 : vector<100x80xf32>
    %cst_66 = arith.constant 0.000000e+00 : f32
    %86 = vector.broadcast %cst_66 : f32 to vector<100x80xf32>
    %87 = arith.maximumf %85, %86 : vector<100x80xf32>
    %88 = vector.extract_strided_slice %87 {offsets = [0, 0], sizes = [89, 48], strides = [1, 1]} : vector<100x80xf32> to vector<89x48xf32>
    %c11_67 = arith.constant 11 : index
    %c0_68 = arith.constant 0 : index
    %89 = vector.load %arg2[%c11_67, %c0_68] : memref<100x1xf32, #tpu.memory_space<vmem>>, vector<89x1xf32>
    %90 = vector.broadcast %89 : vector<89x1xf32> to vector<89x48xf32>
    %91 = arith.mulf %88, %90 : vector<89x48xf32>
    %c11_69 = arith.constant 11 : index
    %c0_70 = arith.constant 0 : index
    %92 = vector.load %arg15[%c11_69, %c0_70] : memref<128x48xf32, #tpu.memory_space<vmem>>, vector<89x48xf32>
    tpu.vector_store %arg15[%c11_69, %c0_70], %91 {strides = array<i32>} : memref<128x48xf32, #tpu.memory_space<vmem>>, vector<89x48xf32>,
    %c0_71 = arith.constant 0 : index
    %c0_72 = arith.constant 0 : index
    %93 = vector.load %arg15[%c0_71, %c0_72] : memref<128x48xf32, #tpu.memory_space<vmem>>, vector<100x48xf32>
    %94 = arith.truncf %93 : vector<100x48xf32> to vector<100x48xbf16>
    %c0_73 = arith.constant 0 : index
    %c0_74 = arith.constant 0 : index
    %c0_75 = arith.constant 0 : index
    %95 = vector.load %arg7[%c0_73, %c0_74, %c0_75] : memref<9x48x64xbf16, #tpu.memory_space<vmem>>, vector<1x48x64xbf16>
    %96 = vector.shape_cast %95 : vector<1x48x64xbf16> to vector<48x64xbf16>
    %cst_76 = arith.constant dense<0.000000e+00> : vector<100x64xf32>
    %97 = tpu.matmul %94, %96, %cst_76 {dimension_numbers = #tpu.dot_dimension_numbers<[1], [0], [0], [1], [0, 0, 1, 1], [], []>} : vector<100x48xbf16>, vector<48x64xbf16>, vector<100x64xf32> -> vector<100x64xf32>
    %c1_77 = arith.constant 1 : index
    %c0_78 = arith.constant 0 : index
    %98 = vector.load %arg15[%c1_77, %c0_78] : memref<128x48xf32, #tpu.memory_space<vmem>>, vector<100x48xf32>
    %99 = arith.truncf %98 : vector<100x48xf32> to vector<100x48xbf16>
    %c1_79 = arith.constant 1 : index
    %c0_80 = arith.constant 0 : index
    %c0_81 = arith.constant 0 : index
    %100 = vector.load %arg7[%c1_79, %c0_80, %c0_81] : memref<9x48x64xbf16, #tpu.memory_space<vmem>>, vector<1x48x64xbf16>
    %101 = vector.shape_cast %100 : vector<1x48x64xbf16> to vector<48x64xbf16>
    %cst_82 = arith.constant dense<0.000000e+00> : vector<100x64xf32>
    %102 = tpu.matmul %99, %101, %cst_82 {dimension_numbers = #tpu.dot_dimension_numbers<[1], [0], [0], [1], [0, 0, 1, 1], [], []>} : vector<100x48xbf16>, vector<48x64xbf16>, vector<100x64xf32> -> vector<100x64xf32>
    %103 = arith.addf %97, %102 : vector<100x64xf32>
    %c2_83 = arith.constant 2 : index
    %c0_84 = arith.constant 0 : index
    %104 = vector.load %arg15[%c2_83, %c0_84] : memref<128x48xf32, #tpu.memory_space<vmem>>, vector<100x48xf32>
    %105 = arith.truncf %104 : vector<100x48xf32> to vector<100x48xbf16>
    %c2_85 = arith.constant 2 : index
    %c0_86 = arith.constant 0 : index
    %c0_87 = arith.constant 0 : index
    %106 = vector.load %arg7[%c2_85, %c0_86, %c0_87] : memref<9x48x64xbf16, #tpu.memory_space<vmem>>, vector<1x48x64xbf16>
    %107 = vector.shape_cast %106 : vector<1x48x64xbf16> to vector<48x64xbf16>
    %cst_88 = arith.constant dense<0.000000e+00> : vector<100x64xf32>
    %108 = tpu.matmul %105, %107, %cst_88 {dimension_numbers = #tpu.dot_dimension_numbers<[1], [0], [0], [1], [0, 0, 1, 1], [], []>} : vector<100x48xbf16>, vector<48x64xbf16>, vector<100x64xf32> -> vector<100x64xf32>
    %109 = arith.addf %103, %108 : vector<100x64xf32>
    %c10_89 = arith.constant 10 : index
    %c0_90 = arith.constant 0 : index
    %110 = vector.load %arg15[%c10_89, %c0_90] : memref<128x48xf32, #tpu.memory_space<vmem>>, vector<100x48xf32>
    %111 = arith.truncf %110 : vector<100x48xf32> to vector<100x48xbf16>
    %c3_91 = arith.constant 3 : index
    %c0_92 = arith.constant 0 : index
    %c0_93 = arith.constant 0 : index
    %112 = vector.load %arg7[%c3_91, %c0_92, %c0_93] : memref<9x48x64xbf16, #tpu.memory_space<vmem>>, vector<1x48x64xbf16>
    %113 = vector.shape_cast %112 : vector<1x48x64xbf16> to vector<48x64xbf16>
    %cst_94 = arith.constant dense<0.000000e+00> : vector<100x64xf32>
    %114 = tpu.matmul %111, %113, %cst_94 {dimension_numbers = #tpu.dot_dimension_numbers<[1], [0], [0], [1], [0, 0, 1, 1], [], []>} : vector<100x48xbf16>, vector<48x64xbf16>, vector<100x64xf32> -> vector<100x64xf32>
    %115 = arith.addf %109, %114 : vector<100x64xf32>
    %c11_95 = arith.constant 11 : index
    %c0_96 = arith.constant 0 : index
    %116 = vector.load %arg15[%c11_95, %c0_96] : memref<128x48xf32, #tpu.memory_space<vmem>>, vector<100x48xf32>
    %117 = arith.truncf %116 : vector<100x48xf32> to vector<100x48xbf16>
    %c4_97 = arith.constant 4 : index
    %c0_98 = arith.constant 0 : index
    %c0_99 = arith.constant 0 : index
    %118 = vector.load %arg7[%c4_97, %c0_98, %c0_99] : memref<9x48x64xbf16, #tpu.memory_space<vmem>>, vector<1x48x64xbf16>
    %119 = vector.shape_cast %118 : vector<1x48x64xbf16> to vector<48x64xbf16>
    %cst_100 = arith.constant dense<0.000000e+00> : vector<100x64xf32>
    %120 = tpu.matmul %117, %119, %cst_100 {dimension_numbers = #tpu.dot_dimension_numbers<[1], [0], [0], [1], [0, 0, 1, 1], [], []>} : vector<100x48xbf16>, vector<48x64xbf16>, vector<100x64xf32> -> vector<100x64xf32>
    %121 = arith.addf %115, %120 : vector<100x64xf32>
    %c12_101 = arith.constant 12 : index
    %c0_102 = arith.constant 0 : index
    %122 = vector.load %arg15[%c12_101, %c0_102] : memref<128x48xf32, #tpu.memory_space<vmem>>, vector<100x48xf32>
    %123 = arith.truncf %122 : vector<100x48xf32> to vector<100x48xbf16>
    %c5_103 = arith.constant 5 : index
    %c0_104 = arith.constant 0 : index
    %c0_105 = arith.constant 0 : index
    %124 = vector.load %arg7[%c5_103, %c0_104, %c0_105] : memref<9x48x64xbf16, #tpu.memory_space<vmem>>, vector<1x48x64xbf16>
    %125 = vector.shape_cast %124 : vector<1x48x64xbf16> to vector<48x64xbf16>
    %cst_106 = arith.constant dense<0.000000e+00> : vector<100x64xf32>
    %126 = tpu.matmul %123, %125, %cst_106 {dimension_numbers = #tpu.dot_dimension_numbers<[1], [0], [0], [1], [0, 0, 1, 1], [], []>} : vector<100x48xbf16>, vector<48x64xbf16>, vector<100x64xf32> -> vector<100x64xf32>
    %127 = arith.addf %121, %126 : vector<100x64xf32>
    %c20_107 = arith.constant 20 : index
    %c0_108 = arith.constant 0 : index
    %128 = vector.load %arg15[%c20_107, %c0_108] : memref<128x48xf32, #tpu.memory_space<vmem>>, vector<100x48xf32>
    %129 = arith.truncf %128 : vector<100x48xf32> to vector<100x48xbf16>
    %c6_109 = arith.constant 6 : index
    %c0_110 = arith.constant 0 : index
    %c0_111 = arith.constant 0 : index
    %130 = vector.load %arg7[%c6_109, %c0_110, %c0_111] : memref<9x48x64xbf16, #tpu.memory_space<vmem>>, vector<1x48x64xbf16>
    %131 = vector.shape_cast %130 : vector<1x48x64xbf16> to vector<48x64xbf16>
    %cst_112 = arith.constant dense<0.000000e+00> : vector<100x64xf32>
    %132 = tpu.matmul %129, %131, %cst_112 {dimension_numbers = #tpu.dot_dimension_numbers<[1], [0], [0], [1], [0, 0, 1, 1], [], []>} : vector<100x48xbf16>, vector<48x64xbf16>, vector<100x64xf32> -> vector<100x64xf32>
    %133 = arith.addf %127, %132 : vector<100x64xf32>
    %c21_113 = arith.constant 21 : index
    %c0_114 = arith.constant 0 : index
    %134 = vector.load %arg15[%c21_113, %c0_114] : memref<128x48xf32, #tpu.memory_space<vmem>>, vector<100x48xf32>
    %135 = arith.truncf %134 : vector<100x48xf32> to vector<100x48xbf16>
    %c7_115 = arith.constant 7 : index
    %c0_116 = arith.constant 0 : index
    %c0_117 = arith.constant 0 : index
    %136 = vector.load %arg7[%c7_115, %c0_116, %c0_117] : memref<9x48x64xbf16, #tpu.memory_space<vmem>>, vector<1x48x64xbf16>
    %137 = vector.shape_cast %136 : vector<1x48x64xbf16> to vector<48x64xbf16>
    %cst_118 = arith.constant dense<0.000000e+00> : vector<100x64xf32>
    %138 = tpu.matmul %135, %137, %cst_118 {dimension_numbers = #tpu.dot_dimension_numbers<[1], [0], [0], [1], [0, 0, 1, 1], [], []>} : vector<100x48xbf16>, vector<48x64xbf16>, vector<100x64xf32> -> vector<100x64xf32>
    %139 = arith.addf %133, %138 : vector<100x64xf32>
    %c22_119 = arith.constant 22 : index
    %c0_120 = arith.constant 0 : index
    %140 = vector.load %arg15[%c22_119, %c0_120] : memref<128x48xf32, #tpu.memory_space<vmem>>, vector<100x48xf32>
    %141 = arith.truncf %140 : vector<100x48xf32> to vector<100x48xbf16>
    %c8_121 = arith.constant 8 : index
    %c0_122 = arith.constant 0 : index
    %c0_123 = arith.constant 0 : index
    %142 = vector.load %arg7[%c8_121, %c0_122, %c0_123] : memref<9x48x64xbf16, #tpu.memory_space<vmem>>, vector<1x48x64xbf16>
    %143 = vector.shape_cast %142 : vector<1x48x64xbf16> to vector<48x64xbf16>
    %cst_124 = arith.constant dense<0.000000e+00> : vector<100x64xf32>
    %144 = tpu.matmul %141, %143, %cst_124 {dimension_numbers = #tpu.dot_dimension_numbers<[1], [0], [0], [1], [0, 0, 1, 1], [], []>} : vector<100x48xbf16>, vector<48x64xbf16>, vector<100x64xf32> -> vector<100x64xf32>
    %145 = arith.addf %139, %144 : vector<100x64xf32>
    %c0_125 = arith.constant 0 : index
    %c0_126 = arith.constant 0 : index
    %146 = vector.load %arg8[%c0_125, %c0_126] : memref<1x64xf32, #tpu.memory_space<vmem>>, vector<1x64xf32>
    %147 = vector.broadcast %146 : vector<1x64xf32> to vector<100x64xf32>
    %148 = arith.addf %145, %147 : vector<100x64xf32>
    %cst_127 = arith.constant 0.000000e+00 : f32
    %149 = vector.broadcast %cst_127 : f32 to vector<100x64xf32>
    %150 = arith.maximumf %148, %149 : vector<100x64xf32>
    %c11_128 = arith.constant 11 : index
    %c0_129 = arith.constant 0 : index
    %151 = vector.load %arg14[%c11_128, %c0_129] : memref<128x96xf32, #tpu.memory_space<vmem>>, vector<100x96xf32>
    %152 = arith.truncf %151 : vector<100x96xf32> to vector<100x96xbf16>
    %c0_130 = arith.constant 0 : index
    %c0_131 = arith.constant 0 : index
    %153 = vector.load %arg9[%c0_130, %c0_131] : memref<96x320xbf16, #tpu.memory_space<vmem>>, vector<96x320xbf16>
    %cst_132 = arith.constant dense<0.000000e+00> : vector<100x320xf32>
    %154 = tpu.matmul %152, %153, %cst_132 {dimension_numbers = #tpu.dot_dimension_numbers<[1], [0], [0], [1], [0, 0, 1, 1], [], []>} : vector<100x96xbf16>, vector<96x320xbf16>, vector<100x320xf32> -> vector<100x320xf32>
    %155 = arith.truncf %87 : vector<100x80xf32> to vector<100x80xbf16>
    %c0_133 = arith.constant 0 : index
    %c0_134 = arith.constant 0 : index
    %156 = vector.load %arg10[%c0_133, %c0_134] : memref<80x320xbf16, #tpu.memory_space<vmem>>, vector<80x320xbf16>
    %cst_135 = arith.constant dense<0.000000e+00> : vector<100x320xf32>
    %157 = tpu.matmul %155, %156, %cst_135 {dimension_numbers = #tpu.dot_dimension_numbers<[1], [0], [0], [1], [0, 0, 1, 1], [], []>} : vector<100x80xbf16>, vector<80x320xbf16>, vector<100x320xf32> -> vector<100x320xf32>
    %158 = arith.addf %154, %157 : vector<100x320xf32>
    %159 = arith.truncf %150 : vector<100x64xf32> to vector<100x64xbf16>
    %c0_136 = arith.constant 0 : index
    %c0_137 = arith.constant 0 : index
    %160 = vector.load %arg11[%c0_136, %c0_137] : memref<64x320xbf16, #tpu.memory_space<vmem>>, vector<64x320xbf16>
    %cst_138 = arith.constant dense<0.000000e+00> : vector<100x320xf32>
    %161 = tpu.matmul %159, %160, %cst_138 {dimension_numbers = #tpu.dot_dimension_numbers<[1], [0], [0], [1], [0, 0, 1, 1], [], []>} : vector<100x64xbf16>, vector<64x320xbf16>, vector<100x320xf32> -> vector<100x320xf32>
    %162 = arith.addf %158, %161 : vector<100x320xf32>
    %c0_139 = arith.constant 0 : index
    %c0_140 = arith.constant 0 : index
    %163 = vector.load %arg12[%c0_139, %c0_140] : memref<1x320xf32, #tpu.memory_space<vmem>>, vector<1x320xf32>
    %164 = vector.broadcast %163 : vector<1x320xf32> to vector<100x320xf32>
    %165 = arith.addf %162, %164 : vector<100x320xf32>
    %166 = vector.extract_strided_slice %165 {offsets = [0, 0], sizes = [8, 320], strides = [1, 1]} : vector<100x320xf32> to vector<8x320xf32>
    %c0_141 = arith.constant 0 : index
    %c0_142 = arith.constant 0 : index
    %c0_143 = arith.constant 0 : index
    %c0_144 = arith.constant 0 : index
    %167 = vector.load %arg1[%c0_141, %c0_142, %c0_143, %c0_144] : memref<1x8x8x320xf32, #tpu.memory_space<vmem>>, vector<1x1x8x320xf32>
    %168 = vector.shape_cast %167 : vector<1x1x8x320xf32> to vector<8x320xf32>
    %169 = arith.addf %166, %168 : vector<8x320xf32>
    %cst_145 = arith.constant 0.000000e+00 : f32
    %170 = vector.broadcast %cst_145 : f32 to vector<8x320xf32>
    %171 = arith.maximumf %169, %170 : vector<8x320xf32>
    %c0_146 = arith.constant 0 : index
    %c0_147 = arith.constant 0 : index
    %c0_148 = arith.constant 0 : index
    %c0_149 = arith.constant 0 : index
    %172 = vector.load %arg13[%c0_146, %c0_147, %c0_148, %c0_149] : memref<1x8x8x320xf32, #tpu.memory_space<vmem>>, vector<1x1x8x320xf32>
    %173 = vector.shape_cast %172 : vector<1x1x8x320xf32> to vector<8x320xf32>
    %174 = vector.shape_cast %171 : vector<8x320xf32> to vector<1x1x8x320xf32>
    tpu.vector_store %arg13[%c0_146, %c0_147, %c0_148, %c0_149], %174 {strides = array<i32>} : memref<1x8x8x320xf32, #tpu.memory_space<vmem>>, vector<1x1x8x320xf32>,
    %175 = vector.extract_strided_slice %165 {offsets = [10, 0], sizes = [8, 320], strides = [1, 1]} : vector<100x320xf32> to vector<8x320xf32>
    %c0_150 = arith.constant 0 : index
    %c1_151 = arith.constant 1 : index
    %c0_152 = arith.constant 0 : index
    %c0_153 = arith.constant 0 : index
    %176 = vector.load %arg1[%c0_150, %c1_151, %c0_152, %c0_153] : memref<1x8x8x320xf32, #tpu.memory_space<vmem>>, vector<1x1x8x320xf32>
    %177 = vector.shape_cast %176 : vector<1x1x8x320xf32> to vector<8x320xf32>
    %178 = arith.addf %175, %177 : vector<8x320xf32>
    %cst_154 = arith.constant 0.000000e+00 : f32
    %179 = vector.broadcast %cst_154 : f32 to vector<8x320xf32>
    %180 = arith.maximumf %178, %179 : vector<8x320xf32>
    %c0_155 = arith.constant 0 : index
    %c1_156 = arith.constant 1 : index
    %c0_157 = arith.constant 0 : index
    %c0_158 = arith.constant 0 : index
    %181 = vector.load %arg13[%c0_155, %c1_156, %c0_157, %c0_158] : memref<1x8x8x320xf32, #tpu.memory_space<vmem>>, vector<1x1x8x320xf32>
    %182 = vector.shape_cast %181 : vector<1x1x8x320xf32> to vector<8x320xf32>
    %183 = vector.shape_cast %180 : vector<8x320xf32> to vector<1x1x8x320xf32>
    tpu.vector_store %arg13[%c0_155, %c1_156, %c0_157, %c0_158], %183 {strides = array<i32>} : memref<1x8x8x320xf32, #tpu.memory_space<vmem>>, vector<1x1x8x320xf32>,
    %184 = vector.extract_strided_slice %165 {offsets = [20, 0], sizes = [8, 320], strides = [1, 1]} : vector<100x320xf32> to vector<8x320xf32>
    %c0_159 = arith.constant 0 : index
    %c2_160 = arith.constant 2 : index
    %c0_161 = arith.constant 0 : index
    %c0_162 = arith.constant 0 : index
    %185 = vector.load %arg1[%c0_159, %c2_160, %c0_161, %c0_162] : memref<1x8x8x320xf32, #tpu.memory_space<vmem>>, vector<1x1x8x320xf32>
    %186 = vector.shape_cast %185 : vector<1x1x8x320xf32> to vector<8x320xf32>
    %187 = arith.addf %184, %186 : vector<8x320xf32>
    %cst_163 = arith.constant 0.000000e+00 : f32
    %188 = vector.broadcast %cst_163 : f32 to vector<8x320xf32>
    %189 = arith.maximumf %187, %188 : vector<8x320xf32>
    %c0_164 = arith.constant 0 : index
    %c2_165 = arith.constant 2 : index
    %c0_166 = arith.constant 0 : index
    %c0_167 = arith.constant 0 : index
    %190 = vector.load %arg13[%c0_164, %c2_165, %c0_166, %c0_167] : memref<1x8x8x320xf32, #tpu.memory_space<vmem>>, vector<1x1x8x320xf32>
    %191 = vector.shape_cast %190 : vector<1x1x8x320xf32> to vector<8x320xf32>
    %192 = vector.shape_cast %189 : vector<8x320xf32> to vector<1x1x8x320xf32>
    tpu.vector_store %arg13[%c0_164, %c2_165, %c0_166, %c0_167], %192 {strides = array<i32>} : memref<1x8x8x320xf32, #tpu.memory_space<vmem>>, vector<1x1x8x320xf32>,
    %193 = vector.extract_strided_slice %165 {offsets = [30, 0], sizes = [8, 320], strides = [1, 1]} : vector<100x320xf32> to vector<8x320xf32>
    %c0_168 = arith.constant 0 : index
    %c3_169 = arith.constant 3 : index
    %c0_170 = arith.constant 0 : index
    %c0_171 = arith.constant 0 : index
    %194 = vector.load %arg1[%c0_168, %c3_169, %c0_170, %c0_171] : memref<1x8x8x320xf32, #tpu.memory_space<vmem>>, vector<1x1x8x320xf32>
    %195 = vector.shape_cast %194 : vector<1x1x8x320xf32> to vector<8x320xf32>
    %196 = arith.addf %193, %195 : vector<8x320xf32>
    %cst_172 = arith.constant 0.000000e+00 : f32
    %197 = vector.broadcast %cst_172 : f32 to vector<8x320xf32>
    %198 = arith.maximumf %196, %197 : vector<8x320xf32>
    %c0_173 = arith.constant 0 : index
    %c3_174 = arith.constant 3 : index
    %c0_175 = arith.constant 0 : index
    %c0_176 = arith.constant 0 : index
    %199 = vector.load %arg13[%c0_173, %c3_174, %c0_175, %c0_176] : memref<1x8x8x320xf32, #tpu.memory_space<vmem>>, vector<1x1x8x320xf32>
    %200 = vector.shape_cast %199 : vector<1x1x8x320xf32> to vector<8x320xf32>
    %201 = vector.shape_cast %198 : vector<8x320xf32> to vector<1x1x8x320xf32>
    tpu.vector_store %arg13[%c0_173, %c3_174, %c0_175, %c0_176], %201 {strides = array<i32>} : memref<1x8x8x320xf32, #tpu.memory_space<vmem>>, vector<1x1x8x320xf32>,
    %202 = vector.extract_strided_slice %165 {offsets = [40, 0], sizes = [8, 320], strides = [1, 1]} : vector<100x320xf32> to vector<8x320xf32>
    %c0_177 = arith.constant 0 : index
    %c4_178 = arith.constant 4 : index
    %c0_179 = arith.constant 0 : index
    %c0_180 = arith.constant 0 : index
    %203 = vector.load %arg1[%c0_177, %c4_178, %c0_179, %c0_180] : memref<1x8x8x320xf32, #tpu.memory_space<vmem>>, vector<1x1x8x320xf32>
    %204 = vector.shape_cast %203 : vector<1x1x8x320xf32> to vector<8x320xf32>
    %205 = arith.addf %202, %204 : vector<8x320xf32>
    %cst_181 = arith.constant 0.000000e+00 : f32
    %206 = vector.broadcast %cst_181 : f32 to vector<8x320xf32>
    %207 = arith.maximumf %205, %206 : vector<8x320xf32>
    %c0_182 = arith.constant 0 : index
    %c4_183 = arith.constant 4 : index
    %c0_184 = arith.constant 0 : index
    %c0_185 = arith.constant 0 : index
    %208 = vector.load %arg13[%c0_182, %c4_183, %c0_184, %c0_185] : memref<1x8x8x320xf32, #tpu.memory_space<vmem>>, vector<1x1x8x320xf32>
    %209 = vector.shape_cast %208 : vector<1x1x8x320xf32> to vector<8x320xf32>
    %210 = vector.shape_cast %207 : vector<8x320xf32> to vector<1x1x8x320xf32>
    tpu.vector_store %arg13[%c0_182, %c4_183, %c0_184, %c0_185], %210 {strides = array<i32>} : memref<1x8x8x320xf32, #tpu.memory_space<vmem>>, vector<1x1x8x320xf32>,
    %211 = vector.extract_strided_slice %165 {offsets = [50, 0], sizes = [8, 320], strides = [1, 1]} : vector<100x320xf32> to vector<8x320xf32>
    %c0_186 = arith.constant 0 : index
    %c5_187 = arith.constant 5 : index
    %c0_188 = arith.constant 0 : index
    %c0_189 = arith.constant 0 : index
    %212 = vector.load %arg1[%c0_186, %c5_187, %c0_188, %c0_189] : memref<1x8x8x320xf32, #tpu.memory_space<vmem>>, vector<1x1x8x320xf32>
    %213 = vector.shape_cast %212 : vector<1x1x8x320xf32> to vector<8x320xf32>
    %214 = arith.addf %211, %213 : vector<8x320xf32>
    %cst_190 = arith.constant 0.000000e+00 : f32
    %215 = vector.broadcast %cst_190 : f32 to vector<8x320xf32>
    %216 = arith.maximumf %214, %215 : vector<8x320xf32>
    %c0_191 = arith.constant 0 : index
    %c5_192 = arith.constant 5 : index
    %c0_193 = arith.constant 0 : index
    %c0_194 = arith.constant 0 : index
    %217 = vector.load %arg13[%c0_191, %c5_192, %c0_193, %c0_194] : memref<1x8x8x320xf32, #tpu.memory_space<vmem>>, vector<1x1x8x320xf32>
    %218 = vector.shape_cast %217 : vector<1x1x8x320xf32> to vector<8x320xf32>
    %219 = vector.shape_cast %216 : vector<8x320xf32> to vector<1x1x8x320xf32>
    tpu.vector_store %arg13[%c0_191, %c5_192, %c0_193, %c0_194], %219 {strides = array<i32>} : memref<1x8x8x320xf32, #tpu.memory_space<vmem>>, vector<1x1x8x320xf32>,
    %220 = vector.extract_strided_slice %165 {offsets = [60, 0], sizes = [8, 320], strides = [1, 1]} : vector<100x320xf32> to vector<8x320xf32>
    %c0_195 = arith.constant 0 : index
    %c6_196 = arith.constant 6 : index
    %c0_197 = arith.constant 0 : index
    %c0_198 = arith.constant 0 : index
    %221 = vector.load %arg1[%c0_195, %c6_196, %c0_197, %c0_198] : memref<1x8x8x320xf32, #tpu.memory_space<vmem>>, vector<1x1x8x320xf32>
    %222 = vector.shape_cast %221 : vector<1x1x8x320xf32> to vector<8x320xf32>
    %223 = arith.addf %220, %222 : vector<8x320xf32>
    %cst_199 = arith.constant 0.000000e+00 : f32
    %224 = vector.broadcast %cst_199 : f32 to vector<8x320xf32>
    %225 = arith.maximumf %223, %224 : vector<8x320xf32>
    %c0_200 = arith.constant 0 : index
    %c6_201 = arith.constant 6 : index
    %c0_202 = arith.constant 0 : index
    %c0_203 = arith.constant 0 : index
    %226 = vector.load %arg13[%c0_200, %c6_201, %c0_202, %c0_203] : memref<1x8x8x320xf32, #tpu.memory_space<vmem>>, vector<1x1x8x320xf32>
    %227 = vector.shape_cast %226 : vector<1x1x8x320xf32> to vector<8x320xf32>
    %228 = vector.shape_cast %225 : vector<8x320xf32> to vector<1x1x8x320xf32>
    tpu.vector_store %arg13[%c0_200, %c6_201, %c0_202, %c0_203], %228 {strides = array<i32>} : memref<1x8x8x320xf32, #tpu.memory_space<vmem>>, vector<1x1x8x320xf32>,
    %229 = vector.extract_strided_slice %165 {offsets = [70, 0], sizes = [8, 320], strides = [1, 1]} : vector<100x320xf32> to vector<8x320xf32>
    %c0_204 = arith.constant 0 : index
    %c7_205 = arith.constant 7 : index
    %c0_206 = arith.constant 0 : index
    %c0_207 = arith.constant 0 : index
    %230 = vector.load %arg1[%c0_204, %c7_205, %c0_206, %c0_207] : memref<1x8x8x320xf32, #tpu.memory_space<vmem>>, vector<1x1x8x320xf32>
    %231 = vector.shape_cast %230 : vector<1x1x8x320xf32> to vector<8x320xf32>
    %232 = arith.addf %229, %231 : vector<8x320xf32>
    %cst_208 = arith.constant 0.000000e+00 : f32
    %233 = vector.broadcast %cst_208 : f32 to vector<8x320xf32>
    %234 = arith.maximumf %232, %233 : vector<8x320xf32>
    %c0_209 = arith.constant 0 : index
    %c7_210 = arith.constant 7 : index
    %c0_211 = arith.constant 0 : index
    %c0_212 = arith.constant 0 : index
    %235 = vector.load %arg13[%c0_209, %c7_210, %c0_211, %c0_212] : memref<1x8x8x320xf32, #tpu.memory_space<vmem>>, vector<1x1x8x320xf32>
    %236 = vector.shape_cast %235 : vector<1x1x8x320xf32> to vector<8x320xf32>
    %237 = vector.shape_cast %234 : vector<8x320xf32> to vector<1x1x8x320xf32>
    tpu.vector_store %arg13[%c0_209, %c7_210, %c0_211, %c0_212], %237 {strides = array<i32>} : memref<1x8x8x320xf32, #tpu.memory_space<vmem>>, vector<1x1x8x320xf32>,
    return
  }
  func.func @transform_0(%arg0: i32) -> (i32, i32, i32, i32) {
    %c0_i32 = arith.constant 0 : i32
    %c0_i32_0 = arith.constant 0 : i32
    %c0_i32_1 = arith.constant 0 : i32
    %c0_i32_2 = arith.constant 0 : i32
    return %arg0, %c0_i32, %c0_i32_0, %c0_i32_1 : i32, i32, i32, i32
  }
  func.func @transform_1(%arg0: i32) -> (i32, i32) {
    %c0_i32 = arith.constant 0 : i32
    %c0_i32_0 = arith.constant 0 : i32
    %c0_i32_1 = arith.constant 0 : i32
    return %c0_i32, %c0_i32_0 : i32, i32
  }
  func.func @transform_2(%arg0: i32) -> (i32, i32) {
    %c0_i32 = arith.constant 0 : i32
    %c0_i32_0 = arith.constant 0 : i32
    %c0_i32_1 = arith.constant 0 : i32
    return %c0_i32, %c0_i32_0 : i32, i32
  }
  func.func @transform_3(%arg0: i32) -> (i32, i32) {
    %c0_i32 = arith.constant 0 : i32
    %c0_i32_0 = arith.constant 0 : i32
    %c0_i32_1 = arith.constant 0 : i32
    return %c0_i32, %c0_i32_0 : i32, i32
  }
  func.func @transform_4(%arg0: i32) -> (i32, i32, i32) {
    %c0_i32 = arith.constant 0 : i32
    %c0_i32_0 = arith.constant 0 : i32
    %c0_i32_1 = arith.constant 0 : i32
    %c0_i32_2 = arith.constant 0 : i32
    return %c0_i32, %c0_i32_0, %c0_i32_1 : i32, i32, i32
  }
  func.func @transform_5(%arg0: i32) -> (i32, i32) {
    %c0_i32 = arith.constant 0 : i32
    %c0_i32_0 = arith.constant 0 : i32
    %c0_i32_1 = arith.constant 0 : i32
    return %c0_i32, %c0_i32_0 : i32, i32
  }
  func.func @transform_6(%arg0: i32) -> (i32, i32, i32) {
    %c0_i32 = arith.constant 0 : i32
    %c0_i32_0 = arith.constant 0 : i32
    %c0_i32_1 = arith.constant 0 : i32
    %c0_i32_2 = arith.constant 0 : i32
    return %c0_i32, %c0_i32_0, %c0_i32_1 : i32, i32, i32
  }
  func.func @transform_7(%arg0: i32) -> (i32, i32) {
    %c0_i32 = arith.constant 0 : i32
    %c0_i32_0 = arith.constant 0 : i32
    %c0_i32_1 = arith.constant 0 : i32
    return %c0_i32, %c0_i32_0 : i32, i32
  }
  func.func @transform_8(%arg0: i32) -> (i32, i32) {
    %c0_i32 = arith.constant 0 : i32
    %c0_i32_0 = arith.constant 0 : i32
    %c0_i32_1 = arith.constant 0 : i32
    return %c0_i32, %c0_i32_0 : i32, i32
  }
  func.func @transform_9(%arg0: i32) -> (i32, i32) {
    %c0_i32 = arith.constant 0 : i32
    %c0_i32_0 = arith.constant 0 : i32
    %c0_i32_1 = arith.constant 0 : i32
    return %c0_i32, %c0_i32_0 : i32, i32
  }
  func.func @transform_10(%arg0: i32) -> (i32, i32) {
    %c0_i32 = arith.constant 0 : i32
    %c0_i32_0 = arith.constant 0 : i32
    %c0_i32_1 = arith.constant 0 : i32
    return %c0_i32, %c0_i32_0 : i32, i32
  }
  func.func @transform_11(%arg0: i32) -> (i32, i32) {
    %c0_i32 = arith.constant 0 : i32
    %c0_i32_0 = arith.constant 0 : i32
    %c0_i32_1 = arith.constant 0 : i32
    return %c0_i32, %c0_i32_0 : i32, i32
  }
  func.func @transform_12(%arg0: i32) -> (i32, i32, i32, i32) {
    %c0_i32 = arith.constant 0 : i32
    %c0_i32_0 = arith.constant 0 : i32
    %c0_i32_1 = arith.constant 0 : i32
    %c0_i32_2 = arith.constant 0 : i32
    return %arg0, %c0_i32, %c0_i32_0, %c0_i32_1 : i32, i32, i32, i32
  }
}

</mosaic_0001>

<bundles_post_ra>
// kernel: tpu_custom_call.1
= control target key start
LH: loop header
LB: loop body
LE: loop exit
PB: predicated region body
PF: predicated region fallthrough
CT: control target
= control target key end

     0   :  { %s6977_s0 = inlined_call_operand.vmem [shape: f32[2,8,8,320], index: 0, kind: input, shape index: {}]   ;;  %s6978_s1 = inlined_call_operand.vmem [shape: f32[100,1], index: 1, kind: input, shape index: {}]   ;;  %s6979_s2 = inlined_call_operand.vmem [shape: bf16[320,96], index: 2, kind: input, shape index: {}]   ;;  %s6980_s3 = inlined_call_operand.vmem [shape: f32[1,96], index: 3, kind: input, shape index: {}]   ;;  %s6981_s4 = inlined_call_operand.hbm [shape: bf16[9,64,80], index: 4, kind: input, shape index: {}]   ;;  %s6982_s5 = inlined_call_operand.vmem [shape: f32[1,80], index: 5, kind: input, shape index: {}]   ;;  %s6983_s6 = inlined_call_operand.hbm [shape: bf16[9,48,64], index: 6, kind: input, shape index: {}]   ;;  %s6984_s7 = inlined_call_operand.vmem [shape: f32[1,64], index: 7, kind: input, shape index: {}]   ;;  %s6985_s8 = inlined_call_operand.hbm [shape: bf16[96,320], index: 8, kind: input, shape index: {}]   ;;  %s6986_s9 = inlined_call_operand.hbm [shape: bf16[80,320], index: 9, kind: input, shape index: {}]   ;;  %s6987_s10 = inlined_call_operand.hbm [shape: bf16[64,320], index: 10, kind: input, shape index: {}]   ;;  %s6988_s11 = inlined_call_operand.vmem [shape: f32[1,320], index: 11, kind: input, shape index: {}]   ;;  %s6989_s12 = inlined_call_operand.hbm [shape: f32[2,8,8,320], index: 12, kind: output, shape index: {}]  }
   0x1   :  { %6998 = sst [smem:[#allocation31_spill]] %s6981_s4 }
   0x2   :  { %6999 = sst [smem:[#allocation32_spill]] %s6983_s6 }
   0x3   :  { %7000 = sst [smem:[#allocation33_spill]] %s6986_s9 }
   0x4   :  { %17 = vsyncpa [#allocation5], 0 }
   0x5   :  { %18 = vsyncpa [#allocation8], 0 }
   0x6   :  { %19 = vsyncpa [#allocation11], 0 }
   0x7   :  { %20 = vsyncpa [#allocation6], 0 }
   0x8   :  { %22 = vsyncpa [#allocation6 + $0x1], 0  ;;  %s5782_s21 = smov 0   ;;  %s5784_s22 = smov 0  }
   0x9   :  { %s5786_s23 = smov 0   ;;  %s5788_s24 = smov 0  }
   0xa LB: > { %7001 = sst [smem:[#allocation18_spill]] %s5690_s21  ;;  %s5803_s25 = sadd.s32 4294967295, %s5702_s24   ;;  %s5702_s24 = sphi %s5788_s24, %s7033_s24   ;;  %s5698_s23 = sphi %s5786_s23, %s7035_s23   ;;  %s5694_s22 = sphi %s5784_s22, %s7037_s22   ;;  %s5690_s21 = sphi %s5782_s21, %s7036_s21  }
   0xb   : > { %7002 = sst [smem:[#allocation19_spill]] %s5698_s23  ;;  %s4469_s26 = sadd.s32 4294967294, %s5702_s24  }
   0xc   : > { %7003 = sst [smem:[#allocation20_spill]] %s5702_s24  ;;  %s5807_s27 = sadd.s32 1, %s5702_s24  }
   0xd   : > { %7004 = sst [smem:[#allocation21_spill]] %s5807_s27  ;;  %s292_s28 = sadd.s32 1, %s5698_s23 }
   0xe   : > { %s289_s29 = ssub.s32 %s5702_s24, %s5807_s27  ;;  %p302_p0 = scmp.ne.s32.totalorder %s5698_s23, %s5694_s22 }
   0xf   : > { %p290_p1 = scmp.eq.s32.totalorder %s289_s29, 0  ;;  %p303_p2 = scmp.eq.s32.totalorder %s5803_s25, 1 }
  0x10   : > { %p308_p3 = scmp.ne.s32.totalorder %s5694_s22, %s5690_s21  ;;  %p309_p4 = scmp.eq.s32.totalorder %s4469_s26, 1 }
  0x11   : > { %s5818_s30 = scalar_select %p290_p1, %s5698_s23, %s292_s28  }
  0x12   : > { %p5820_p5 = por %p303_p2, %p302_p0  ;;  %p5824_p6 = por %p309_p4, %p308_p3 }
  0x13   : > { %7005 = sst [smem:[#allocation22_spill]] %s5818_s30  ;;  %p4470_p7 = scmp.ge.s32.totalorder %s5702_s24, 1 }
  0x14   : > { %s7006_s13 = scalar_select %p5820_p5, 1, 0 }
  0x15   : > { %s7008_s14 = scalar_select %p5824_p6, 1, 0 }
  0x16   : > { %7007 = sst [smem:[#allocation23_spill]] %s7006_s13  ;;  %p316_p8 = scmp.lt.s32.totalorder %s5702_s24, 3 }
  0x17   : > { %7009 = sst [smem:[#allocation24_spill]] %s7008_s14  ;;  %p5415_p9 = scmp.eq.s32.totalorder %s5803_s25, 0 }
  0x18   : > { %p5831_p10 = pnand %p4470_p7, %p316_p8  ;;  %s7011_s6 = sld [smem:[#allocation32_spill]] }
  0x19   : > { %s5704_s20 = smov [#allocation7]   ;;  %s7013_s9 = sld [smem:[#allocation33_spill]] }
  0x1a   : > { %p5395_p11 = pneg %p5831_p10  ;;  %s355_s26 = sshll.u32 %s5704_s20, 4  ;;  %s356_s26 = int_to_ptr.vmem [resolvable:$true] %s355_s26 }
  0x1b   : > { %s5705_s16 = smov 64   ;;  %s5706_s17 = smov 4  }
  0x1c   : > { %p5842_p12 = pnand %p5415_p9, %p5395_p11  ;;  %s7014_s4 = sld [smem:[#allocation31_spill]] }
  0x1d   : > { %s5708_s20 = smov 192   ;;  %s5709_s24 = smov 12  }
  0x1e   : > { %s353_s18 = sshll.u32 %s7011_s6, 4  ;;  %s5707_s6 = smov [#allocation10]   ;;  %s354_s18 = int_to_ptr.hbm [resolvable:$true] %s353_s18 }
  0x1f   : > { %s384_s30 = sshll.u32 %s7013_s9, 4  ;;  %s386_s23 = sshll.u32 %s5707_s6, 4  ;;  %s385_s30 = int_to_ptr.hbm [resolvable:$true] %s384_s30  ;;  %s387_s23 = int_to_ptr.vmem [resolvable:$true] %s386_s23 }
  0x20   : > { %5401 = dma.hbm_to_vmem [thread:$0]  (!%p5842_p12), %s354_s18, 3456, %s356_s26, [#allocation8], %s5705_s16, %s5705_s16, %s5706_s17  }
  0x21   : > { %5407 = dma.hbm_to_vmem [thread:$0]  (!%p5842_p12), %s385_s30, 1920, %s387_s23, [#allocation11], %s5708_s20, %s5708_s20, %s5709_s24  }
  0x22   : > { %s336_s21 = sshll.u32 %s7014_s4, 4  ;;  %s370_s9 = sshll.u32 %s6985_s8, 4  ;;  %s337_s21 = int_to_ptr.hbm [resolvable:$true] %s336_s21  ;;  %s371_s9 = int_to_ptr.hbm [resolvable:$true] %s370_s9 }
  0x23   : > { %s5710_s18 = smov [#allocation4]   ;;  %s5711_s6 = smov [#allocation9]  }
  0x24   : > { %s338_s26 = sshll.u32 %s5710_s18, 4  ;;  %s372_s27 = sshll.u32 %s5711_s6, 4  ;;  %s339_s26 = int_to_ptr.vmem [resolvable:$true] %s338_s26  ;;  %s373_s27 = int_to_ptr.vmem [resolvable:$true] %s372_s27 }
  0x25   : > { %5398 = dma.hbm_to_vmem [thread:$0]  (!%p5842_p12), %s337_s21, 4608, %s339_s26, [#allocation5], %s5705_s16, %s5705_s16, %s5706_s17  }
  0x26   : > { %s398_s13 = sshll.u32 %s6987_s10, 4  ;;  %s5712_s23 = smov [#allocation12]   ;;  %s399_s13 = int_to_ptr.hbm [resolvable:$true] %s398_s13 }
  0x27   : > { %5404 = dma.hbm_to_vmem [thread:$0]  (!%p5842_p12), %s371_s9, 2304, %s373_s27, [#allocation8], %s5708_s20, %s5708_s20, %s5709_s24  }
  0x28   : > { %s400_s30 = sshll.u32 %s5712_s23, 4  ;;  %427 = sbr.rel (%p5831_p10) target bundleno = 1346 (0x542), region = 68  ;;  %s401_s30 = int_to_ptr.vmem [resolvable:$true] %s400_s30 }
  0x29   : > { %5410 = dma.hbm_to_vmem [thread:$0]  (!%p5842_p12), %s399_s13, 1536, %s401_s30, [#allocation11], %s5708_s20, %s5708_s20, %s5709_s24  }
  0x2d   : > { %5673 = dma.done.wait (%p5415_p9), [#allocation5], 4608  }
  0x2e   : > { %5675 = vsyncadd (%p5415_p9), [#allocation5], 4294962688 }
  0x2f   : > { %5677 = dma.done.wait (%p5415_p9), [#allocation8], 5760  }
  0x30   : > { %5679 = vsyncadd (%p5415_p9), [#allocation8], 4294961536 }
  0x31   : > { %5681 = dma.done.wait (%p5415_p9), [#allocation11], 3456  }
  0x32   : > { %5683 = vsyncadd (%p5415_p9), [#allocation11], 4294963840  ;;  %v5241_v0 = vld [vmem:[%s6979_s2 + $0x38] sm:$0xff]  ;;  %v5240_v1 = vld [vmem:[%s6979_s2 + $0x30] sm:$0xff]  ;;  %p490_p13 = scmp.lt.s32.totalorder %s5803_s25, 1  ;;  %vm696_vm0 = vcmask 523264  }
  0x33   : > { %709 = vmatpush.bf16.msra.mxu1 %v5241_v0  ;;  %v5239_v2 = vld [vmem:[%s6979_s2 + $0x28] sm:$0xff]  ;;  %v5238_v3 = vld [vmem:[%s6979_s2 + $0x20] sm:$0xff]  ;;  %v5237_v4 = vld [vmem:[%s6979_s2 + $0x18] sm:$0xff]  ;;  %vm804_vm1 = vcmask 785408   ;;  %vm821_vm2 = vcmask 392192   ;;  %vm823_vm3 = vcmask 387072  }
  0x34   : > { %s491_s28 = scalar_select %p490_p13, %s5803_s25, 1  ;;  %v5236_v5 = vld [vmem:[%s6979_s2 + $0x10] sm:$0xff]  ;;  %v5235_v6 = vld [vmem:[%s6979_s2 + $0x8] sm:$0xff]  ;;  %v5234_v7 = vld [vmem:[%s6979_s2] sm:$0xff]  ;;  %vm2101_vm4 = vcmask 385024   ;;  %vm3355_vm5 = vcmask 654336  }
  0x35   : > { %v5249_v10 = vld [vmem:[%s6979_s2 + $0x78] sm:$0xff]  ;;  %v5248_v12 = vld [vmem:[%s6979_s2 + $0x70] sm:$0xff]  ;;  %v5247_v14 = vld [vmem:[%s6979_s2 + $0x68] sm:$0xff]  ;;  %s487_s19 = sand.u32 1, %s5694_s22   ;;  %vm4073_vm6 = vcmask 1045504   ;;  %vm4121_vm7 = vcmask 1043456  }
  0x36   : > { %s5371_s26 = smul.u32 192, %s491_s28  ;;  %v5253_v13 = vld [vmem:[%s6979_s2 + $0x98] sm:$0xff]  ;;  %v5252_v15 = vld [vmem:[%s6979_s2 + $0x90] sm:$0xff]  ;;  %v5246_v16 = vld [vmem:[%s6979_s2 + $0x60] sm:$0xff]  ;;  %vm4169_vm8 = vcmask 1041408   ;;  %s4342_s6 = scalar_lea.sflag [#allocation6], %s487_s19 }
  0x37   : > { %710 = vmatpush.bf16.msra.mxu1 %v5240_v1  ;;  %771 = vmatpush.bf16.msra.mxu0 %v5253_v13  ;;  %v5245_v19 = vld [vmem:[%s6979_s2 + $0x58] sm:$0xff]  ;;  %v5244_v21 = vld [vmem:[%s6979_s2 + $0x50] sm:$0xff]  ;;  %v5251_v22 = vld [vmem:[%s6979_s2 + $0x88] sm:$0xff]  ;;  %s5370_s16 = smul.u32 192, %s487_s19  ;;  %s5648_s9 = scalar_lea.hbm %s6989_s12, 384 }
  0x38   : > { %s5908_s30 = scalar_lea.vmem %s6977_s0, %s5371_s26  ;;  %5362 = vmatpush.bf16.msra.mxu2 %v5253_v13  ;;  %5363 = vmatpush.bf16.msra.mxu3 %v5253_v13  ;;  %v5243_v23 = vld [vmem:[%s6979_s2 + $0x48] sm:$0xff]  ;;  %v5250_v24 = vld [vmem:[%s6979_s2 + $0x80] sm:$0xff]  ;;  %v5261_v61 = vld [vmem:[#allocation4 + $0x38] sm:$0xff] }
  0x39   : > { %v496_v8 = vld [vmem:[%s5908_s30] sm:$0xff]  ;;  %v499_v9 = vld [vmem:[%s5908_s30 + $0x18] sm:$0xff]  ;;  %v502_v17 = vld [vmem:[%s5908_s30 + $0x30] sm:$0xff]  ;;  %s6751_s17 = scalar_lea.vmem [#allocation13], %s5370_s16 }
  0x3a   : > { %v520_v11 = vpack.c.bf16 %v499_v9, %v496_v8  ;;  %v505_v18 = vld [vmem:[%s5908_s30 + $0x48] sm:$0xff]  ;;  %v498_v25 = vld [vmem:[%s5908_s30 + $0x10] sm:$0xff]  ;;  %v5242_v28 = vld [vmem:[%s6979_s2 + $0x40] sm:$0xff] }
  0x3b   : > { %711 = vmatpush.bf16.msra.mxu1 %v5239_v2  ;;  %772 = vmatpush.bf16.msra.mxu0 %v5252_v15  ;;  %v523_v20 = vpack.c.bf16 %v505_v18, %v502_v17  ;;  %v501_v26 = vld [vmem:[%s5908_s30 + $0x28] sm:$0xff]  ;;  %v508_v29 = vld [vmem:[%s5908_s30 + $0x60] sm:$0xff]  ;;  %v511_v30 = vld [vmem:[%s5908_s30 + $0x78] sm:$0xff] }
  0x3c   : > { %5364 = vmatpush.bf16.msra.mxu2 %v5252_v15  ;;  %5365 = vmatpush.bf16.msra.mxu3 %v5252_v15  ;;  %v522_v27 = vpack.c.bf16 %v501_v26, %v498_v25  ;;  %v526_v31 = vpack.c.bf16 %v511_v30, %v508_v29  ;;  %v504_v32 = vld [vmem:[%s5908_s30 + $0x40] sm:$0xff]  ;;  %v507_v33 = vld [vmem:[%s5908_s30 + $0x58] sm:$0xff]  ;;  %v514_v35 = vld [vmem:[%s5908_s30 + $0x90] sm:$0xff] }
  0x3d   : > { %v525_v34 = vpack.c.bf16 %v507_v33, %v504_v32  ;;  %v517_v36 = vld [vmem:[%s5908_s30 + $0xa8] sm:$0xff]  ;;  %v510_v38 = vld [vmem:[%s5908_s30 + $0x70] sm:$0xff]  ;;  %v500_v42 = vld [vmem:[%s5908_s30 + $0x20] sm:$0xff] }
  0x3e   : > { %v529_v37 = vpack.c.bf16 %v517_v36, %v514_v35  ;;  %v513_v39 = vld [vmem:[%s5908_s30 + $0x88] sm:$0xff]  ;;  %v516_v44 = vld [vmem:[%s5908_s30 + $0xa0] sm:$0xff]  ;;  %v519_v45 = vld [vmem:[%s5908_s30 + $0xb8] sm:$0xff] }
  0x3f   : > { %712 = vmatpush.bf16.msra.mxu1 %v5238_v3  ;;  %773 = vmatpush.bf16.msra.mxu0 %v5251_v22  ;;  %v528_v40 = vpack.c.bf16 %v513_v39, %v510_v38  ;;  %v497_v41 = vld [vmem:[%s5908_s30 + $0x8] sm:$0xff]  ;;  %v531_v46 = vpack.c.bf16 %v519_v45, %v516_v44  ;;  %v503_v47 = vld [vmem:[%s5908_s30 + $0x38] sm:$0xff]  ;;  %v506_v48 = vld [vmem:[%s5908_s30 + $0x50] sm:$0xff]  ;;  %v5713_v3 = vmov 0.0  }
  0x40   : > { %5366 = vmatpush.bf16.msra.mxu2 %v5251_v22  ;;  %5367 = vmatpush.bf16.msra.mxu3 %v5251_v22  ;;  %v521_v43 = vpack.c.bf16 %v500_v42, %v497_v41  ;;  %v524_v49 = vpack.c.bf16 %v506_v48, %v503_v47  ;;  %v509_v50 = vld [vmem:[%s5908_s30 + $0x68] sm:$0xff]  ;;  %v512_v51 = vld [vmem:[%s5908_s30 + $0x80] sm:$0xff]  ;;  %v515_v53 = vld [vmem:[%s5908_s30 + $0x98] sm:$0xff]  ;;  %806 = vst.msk [vmem:[#allocation2 + $0x8] sm:$0xff] %vm804_vm1, %v5713_v3 }
  0x41   : > { %v527_v52 = vpack.c.bf16 %v512_v51, %v509_v50  ;;  %v518_v54 = vld [vmem:[%s5908_s30 + $0xb0] sm:$0xff]  ;;  %v5257_v62 = vld [vmem:[#allocation4 + $0x18] sm:$0xff]  ;;  %807 = vst.msk [vmem:[#allocation2 + $0x10] sm:$0xff] %vm804_vm1, %v5713_v3  ;;  %v5258_v9 = vld [vmem:[#allocation4 + $0x20] sm:$0xff] }
  0x42   : > { %v530_v55 = vpack.c.bf16 %v518_v54, %v515_v53  ;;  %v5265_v63 = vld [vmem:[#allocation4 + $0x58] sm:$0xff]  ;;  %v5260_v0 = vld [vmem:[#allocation4 + $0x30] sm:$0xff]  ;;  %805 = vst.msk [vmem:[#allocation2] sm:$0xff] %vm804_vm1, %v5713_v3  ;;  %v5266_v15 = vld [vmem:[#allocation4 + $0x60] sm:$0xff] }
  0x43   : > { %713 = vmatpush.bf16.msra.mxu1 %v5237_v4  ;;  %774 = vmatpush.bf16.msra.mxu0 %v5250_v24  ;;  %v5256_v1 = vld [vmem:[#allocation4 + $0x10] sm:$0xff]  ;;  %808 = vst.msk [vmem:[#allocation2 + $0x18] sm:$0xff] %vm804_vm1, %v5713_v3  ;;  %v5269_v8 = vld [vmem:[#allocation4 + $0x78] sm:$0xff]  ;;  %v6026_v18 = vld [vmem:[%s6980_s3] ss:$0 sm:$0xff] }
  0x44   : > { %5368 = vmatpush.bf16.msra.mxu2 %v5250_v24  ;;  %5369 = vmatpush.bf16.msra.mxu3 %v5250_v24  ;;  %v5264_v2 = vld [vmem:[#allocation4 + $0x50] sm:$0xff]  ;;  %809 = vst.msk [vmem:[#allocation2 + $0x20] sm:$0xff] %vm804_vm1, %v5713_v3 }
  0x45   : > { %810 = vst.msk [vmem:[#allocation2 + $0x28] sm:$0xff] %vm804_vm1, %v5713_v3  ;;  %v5272_v42 = vld [vmem:[#allocation4 + $0x90] sm:$0xff] }
  0x46   : > { %4564 = vmatmul.msk.bf16.vlgmr.msra.gmra.mxu0 %vm696_vm0, %v522_v27  ;;  %811 = vst.msk [vmem:[#allocation2 + $0x30] sm:$0xff] %vm804_vm1, %v5713_v3 }
  0x47   : > { %714 = vmatpush.bf16.msra.mxu1 %v5236_v5  ;;  %4565 = vmatmul.msk.bf16.vlgmr.msra.gmra.mxu2 %vm696_vm0, %v525_v34  ;;  %v5259_v5 = vld [vmem:[#allocation4 + $0x28] sm:$0xff]  ;;  %812 = vst.msk [vmem:[#allocation2 + $0x38] sm:$0xff] %vm804_vm1, %v5713_v3 }
  0x48   : > { %4567 = vmatmul.msk.bf16.vlgmr.msra.gmra.mxu3 %vm696_vm0, %v531_v46  ;;  %1027 = vmatpush.bf16.msrb.mxu2 %v5257_v62  ;;  %813 = vst.msk [vmem:[#allocation2 + $0x40] sm:$0xff] %vm804_vm1, %v5713_v3 }
  0x49   : > { %939 = vmatpush.bf16.msrb.mxu3 %v5261_v61  ;;  %1144 = vmatpush.bf16.msrb.mxu0 %v5265_v63  ;;  %814 = vst.msk [vmem:[#allocation2 + $0x48] sm:$0xff] %vm804_vm1, %v5713_v3  ;;  %v833_v32 = vld [vmem:[#allocation2] sm:$0xff] }
  0x4a   : > { %815 = vst.msk [vmem:[#allocation2 + $0x50] sm:$0xff] %vm804_vm1, %v5713_v3  ;;  %v1066_v33 = vld [vmem:[#allocation2 + $0x2] sm:$0xff] }
  0x4b   : > { %715 = vmatpush.bf16.msra.mxu1 %v5235_v6  ;;  %v5255_v6 = vld [vmem:[#allocation4 + $0x8] sm:$0xff]  ;;  %816 = vst.msk [vmem:[#allocation2 + $0x58] sm:$0xff] %vm804_vm1, %v5713_v3 }
  0x4c   : > { %1028 = vmatpush.bf16.msrb.mxu2 %v5256_v1  ;;  %817 = vst.msk [vmem:[#allocation2 + $0x60] sm:$0xff] %vm804_vm1, %v5713_v3 }
  0x4d   : > { %940 = vmatpush.bf16.msrb.mxu3 %v5260_v0  ;;  %1145 = vmatpush.bf16.msrb.mxu0 %v5264_v2  ;;  %818 = vst.msk [vmem:[#allocation2 + $0x68] sm:$0xff] %vm804_vm1, %v5713_v3 }
  0x4e   : > { %819 = vst.msk [vmem:[#allocation2 + $0x70] sm:$0xff] %vm804_vm1, %v5713_v3 }
  0x4f   : > { %716 = vmatpush.bf16.msra.mxu1 %v5234_v7  ;;  %v5263_v7 = vld [vmem:[#allocation4 + $0x48] sm:$0xff]  ;;  %820 = vst.msk [vmem:[#allocation2 + $0x78] sm:$0xff] %vm804_vm1, %v5713_v3 }
  0x50   : > { %1029 = vmatpush.bf16.msrb.mxu2 %v5255_v6  ;;  %822 = vst.msk [vmem:[#allocation3] sm:$0xff] %vm821_vm2, %v5713_v3 }
  0x51   : > { %941 = vmatpush.bf16.msrb.mxu3 %v5259_v5  ;;  %1146 = vmatpush.bf16.msrb.mxu0 %v5263_v7  ;;  %824 = vst.msk [vmem:[#allocation3 + $0x8] sm:$0x7] %vm823_vm3, %v5713_v3 }
  0x52   : > { %717 = vmatmul.bf16.vlgmr.msra.gmra.mxu1 %v520_v11  ;;  %v5262_v11 = vld [vmem:[#allocation4 + $0x40] sm:$0xff] }
  0x53   : > { %738 = vmatpush.bf16.msrb.mxu1 %v5249_v10  ;;  %v5254_v10 = vld [vmem:[#allocation4] sm:$0xff] }
  0x54   : > { %1030 = vmatpush.bf16.msrb.mxu2 %v5254_v10 }
  0x55   : > { %942 = vmatpush.bf16.msrb.mxu3 %v5258_v9  ;;  %1147 = vmatpush.bf16.msrb.mxu0 %v5262_v11 }
  0x57   : > { %739 = vmatpush.bf16.msrb.mxu1 %v5248_v12  ;;  %4566 = vmatmul.msk.bf16.gmra.mxu2 %vm696_vm0, %v528_v40  ;;  %v5268_v12 = vld [vmem:[#allocation4 + $0x70] sm:$0xff] }
  0x5b   : > { %740 = vmatpush.bf16.msrb.mxu1 %v5247_v14  ;;  %v5267_v14 = vld [vmem:[#allocation4 + $0x68] sm:$0xff] }
  0x5f   : > { %741 = vmatpush.bf16.msrb.mxu1 %v5246_v16  ;;  %v5273_v16 = vld [vmem:[#allocation4 + $0x98] sm:$0xff] }
  0x60   : > { %1404 = vmatpush.bf16.msra.mxu3 %v5273_v16 }
  0x62   : > { %722 = vmatmul.bf16.gmra.mxu1 %v523_v20 }
  0x63   : > { %742 = vmatpush.bf16.msrb.mxu1 %v5245_v19 }
  0x64   : > { %1405 = vmatpush.bf16.msra.mxu3 %v5272_v42 }
  0x67   : > { %743 = vmatpush.bf16.msrb.mxu1 %v5244_v21 }
  0x6b   : > { %744 = vmatpush.bf16.msrb.mxu1 %v5243_v23 }
  0x6f   : > { %745 = vmatpush.bf16.msrb.mxu1 %v5242_v28 }
  0x72   : > { %727 = vmatmul.bf16.gmra.mxu1 %v526_v31  ;;  %v861_v31 = vld [vmem:[#allocation2 + $0x1] sm:$0xff] }
  0x73   : > { %1274 = vmatpush.bf16.msra.mxu1 %v5269_v8 }
  0x77   : > { %1275 = vmatpush.bf16.msra.mxu1 %v5268_v12 }
  0x7b   : > { %1276 = vmatpush.bf16.msra.mxu1 %v5267_v14  ;;  %v5271_v14 = vld [vmem:[#allocation4 + $0x88] sm:$0xff] }
  0x7c   : > { %1406 = vmatpush.bf16.msra.mxu3 %v5271_v14 }
  0x7f   : > { %1277 = vmatpush.bf16.msra.mxu1 %v5266_v15 }
  0x82   : > { %732 = vmatmul.bf16.gmra.mxu1 %v529_v37 }
  0x92   : > { %746 = vmatmul.bf16.vlgmr.msrb.gmra.mxu1 %v521_v43 }
  0xa2   : > { %751 = vmatmul.bf16.gmra.mxu1 %v524_v49 }
  0xb2   : > { %756 = vmatmul.bf16.gmra.mxu1 %v527_v52 }
  0xc2   : > { %761 = vmatmul.bf16.gmra.mxu1 %v530_v55 }
  0xc3   : > { %v776_v20 = vpop.f32.mrf.mxu0 }
  0xca   : > { %v781_v30 = vpop.f32.mrf.mxu2 }
  0xcb   : > { %v778_v28 = vpop.f32.mrf.mxu0 }
  0xcf   : > { %v718_v56 = vpop.f32.mrf.mxu1 }
  0xd0   : > { %v719_v19 = vadd.f32 %v6026_v18, %v718_v56 }
  0xd2   : > { %v783_v47 = vpop.f32.mrf.mxu2 }
  0xd7   : > { %v5977_v57 = vpop.f32.mrf.mxu1 }
  0xd8   : > { %v721_v25 = vadd.f32 %v6026_v18, %v5977_v57 }
  0xda   : > { %v786_v62 = vpop.f32.mrf.mxu2 }
  0xdf   : > { %v5979_v58 = vpop.f32.mrf.mxu1 }
  0xe0   : > { %v724_v38 = vadd.f32 %v6026_v18, %v5979_v58 }
  0xe2   : > { %v788_v11 = vpop.f32.mrf.mxu2 }
  0xe7   : > { %v5981_v59 = vpop.f32.mrf.mxu1 }
  0xe8   : > { %v726_v49 = vadd.f32 %v6026_v18, %v5981_v59 }
  0xef   : > { %v5983_v60 = vpop.f32.mrf.mxu1 }
  0xf0   : > { %v729_v63 = vadd.f32 %v6026_v18, %v5983_v60 }
  0xf7   : > { %v5989_v4 = vpop.f32.mrf.mxu1 }
  0xf8   : > { %v731_v9 = vadd.f32 %v6026_v18, %v5989_v4 }
  0xff   : > { %v6007_v13 = vpop.f32.mrf.mxu1 }
 0x100   : > { %v734_v4 = vadd.f32 %v6026_v18, %v6007_v13 }
 0x107   : > { %v6021_v17 = vpop.f32.mrf.mxu1 }
 0x10f   : > { %v747_v21 = vpop.f32.mrf.mxu1 }
 0x110   : > { %v748_v22 = vadd.f32 %v747_v21, %v719_v19 }
 0x112   : > { %v777_v23 = vadd.f32 %v776_v20, %v748_v22 }
 0x114   : > { %v796_v24 = vmax.f32 %v777_v23, 0.0 }
 0x116   : > { %825 = vst.msk [vmem:[#allocation2 + $0xb] sm:$0xff] %vm804_vm1, %v796_v24  ;;  %v791_v24 = vpop.f32.mrf.mxu3 }
 0x117   : > { %v749_v26 = vpop.f32.mrf.mxu1 }
 0x118   : > { %v750_v27 = vadd.f32 %v749_v26, %v721_v25 }
 0x11a   : > { %v779_v29 = vadd.f32 %v778_v28, %v750_v27 }
 0x11c   : > { %v797_v34 = vmax.f32 %v779_v29, 0.0 }
 0x11d   : > { %v862_v35 = vld [vmem:[#allocation2 + $0x9] sm:$0xff] }
 0x11e   : > { %v834_v36 = vld [vmem:[#allocation2 + $0x8] sm:$0xff]  ;;  %826 = vst.msk [vmem:[#allocation2 + $0x15] sm:$0xff] %vm804_vm1, %v797_v34  ;;  %v874_v39 = vpack.c.bf16 %v862_v35, %v861_v31  ;;  %v793_v35 = vpop.f32.mrf.mxu3 }
 0x11f   : > { %v1067_v37 = vld [vmem:[#allocation2 + $0xa] sm:$0xff]  ;;  %v846_v40 = vpack.c.bf16 %v834_v36, %v833_v32  ;;  %v752_v43 = vpop.f32.mrf.mxu1 }
 0x120   : > { %v1079_v41 = vpack.c.bf16 %v1067_v37, %v1066_v33  ;;  %v753_v44 = vadd.f32 %v752_v43, %v724_v38  ;;  %4584 = vmatmul.msk.bf16.vlgmr.msrb.gmra.mxu3 %vm696_vm0, %v874_v39  ;;  %v736_v33 = vadd.f32 %v6026_v18, %v6021_v17  ;;  %v5270_v18 = vld [vmem:[#allocation4 + $0x80] sm:$0xff] }
 0x121   : > { %4607 = vmatmul.msk.bf16.vlgmr.msrb.gmra.mxu2 %vm696_vm0, %v846_v40  ;;  %1407 = vmatpush.bf16.msra.mxu3 %v5270_v18 }
 0x122   : > { %4630 = vmatmul.msk.bf16.vlgmr.msrb.gmra.mxu0 %vm696_vm0, %v1079_v41  ;;  %v782_v45 = vadd.f32 %v781_v30, %v753_v44 }
 0x124   : > { %v798_v46 = vmax.f32 %v782_v45, 0.0 }
 0x125   : > { %v1197_v48 = vld [vmem:[#allocation2 + $0x12] sm:$0xff] }
 0x126   : > { %827 = vst.msk [vmem:[#allocation2 + $0x1f] sm:$0xff] %vm804_vm1, %v798_v46  ;;  %v1209_v50 = vpack.c.bf16 %v1197_v48, %v1067_v37  ;;  %v863_v55 = vld [vmem:[#allocation2 + $0x11] sm:$0xff] }
 0x127   : > { %v754_v51 = vpop.f32.mrf.mxu1  ;;  %v835_v56 = vld [vmem:[#allocation2 + $0x10] sm:$0xff] }
 0x128   : > { %v755_v52 = vadd.f32 %v754_v51, %v726_v49  ;;  %4653 = vmatmul.msk.bf16.vlgmr.msra.gmra.mxu1 %vm696_vm0, %v1209_v50 }
 0x12a   : > { %v784_v53 = vadd.f32 %v783_v47, %v755_v52 }
 0x12c   : > { %v799_v54 = vmax.f32 %v784_v53, 0.0 }
 0x12d   : > { %v864_v57 = vld [vmem:[#allocation2 + $0x19] sm:$0xff]  ;;  %v865_v22 = vld [vmem:[#allocation2 + $0x21] sm:$0xff] }
 0x12e   : > { %v836_v58 = vld [vmem:[#allocation2 + $0x18] sm:$0xff]  ;;  %828 = vst.msk [vmem:[#allocation2 + $0x29] sm:$0xff] %vm804_vm1, %v799_v54  ;;  %v875_v59 = vpack.c.bf16 %v864_v57, %v863_v55  ;;  %v837_v23 = vld [vmem:[#allocation2 + $0x20] sm:$0xff] }
 0x12f   : > { %v1069_v61 = vld [vmem:[#allocation2 + $0x1a] sm:$0xff]  ;;  %v847_v0 = vpack.c.bf16 %v836_v58, %v835_v56  ;;  %v757_v2 = vpop.f32.mrf.mxu1  ;;  %v5276_v58 = vld [vmem:[#allocation4 + $0xb0] sm:$0xff] }
 0x130   : > { %v1080_v1 = vpack.c.bf16 %v1069_v61, %v1197_v48  ;;  %v758_v5 = vadd.f32 %v757_v2, %v729_v63  ;;  %4585 = vmatmul.msk.bf16.gmra.mxu3 %vm696_vm0, %v875_v59  ;;  %v5277_v56 = vld [vmem:[#allocation4 + $0xb8] sm:$0xff]  ;;  %v5275_v59 = vld [vmem:[#allocation4 + $0xa8] sm:$0xff] }
 0x131   : > { %4608 = vmatmul.msk.bf16.gmra.mxu2 %vm696_vm0, %v847_v0  ;;  %v5281_v57 = vld [vmem:[#allocation4 + $0xd8] sm:$0xff]  ;;  %v5279_v0 = vld [vmem:[#allocation4 + $0xc8] sm:$0xff] }
 0x132   : > { %4631 = vmatmul.msk.bf16.gmra.mxu0 %vm696_vm0, %v1080_v1  ;;  %v787_v6 = vadd.f32 %v786_v62, %v758_v5  ;;  %1534 = vmatpush.bf16.msra.mxu2 %v5277_v56  ;;  %v5285_v1 = vld [vmem:[#allocation4 + $0xf8] sm:$0xff]  ;;  %v5287_v56 = vld [vmem:[#allocation4 + $0x108] sm:$0xff] }
 0x133   : > { %1664 = vmatpush.bf16.msra.mxu0 %v5281_v57  ;;  %v872_v2 = vld [vmem:[#allocation2 + $0x59] sm:$0xff]  ;;  %1794 = vmatpush.bf16.msrb.mxu1 %v5285_v1 }
 0x134   : > { %v800_v7 = vmax.f32 %v787_v6, 0.0  ;;  %v5274_v6 = vld [vmem:[#allocation4 + $0xa0] sm:$0xff] }
 0x135   : > { %v1199_v8 = vld [vmem:[#allocation2 + $0x22] sm:$0xff]  ;;  %v1071_v21 = vld [vmem:[#allocation2 + $0x2a] sm:$0xff] }
 0x136   : > { %829 = vst.msk [vmem:[#allocation2 + $0x33] sm:$0xff] %vm804_vm1, %v800_v7  ;;  %v1210_v60 = vpack.c.bf16 %v1199_v8, %v1069_v61  ;;  %v866_v16 = vld [vmem:[#allocation2 + $0x29] sm:$0xff]  ;;  %v1081_v28 = vpack.c.bf16 %v1071_v21, %v1199_v8  ;;  %1535 = vmatpush.bf16.msra.mxu2 %v5276_v58  ;;  %v5278_v7 = vld [vmem:[#allocation4 + $0xc0] sm:$0xff] }
 0x137   : > { %v759_v10 = vpop.f32.mrf.mxu1  ;;  %v838_v19 = vld [vmem:[#allocation2 + $0x28] sm:$0xff]  ;;  %v876_v25 = vpack.c.bf16 %v866_v16, %v865_v22  ;;  %v5280_v61 = vld [vmem:[#allocation4 + $0xd0] sm:$0xff]  ;;  %v873_v22 = vld [vmem:[#allocation2 + $0x61] sm:$0xf] }
 0x138   : > { %v760_v12 = vadd.f32 %v759_v10, %v731_v9  ;;  %4654 = vmatmul.msk.bf16.gmra.mxu1 %vm696_vm0, %v1210_v60  ;;  %v848_v26 = vpack.c.bf16 %v838_v19, %v837_v23  ;;  %1665 = vmatpush.bf16.msra.mxu0 %v5280_v61  ;;  %v5284_v60 = vld [vmem:[#allocation4 + $0xf0] sm:$0xff]  ;;  %v1077_v10 = vld [vmem:[#allocation2 + $0x5a] sm:$0xff]  ;;  %v1207_v16 = vld [vmem:[#allocation2 + $0x62] sm:$0xff] }
 0x139   : > { %1795 = vmatpush.bf16.msrb.mxu1 %v5284_v60  ;;  %v5289_v19 = vld [vmem:[#allocation4 + $0x118] sm:$0xff]  ;;  %v845_v23 = vld [vmem:[#allocation2 + $0x60] sm:$0xf]  ;;  %v1330_v1 = vld [vmem:[#allocation2 + $0x2b] sm:$0xff] }
 0x13a   : > { %v789_v15 = vadd.f32 %v788_v11, %v760_v12  ;;  %1536 = vmatpush.bf16.msra.mxu2 %v5275_v59  ;;  %1924 = vmatpush.bf16.msrb.mxu3 %v5289_v19 }
 0x13c   : > { %v801_v20 = vmax.f32 %v789_v15, 0.0  ;;  %1666 = vmatpush.bf16.msra.mxu0 %v5279_v0  ;;  %v5283_v15 = vld [vmem:[#allocation4 + $0xe8] sm:$0xff] }
 0x13d   : > { %v1201_v31 = vld [vmem:[#allocation2 + $0x32] sm:$0xff]  ;;  %1796 = vmatpush.bf16.msrb.mxu1 %v5283_v15 }
 0x13e   : > { %830 = vst.msk [vmem:[#allocation2 + $0x3d] sm:$0xff] %vm804_vm1, %v801_v20  ;;  %v1211_v13 = vpack.c.bf16 %v1201_v31, %v1071_v21  ;;  %v867_v42 = vld [vmem:[#allocation2 + $0x31] sm:$0xff]  ;;  %1537 = vmatpush.bf16.msra.mxu2 %v5274_v6  ;;  %v5282_v20 = vld [vmem:[#allocation4 + $0xe0] sm:$0xff]  ;;  %v1214_v21 = vpack.c.bf16 %v1207_v16, %v1077_v10 }
 0x13f   : > { %v762_v27 = vpop.f32.mrf.mxu1  ;;  %v839_v43 = vld [vmem:[#allocation2 + $0x30] sm:$0xff] }
 0x140   : > { %v763_v29 = vadd.f32 %v762_v27, %v734_v4  ;;  %4586 = vmatmul.msk.bf16.gmra.mxu3 %vm696_vm0, %v876_v25  ;;  %1667 = vmatpush.bf16.msra.mxu0 %v5278_v7  ;;  %v880_v4 = vpack.c.bf16 %v873_v22, %v873_v22  ;;  %v852_v25 = vpack.c.bf16 %v845_v23, %v845_v23  ;;  %v1208_v27 = vld [vmem:[#allocation2 + $0x6a] sm:$0xf]  ;;  %v1331_v61 = vld [vmem:[#allocation2 + $0x33] sm:$0xff] }
 0x141   : > { %4609 = vmatmul.msk.bf16.gmra.mxu2 %vm696_vm0, %v848_v26  ;;  %1797 = vmatpush.bf16.msrb.mxu1 %v5282_v20  ;;  %v1341_v6 = vpack.c.bf16 %v1331_v61, %v1330_v1  ;;  %v1720_v15 = vld [vmem:[#allocation2 + $0x35] sm:$0xff] }
 0x142   : > { %4632 = vmatmul.msk.bf16.gmra.mxu0 %vm696_vm0, %v1081_v28  ;;  %v792_v30 = vadd.f32 %v791_v24, %v763_v29  ;;  %v1078_v24 = vld [vmem:[#allocation2 + $0x62] sm:$0xf]  ;;  %v1215_v28 = vpack.c.bf16 %v1208_v27, %v1208_v27  ;;  %v1327_v29 = vld [vmem:[#allocation2 + $0x13] sm:$0xff] }
 0x143   : > { %v1085_v26 = vpack.c.bf16 %v1078_v24, %v1078_v24 }
 0x144   : > { %v802_v32 = vmax.f32 %v792_v30, 0.0  ;;  %v1457_v30 = vld [vmem:[#allocation2 + $0x14] sm:$0xff] }
 0x145   : > { %v868_v38 = vld [vmem:[#allocation2 + $0x39] sm:$0xff] }
 0x146   : > { %831 = vst.msk [vmem:[#allocation2 + $0x47] sm:$0xff] %vm804_vm1, %v802_v32  ;;  %v840_v39 = vld [vmem:[#allocation2 + $0x38] sm:$0xff]  ;;  %v877_v44 = vpack.c.bf16 %v868_v38, %v867_v42  ;;  %v5288_v32 = vld [vmem:[#allocation4 + $0x110] sm:$0xff] }
 0x147   : > { %v764_v34 = vpop.f32.mrf.mxu1  ;;  %v1073_v41 = vld [vmem:[#allocation2 + $0x3a] sm:$0xff]  ;;  %v849_v45 = vpack.c.bf16 %v840_v39, %v839_v43  ;;  %1925 = vmatpush.bf16.msrb.mxu3 %v5288_v32  ;;  %v1589_v42 = vld [vmem:[#allocation2 + $0x2c] sm:$0xff] }
 0x148   : > { %v765_v36 = vadd.f32 %v764_v34, %v736_v33  ;;  %4655 = vmatmul.msk.bf16.gmra.mxu1 %vm696_vm0, %v1211_v13  ;;  %v1082_v17 = vpack.c.bf16 %v1073_v41, %v1201_v31  ;;  %v1587_v31 = vld [vmem:[#allocation2 + $0x1c] sm:$0xff]  ;;  %v1326_v33 = vld [vmem:[#allocation2 + $0xb] sm:$0xff] }
 0x149   : > { %v1456_v13 = vld [vmem:[#allocation2 + $0xc] sm:$0xff]  ;;  %v1339_v34 = vpack.c.bf16 %v1327_v29, %v1326_v33  ;;  %v1716_v38 = vld [vmem:[#allocation2 + $0x15] sm:$0xff] }
 0x14a   : > { %v794_v37 = vadd.f32 %v793_v35, %v765_v36  ;;  %v1469_v35 = vpack.c.bf16 %v1457_v30, %v1456_v13  ;;  %v1599_v36 = vpack.c.bf16 %v1587_v31, %v1457_v30  ;;  %v1328_v43 = vld [vmem:[#allocation2 + $0x1b] sm:$0xff] }
 0x14b   : > { %1926 = vmatpush.bf16.msrb.mxu3 %v5287_v56  ;;  %v1591_v59 = vld [vmem:[#allocation2 + $0x3c] sm:$0xff] }
 0x14c   : > { %v803_v40 = vmax.f32 %v794_v37, 0.0  ;;  %v1717_v37 = vld [vmem:[#allocation2 + $0x1d] sm:$0xff] }
 0x14d   : > { %v1203_v46 = vld [vmem:[#allocation2 + $0x42] sm:$0xff]  ;;  %v1729_v39 = vpack.c.bf16 %v1717_v37, %v1716_v38 }
 0x14e   : > { %832 = vst.msk [vmem:[#allocation2 + $0x51] sm:$0xff] %vm804_vm1, %v803_v40  ;;  %v1212_v47 = vpack.c.bf16 %v1203_v46, %v1073_v41  ;;  %v869_v48 = vld [vmem:[#allocation2 + $0x41] sm:$0xff]  ;;  %v870_v49 = vld [vmem:[#allocation2 + $0x49] sm:$0xff] }
 0x14f   : > { %v841_v50 = vld [vmem:[#allocation2 + $0x40] sm:$0xff]  ;;  %v842_v51 = vld [vmem:[#allocation2 + $0x48] sm:$0xff]  ;;  %v878_v53 = vpack.c.bf16 %v870_v49, %v869_v48 }
 0x150   : > { %4587 = vmatmul.msk.bf16.gmra.mxu3 %vm696_vm0, %v877_v44  ;;  %v850_v54 = vpack.c.bf16 %v842_v51, %v841_v50  ;;  %v1329_v40 = vld [vmem:[#allocation2 + $0x23] sm:$0xff]  ;;  %v1719_v48 = vld [vmem:[#allocation2 + $0x2d] sm:$0xff] }
 0x151   : > { %4610 = vmatmul.msk.bf16.gmra.mxu2 %vm696_vm0, %v849_v45  ;;  %v1459_v41 = vld [vmem:[#allocation2 + $0x24] sm:$0xff]  ;;  %v1340_v45 = vpack.c.bf16 %v1329_v40, %v1328_v43 }
 0x152   : > { %4633 = vmatmul.msk.bf16.gmra.mxu0 %vm696_vm0, %v1082_v17  ;;  %v1470_v17 = vpack.c.bf16 %v1459_v41, %v1587_v31  ;;  %v1600_v18 = vpack.c.bf16 %v1589_v42, %v1459_v41  ;;  %v1718_v51 = vld [vmem:[#allocation2 + $0x25] sm:$0xff] }
 0x153   : > { %v1333_v24 = vld [vmem:[#allocation2 + $0x43] sm:$0xff] }
 0x154   : > { %v5286_v38 = vld [vmem:[#allocation4 + $0x100] sm:$0xff] }
 0x155   : > { %v1075_v52 = vld [vmem:[#allocation2 + $0x4a] sm:$0xff]  ;;  %v1205_v62 = vld [vmem:[#allocation2 + $0x52] sm:$0xff]  ;;  %1927 = vmatpush.bf16.msrb.mxu3 %v5286_v38 }
 0x156   : > { %v1083_v55 = vpack.c.bf16 %v1075_v52, %v1203_v46  ;;  %v1213_v63 = vpack.c.bf16 %v1205_v62, %v1075_v52  ;;  %v871_v5 = vld [vmem:[#allocation2 + $0x51] sm:$0xff]  ;;  %v1084_v14 = vpack.c.bf16 %v1077_v10, %v1205_v62  ;;  %v1722_v40 = vld [vmem:[#allocation2 + $0x45] sm:$0xff] }
 0x157   : > { %v843_v8 = vld [vmem:[#allocation2 + $0x50] sm:$0xff]  ;;  %v844_v9 = vld [vmem:[#allocation2 + $0x58] sm:$0xff]  ;;  %v879_v11 = vpack.c.bf16 %v872_v2, %v871_v5 }
 0x158   : > { %4656 = vmatmul.msk.bf16.gmra.mxu1 %vm696_vm0, %v1212_v47  ;;  %v851_v12 = vpack.c.bf16 %v844_v9, %v843_v8  ;;  %v1461_v62 = vld [vmem:[#allocation2 + $0x34] sm:$0xff] }
 0x159   : > { %v1471_v7 = vpack.c.bf16 %v1461_v62, %v1589_v42  ;;  %v1601_v8 = vpack.c.bf16 %v1591_v59, %v1461_v62 }
 0x160   : > { %4588 = vmatmul.msk.bf16.gmra.mxu3 %vm696_vm0, %v878_v53 }
 0x161   : > { %4611 = vmatmul.msk.bf16.gmra.mxu2 %vm696_vm0, %v850_v54  ;;  %v1730_v54 = vpack.c.bf16 %v1719_v48, %v1718_v51  ;;  %v1595_v48 = vld [vmem:[#allocation2 + $0x5c] sm:$0xff] }
 0x162   : > { %4634 = vmatmul.msk.bf16.gmra.mxu0 %vm696_vm0, %v1083_v55 }
 0x168   : > { %4657 = vmatmul.msk.bf16.gmra.mxu1 %vm696_vm0, %v1213_v63 }
 0x170   : > { %4589 = vmatmul.msk.bf16.gmra.mxu3 %vm696_vm0, %v879_v11  ;;  %v1721_v11 = vld [vmem:[#allocation2 + $0x3d] sm:$0xff] }
 0x171   : > { %4612 = vmatmul.msk.bf16.gmra.mxu2 %vm696_vm0, %v851_v12  ;;  %v1731_v20 = vpack.c.bf16 %v1721_v11, %v1720_v15 }
 0x172   : > { %4635 = vmatmul.msk.bf16.gmra.mxu0 %vm696_vm0, %v1084_v14 }
 0x178   : > { %4658 = vmatmul.msk.bf16.gmra.mxu1 %vm696_vm0, %v1214_v21 }
 0x180   : > { %4590 = vmatmul.msk.bf16.gmra.mxu3 %vm696_vm0, %v880_v4  ;;  %v1463_v4 = vld [vmem:[#allocation2 + $0x44] sm:$0xff] }
 0x181   : > { %4613 = vmatmul.msk.bf16.gmra.mxu2 %vm696_vm0, %v852_v25  ;;  %v1472_v32 = vpack.c.bf16 %v1463_v4, %v1591_v59 }
 0x182   : > { %4636 = vmatmul.msk.bf16.gmra.mxu0 %vm696_vm0, %v1085_v26  ;;  %v1593_v26 = vld [vmem:[#allocation2 + $0x4c] sm:$0xff] }
 0x183   : > { %v1602_v33 = vpack.c.bf16 %v1593_v26, %v1463_v4 }
 0x188   : > { %4659 = vmatmul.msk.bf16.gmra.mxu1 %vm696_vm0, %v1215_v28  ;;  %v1332_v28 = vld [vmem:[#allocation2 + $0x3b] sm:$0xff] }
 0x189   : > { %v1342_v31 = vpack.c.bf16 %v1333_v24, %v1332_v28 }
 0x190   : > { %4676 = vmatmul.msk.bf16.vlgmr.msra.gmra.mxu3 %vm696_vm0, %v1339_v34 }
 0x191   : > { %4699 = vmatmul.msk.bf16.vlgmr.msra.gmra.mxu2 %vm696_vm0, %v1469_v35 }
 0x192   : > { %4722 = vmatmul.msk.bf16.vlgmr.msra.gmra.mxu0 %vm696_vm0, %v1599_v36  ;;  %v1723_v36 = vld [vmem:[#allocation2 + $0x4d] sm:$0xff] }
 0x193   : > { %v1732_v43 = vpack.c.bf16 %v1723_v36, %v1722_v40 }
 0x198   : > { %4745 = vmatmul.msk.bf16.vlgmr.msrb.gmra.mxu1 %vm696_vm0, %v1729_v39 }
 0x19f   : > { %v1149_v44 = vpop.f32.mrf.mxu0 }
 0x1a0   : > { %4677 = vmatmul.msk.bf16.gmra.mxu3 %vm696_vm0, %v1340_v45 }
 0x1a1   : > { %4700 = vmatmul.msk.bf16.gmra.mxu2 %vm696_vm0, %v1470_v17 }
 0x1a2   : > { %4723 = vmatmul.msk.bf16.gmra.mxu0 %vm696_vm0, %v1600_v18  ;;  %v1334_v18 = vld [vmem:[#allocation2 + $0x4b] sm:$0xff] }
 0x1a3   : > { %v944_v46 = vpop.f32.mrf.mxu3 }
 0x1a4   : > { %v1032_v47 = vpop.f32.mrf.mxu2 }
 0x1a5   : > { %v1033_v49 = vadd.f32 %v1032_v47, %v944_v46  ;;  %v1279_v50 = vpop.f32.mrf.mxu1  ;;  %v1335_v46 = vld [vmem:[#allocation2 + $0x53] sm:$0xff] }
 0x1a6   : > { %v1465_v47 = vld [vmem:[#allocation2 + $0x54] sm:$0xff]  ;;  %v1343_v51 = vpack.c.bf16 %v1335_v46, %v1334_v18 }
 0x1a7   : > { %v1151_v52 = vpop.f32.mrf.mxu0  ;;  %v1183_v53 = vadd.f32 %v1149_v44, %v1033_v49  ;;  %v1728_v18 = vld [vmem:[#allocation2 + $0x75] sm:$0xf] }
 0x1a8   : > { %4746 = vmatmul.msk.bf16.gmra.mxu1 %vm696_vm0, %v1730_v54 }
 0x1a9   : > { %v6086_v55 = vadd.f32 %v1279_v50, %v1183_v53  ;;  %v1603_v53 = vpack.c.bf16 %v1595_v48, %v1465_v47 }
 0x1ab   : > { %v946_v57 = vpop.f32.mrf.mxu3 }
 0x1ac   : > { %v1034_v58 = vpop.f32.mrf.mxu2 }
 0x1ad   : > { %v1035_v63 = vadd.f32 %v1034_v58, %v946_v57  ;;  %v1281_v0 = vpop.f32.mrf.mxu1  ;;  %v1724_v57 = vld [vmem:[#allocation2 + $0x55] sm:$0xff]  ;;  %v1725_v58 = vld [vmem:[#allocation2 + $0x5d] sm:$0xff] }
 0x1af   : > { %v1154_v2 = vpop.f32.mrf.mxu0  ;;  %v1184_v5 = vadd.f32 %v1151_v52, %v1035_v63  ;;  %v1473_v52 = vpack.c.bf16 %v1465_v47, %v1593_v26 }
 0x1b0   : > { %4678 = vmatmul.msk.bf16.gmra.mxu3 %vm696_vm0, %v1341_v6  ;;  %v1467_v6 = vld [vmem:[#allocation2 + $0x64] sm:$0xff] }
 0x1b1   : > { %v6089_v9 = vadd.f32 %v1281_v0, %v1184_v5  ;;  %4701 = vmatmul.msk.bf16.gmra.mxu2 %vm696_vm0, %v1471_v7  ;;  %v1733_v0 = vpack.c.bf16 %v1725_v58, %v1724_v57  ;;  %v1337_v5 = vld [vmem:[#allocation2 + $0x63] sm:$0xff]  ;;  %v1597_v7 = vld [vmem:[#allocation2 + $0x6c] sm:$0xff]  ;;  %v1474_v11 = vpack.c.bf16 %v1467_v6, %v1595_v48 }
 0x1b2   : > { %4724 = vmatmul.msk.bf16.gmra.mxu0 %vm696_vm0, %v1601_v8  ;;  %v2015_v57 = vld [vmem:[%s6978_s1 + $0x53] sm:$0xff] }
 0x1b3   : > { %v949_v60 = vpop.f32.mrf.mxu3 }
 0x1b4   : > { %v1037_v10 = vpop.f32.mrf.mxu2 }
 0x1b5   : > { %v1038_v12 = vadd.f32 %v1037_v10, %v949_v60  ;;  %v1284_v14 = vpop.f32.mrf.mxu1 }
 0x1b7   : > { %v1156_v16 = vpop.f32.mrf.mxu0  ;;  %v1185_v19 = vadd.f32 %v1154_v2, %v1038_v12  ;;  %v1336_v2 = vld [vmem:[#allocation2 + $0x5b] sm:$0xff] }
 0x1b8   : > { %4747 = vmatmul.msk.bf16.gmra.mxu1 %vm696_vm0, %v1731_v20  ;;  %v1344_v10 = vpack.c.bf16 %v1337_v5, %v1336_v2  ;;  %v1727_v20 = vld [vmem:[#allocation2 + $0x6d] sm:$0xff] }
 0x1b9   : > { %v6094_v21 = vadd.f32 %v1284_v14, %v1185_v19  ;;  %v1604_v14 = vpack.c.bf16 %v1597_v7, %v1467_v6  ;;  %v1726_v19 = vld [vmem:[#allocation2 + $0x65] sm:$0xff] }
 0x1ba   : > { %v2013_v6 = vld [vmem:[%s6978_s1 + $0x43] sm:$0xff] }
 0x1bb   : > { %v951_v22 = vpop.f32.mrf.mxu3 }
 0x1bc   : > { %v1039_v23 = vpop.f32.mrf.mxu2 }
 0x1bd   : > { %v1040_v25 = vadd.f32 %v1039_v23, %v951_v22  ;;  %v1286_v27 = vpop.f32.mrf.mxu1  ;;  %v5714_v22 = vmov 0  }
 0x1be   : > { %5471 = vset.pattern.permute.xlu0 %v5714_v22  ;;  %5472 = vset.pattern.permute.xlu1 %v5714_v22 }
 0x1bf   : > { %v1159_v29 = vpop.f32.mrf.mxu0  ;;  %v1186_v30 = vadd.f32 %v1156_v16, %v1040_v25  ;;  %v2006_v16 = vld [vmem:[%s6978_s1 + $0xb] sm:$0xff]  ;;  %5473 = vset.pattern.permute.xlu2 %v5714_v22  ;;  %v1734_v25 = vpack.c.bf16 %v1727_v20, %v1726_v19  ;;  %v2016_v22 = vld [vmem:[%s6978_s1 + $0x5b] sm:$0xff] }
 0x1c0   : > { %4679 = vmatmul.msk.bf16.gmra.mxu3 %vm696_vm0, %v1342_v31  ;;  %2020 = vperm.xlu0 %5471, %v2006_v16   ;;  %v1338_v31 = vld [vmem:[#allocation2 + $0x6b] sm:$0xf] }
 0x1c1   : > { %v6097_v13 = vadd.f32 %v1286_v27, %v1186_v30  ;;  %4702 = vmatmul.msk.bf16.gmra.mxu2 %vm696_vm0, %v1472_v32  ;;  %v2007_v30 = vld [vmem:[%s6978_s1 + $0x13] sm:$0xff]  ;;  %v1468_v32 = vld [vmem:[#allocation2 + $0x6c] sm:$0xf]  ;;  %v1345_v36 = vpack.c.bf16 %v1338_v31, %v1338_v31 }
 0x1c2   : > { %4725 = vmatmul.msk.bf16.gmra.mxu0 %vm696_vm0, %v1602_v33  ;;  %v1598_v33 = vld [vmem:[#allocation2 + $0x74] sm:$0xf]  ;;  %v5295_v20 = vld [vmem:[#allocation7 + $0x28] sm:$0xff] }
 0x1c3   : > { %v954_v34 = vpop.f32.mrf.mxu3  ;;  %2200 = vmatpush.bf16.msrb.mxu2 %v5295_v20  ;;  %v5292_v31 = vld [vmem:[#allocation7 + $0x10] sm:$0xff] }
 0x1c4   : > { %v1042_v35 = vpop.f32.mrf.mxu2  ;;  %2282 = vmatpush.bf16.msrb.mxu0 %v5292_v31 }
 0x1c5   : > { %v1043_v37 = vadd.f32 %v1042_v35, %v954_v34  ;;  %v1289_v39 = vpop.f32.mrf.mxu1 }
 0x1c7   : > { %v6102_v41 = vpop.f32.mrf.mxu0  ;;  %v1187_v42 = vadd.f32 %v1159_v29, %v1043_v37  ;;  %v1475_v37 = vpack.c.bf16 %v1468_v32, %v1468_v32 }
 0x1c8   : > { %4748 = vmatmul.msk.bf16.gmra.mxu1 %vm696_vm0, %v1732_v43  ;;  %2025 = vperm.xlu0 %5471, %v2007_v30   ;;  %v2012_v43 = vld [vmem:[%s6978_s1 + $0x3b] sm:$0xff] }
 0x1c9   : > { %v6104_v44 = vadd.f32 %v1289_v39, %v1187_v42  ;;  %v1605_v39 = vpack.c.bf16 %v1598_v33, %v1598_v33  ;;  %v2008_v42 = vld [vmem:[%s6978_s1 + $0x1b] sm:$0xff] }
 0x1ca   : > { %2030 = vperm.xlu1 %5472, %v2008_v42  }
 0x1cb   : > { %v6107_v45 = vpop.f32.mrf.mxu3 }
 0x1cc   : > { %v6109_v17 = vpop.f32.mrf.mxu2 }
 0x1cd   : > { %v6111_v49 = vpop.f32.mrf.mxu1 }
 0x1cf   : > { %v1164_v50 = vpop.f32.mrf.mxu0 }
 0x1d0   : > { %4680 = vmatmul.msk.bf16.gmra.mxu3 %vm696_vm0, %v1343_v51  ;;  %2050 = vperm.xlu0 %5471, %v2012_v43  }
 0x1d1   : > { %4703 = vmatmul.msk.bf16.gmra.mxu2 %vm696_vm0, %v1473_v52 }
 0x1d2   : > { %4726 = vmatmul.msk.bf16.gmra.mxu0 %vm696_vm0, %v1603_v53 }
 0x1d3   : > { %v959_v54 = vpop.f32.mrf.mxu3 }
 0x1d4   : > { %v1047_v56 = vpop.f32.mrf.mxu2 }
 0x1d5   : > { %v1048_v61 = vadd.f32 %v1047_v56, %v959_v54  ;;  %v1294_v62 = vpop.f32.mrf.mxu1  ;;  %v2009_v56 = vld [vmem:[%s6978_s1 + $0x23] sm:$0xff] }
 0x1d6   : > { %2035 = vperm.xlu1 %5472, %v2009_v56  }
 0x1d7   : > { %v6116_v63 = vpop.f32.mrf.mxu0  ;;  %v1189_v59 = vadd.f32 %v1164_v50, %v1048_v61  ;;  %v1735_v50 = vpack.c.bf16 %v1728_v18, %v1728_v18  ;;  %v2010_v18 = vld [vmem:[%s6978_s1 + $0x2b] sm:$0xff] }
 0x1d8   : > { %4749 = vmatmul.msk.bf16.gmra.mxu1 %vm696_vm0, %v1733_v0  ;;  %2065 = vperm.xlu0 %5471, %v2015_v57   ;;  %v1846_v0 = vld [vmem:[#allocation2 + $0x16] sm:$0xff] }
 0x1d9   : > { %v6118_v1 = vadd.f32 %v1294_v62, %v1189_v59  ;;  %v1847_v62 = vld [vmem:[#allocation2 + $0x1e] sm:$0xff]  ;;  %2040 = vperm.xlu2 %5473, %v2010_v18   ;;  %v2011_v57 = vld [vmem:[%s6978_s1 + $0x33] sm:$0xff] }
 0x1da   : > { %v1859_v5 = vpack.c.bf16 %v1847_v62, %v1846_v0  ;;  %v1854_v18 = vld [vmem:[#allocation2 + $0x56] sm:$0xff] }
 0x1db   : > { %v6121_v8 = vpop.f32.mrf.mxu3 }
 0x1dc   : > { %v6123_v60 = vpop.f32.mrf.mxu2 }
 0x1dd   : > { %v6125_v12 = vpop.f32.mrf.mxu1 }
 0x1de   : > { %2055 = vperm.xlu1 %5472, %v2013_v6  }
 0x1df   : > { %v1169_v15 = vpop.f32.mrf.mxu0 }
 0x1e0   : > { %4681 = vmatmul.msk.bf16.gmra.mxu3 %vm696_vm0, %v1344_v10 }
 0x1e1   : > { %4704 = vmatmul.msk.bf16.gmra.mxu2 %vm696_vm0, %v1474_v11  ;;  %2045 = vperm.xlu2 %5473, %v2011_v57  }
 0x1e2   : > { %4727 = vmatmul.msk.bf16.gmra.mxu0 %vm696_vm0, %v1604_v14 }
 0x1e3   : > { %v964_v23 = vpop.f32.mrf.mxu3 }
 0x1e4   : > { %v1052_v24 = vpop.f32.mrf.mxu2 }
 0x1e5   : > { %v1053_v4 = vadd.f32 %v1052_v24, %v964_v23  ;;  %v1299_v26 = vpop.f32.mrf.mxu1 }
 0x1e6   : > { %2070 = vperm.xlu1 %5472, %v2016_v22   ;;  %v1852_v22 = vld [vmem:[#allocation2 + $0x46] sm:$0xff] }
 0x1e7   : > { %v6133_v27 = vpop.f32.mrf.mxu0  ;;  %v1191_v28 = vadd.f32 %v1169_v15, %v1053_v4  ;;  %v1849_v4 = vld [vmem:[#allocation2 + $0x2e] sm:$0xff] }
 0x1e8   : > { %4750 = vmatmul.msk.bf16.gmra.mxu1 %vm696_vm0, %v1734_v25 }
 0x1e9   : > { %v6135_v29 = vadd.f32 %v1299_v26, %v1191_v28  ;;  %v1848_v26 = vld [vmem:[#allocation2 + $0x26] sm:$0xff] }
 0x1ea   : > { %v1860_v30 = vpack.c.bf16 %v1849_v4, %v1848_v26  ;;  %v5294_v4 = vld [vmem:[#allocation7 + $0x20] sm:$0xff]  ;;  %v5291_v26 = vld [vmem:[#allocation7 + $0x8] sm:$0xff] }
 0x1eb   : > { %v6141_v34 = vpop.f32.mrf.mxu3  ;;  %2201 = vmatpush.bf16.msrb.mxu2 %v5294_v4  ;;  %2283 = vmatpush.bf16.msrb.mxu0 %v5291_v26 }
 0x1ec   : > { %v6143_v35 = vpop.f32.mrf.mxu2 }
 0x1ed   : > { %v6145_v38 = vpop.f32.mrf.mxu1 }
 0x1ef   : > { %v1174_v40 = vpop.f32.mrf.mxu0 }
 0x1f0   : > { %4682 = vmatmul.msk.bf16.gmra.mxu3 %vm696_vm0, %v1345_v36 }
 0x1f1   : > { %4705 = vmatmul.msk.bf16.gmra.mxu2 %vm696_vm0, %v1475_v37 }
 0x1f2   : > { %4728 = vmatmul.msk.bf16.gmra.mxu0 %vm696_vm0, %v1605_v39 }
 0x1f3   : > { %v969_v46 = vpop.f32.mrf.mxu3 }
 0x1f4   : > { %v1057_v47 = vpop.f32.mrf.mxu2 }
 0x1f5   : > { %v1058_v48 = vadd.f32 %v1057_v47, %v969_v46  ;;  %v1304_v51 = vpop.f32.mrf.mxu1 }
 0x1f7   : > { %v6156_v52 = vpop.f32.mrf.mxu0  ;;  %v1193_v53 = vadd.f32 %v1174_v40, %v1058_v48  ;;  %v1850_v48 = vld [vmem:[#allocation2 + $0x36] sm:$0xff] }
 0x1f8   : > { %4751 = vmatmul.msk.bf16.gmra.mxu1 %vm696_vm0, %v1735_v50  ;;  %v1851_v50 = vld [vmem:[#allocation2 + $0x3e] sm:$0xff] }
 0x1f9   : > { %v6158_v54 = vadd.f32 %v1304_v51, %v1193_v53  ;;  %v1861_v56 = vpack.c.bf16 %v1851_v50, %v1850_v48 }
 0x1fb   : > { %v6167_v58 = vpop.f32.mrf.mxu3 }
 0x1fc   : > { %v6169_v61 = vpop.f32.mrf.mxu2 }
 0x1fd   : > { %v6171_v59 = vpop.f32.mrf.mxu1 }
 0x1ff   : > { %v1179_v2 = vpop.f32.mrf.mxu0 }
 0x200   : > { %4768 = vmatmul.msk.bf16.vlgmr.msrb.gmra.mxu3 %vm696_vm0, %v1859_v5 }
 0x203   : > { %v974_v7 = vpop.f32.mrf.mxu3 }
 0x204   : > { %v1062_v10 = vpop.f32.mrf.mxu2 }
 0x205   : > { %v1063_v11 = vadd.f32 %v1062_v10, %v974_v7  ;;  %v1309_v14 = vpop.f32.mrf.mxu1 }
 0x207   : > { %v1181_v15 = vpop.f32.mrf.mxu0  ;;  %v1195_v16 = vadd.f32 %v1179_v2, %v1063_v11  ;;  %v2014_v11 = vld [vmem:[%s6978_s1 + $0x4b] sm:$0xff] }
 0x208   : > { %2060 = vperm.xlu2 %5473, %v2014_v11  }
 0x209   : > { %v6177_v19 = vadd.f32 %v1309_v14, %v1195_v16  ;;  %v1853_v16 = vld [vmem:[#allocation2 + $0x4e] sm:$0xff] }
 0x20b   : > { %v976_v23 = vpop.f32.mrf.mxu3 }
 0x20c   : > { %v1064_v24 = vpop.f32.mrf.mxu2 }
 0x20d   : > { %v1311_v25 = vpop.f32.mrf.mxu1  ;;  %v1862_v24 = vpack.c.bf16 %v1853_v16, %v1852_v22 }
 0x20e   : > { %v2017_v25 = vld [vmem:[%s6978_s1 + $0x63] sm:$0x1] }
 0x20f   : > { %v1669_v28 = vpop.f32.mrf.mxu0 }
 0x210   : > { %4769 = vmatmul.msk.bf16.gmra.mxu3 %vm696_vm0, %v1860_v30  ;;  %2075 = vperm.xlu2 %5473, %v2017_v25  }
 0x213   : > { %v1409_v32 = vpop.f32.mrf.mxu3 }
 0x214   : > { %v1539_v33 = vpop.f32.mrf.mxu2  ;;  %v1443_v36 = vadd.f32 %v1409_v32, %v6086_v55 }
 0x215   : > { %v1799_v37 = vpop.f32.mrf.mxu1 }
 0x216   : > { %v1573_v39 = vadd.f32 %v1539_v33, %v1443_v36 }
 0x217   : > { %v6184_v40 = vpop.f32.mrf.mxu0 }
 0x218   : > { %v1703_v42 = vadd.f32 %v1669_v28, %v1573_v39 }
 0x21a   : > { %v6186_v43 = vadd.f32 %v1799_v37, %v1703_v42 }
 0x21b   : > { %v1411_v46 = vpop.f32.mrf.mxu3 }
 0x21c   : > { %v6191_v47 = vpop.f32.mrf.mxu2  ;;  %v6194_v51 = vadd.f32 %v1411_v46, %v6089_v9  ;;  %v1855_v46 = vld [vmem:[#allocation2 + $0x5e] sm:$0xff] }
 0x21d   : > { %v6196_v55 = vpop.f32.mrf.mxu1 }
 0x21f   : > { %v1674_v53 = vpop.f32.mrf.mxu0 }
 0x220   : > { %4770 = vmatmul.msk.bf16.gmra.mxu3 %vm696_vm0, %v1861_v56 }
 0x223   : > { %v1414_v62 = vpop.f32.mrf.mxu3 }
 0x224   : > { %v1544_v0 = vpop.f32.mrf.mxu2  ;;  %v1445_v2 = vadd.f32 %v1414_v62, %v6094_v21 }
 0x225   : > { %v1804_v5 = vpop.f32.mrf.mxu1 }
 0x226   : > { %v1575_v6 = vadd.f32 %v1544_v0, %v1445_v2 }
 0x227   : > { %v6203_v7 = vpop.f32.mrf.mxu0 }
 0x228   : > { %v1705_v9 = vadd.f32 %v1674_v53, %v1575_v6  ;;  %v1863_v53 = vpack.c.bf16 %v1855_v46, %v1854_v18  ;;  %v1856_v6 = vld [vmem:[#allocation2 + $0x66] sm:$0xff] }
 0x22a   : > { %v6205_v10 = vadd.f32 %v1804_v5, %v1705_v9  ;;  %v1857_v9 = vld [vmem:[#allocation2 + $0x6e] sm:$0xff] }
 0x22b   : > { %v1416_v14 = vpop.f32.mrf.mxu3  ;;  %v1864_v22 = vpack.c.bf16 %v1857_v9, %v1856_v6 }
 0x22c   : > { %v6210_v15 = vpop.f32.mrf.mxu2  ;;  %v6213_v20 = vadd.f32 %v1416_v14, %v6097_v13 }
 0x22d   : > { %v6215_v21 = vpop.f32.mrf.mxu1 }
 0x22f   : > { %v1679_v23 = vpop.f32.mrf.mxu0 }
 0x230   : > { %4771 = vmatmul.msk.bf16.gmra.mxu3 %vm696_vm0, %v1862_v24 }
 0x233   : > { %v1419_v28 = vpop.f32.mrf.mxu3 }
 0x234   : > { %v1549_v30 = vpop.f32.mrf.mxu2  ;;  %v1447_v13 = vadd.f32 %v1419_v28, %v6104_v44 }
 0x235   : > { %v1809_v31 = vpop.f32.mrf.mxu1 }
 0x236   : > { %v1577_v32 = vadd.f32 %v1549_v30, %v1447_v13 }
 0x237   : > { %v6222_v33 = vpop.f32.mrf.mxu0 }
 0x238   : > { %v1707_v36 = vadd.f32 %v1679_v23, %v1577_v32  ;;  %v5290_v32 = vld [vmem:[#allocation7] sm:$0xff] }
 0x239   : > { %2284 = vmatpush.bf16.msrb.mxu0 %v5290_v32 }
 0x23a   : > { %v6224_v37 = vadd.f32 %v1809_v31, %v1707_v36  ;;  %v1858_v36 = vld [vmem:[#allocation2 + $0x76] sm:$0xf] }
 0x23b   : > { %v6226_v39 = vpop.f32.mrf.mxu3 }
 0x23c   : > { %v6228_v42 = vpop.f32.mrf.mxu2 }
 0x23d   : > { %v6230_v48 = vpop.f32.mrf.mxu1 }
 0x23f   : > { %v1684_v50 = vpop.f32.mrf.mxu0 }
 0x240   : > { %4772 = vmatmul.msk.bf16.gmra.mxu3 %vm696_vm0, %v1863_v53  ;;  %v1865_v53 = vpack.c.bf16 %v1858_v36, %v1858_v36  ;;  %v5296_v36 = vld [vmem:[#allocation7 + $0x30] sm:$0xff] }
 0x243   : > { %v1424_v44 = vpop.f32.mrf.mxu3 }
 0x244   : > { %v1554_v56 = vpop.f32.mrf.mxu2  ;;  %v1449_v57 = vadd.f32 %v1424_v44, %v6118_v1  ;;  %v5293_v1 = vld [vmem:[#allocation7 + $0x18] sm:$0xff] }
 0x245   : > { %v1814_v62 = vpop.f32.mrf.mxu1  ;;  %2202 = vmatpush.bf16.msrb.mxu2 %v5293_v1 }
 0x246   : > { %v1579_v0 = vadd.f32 %v1554_v56, %v1449_v57 }
 0x247   : > { %v6234_v2 = vpop.f32.mrf.mxu0 }
 0x248   : > { %v1709_v5 = vadd.f32 %v1684_v50, %v1579_v0 }
 0x24a   : > { %v6236_v11 = vadd.f32 %v1814_v62, %v1709_v5 }
 0x24b   : > { %v6238_v14 = vpop.f32.mrf.mxu3 }
 0x24c   : > { %v6240_v16 = vpop.f32.mrf.mxu2 }
 0x24d   : > { %v6242_v23 = vpop.f32.mrf.mxu1 }
 0x24f   : > { %v1689_v24 = vpop.f32.mrf.mxu0 }
 0x250   : > { %4773 = vmatmul.msk.bf16.gmra.mxu3 %vm696_vm0, %v1864_v22 }
 0x253   : > { %v1429_v4 = vpop.f32.mrf.mxu3 }
 0x254   : > { %v1559_v25 = vpop.f32.mrf.mxu2  ;;  %v1451_v26 = vadd.f32 %v1429_v4, %v6135_v29 }
 0x255   : > { %v1819_v28 = vpop.f32.mrf.mxu1 }
 0x256   : > { %v1581_v30 = vadd.f32 %v1559_v25, %v1451_v26  ;;  %v5298_v25 = vld [vmem:[#allocation7 + $0x40] sm:$0xff] }
 0x257   : > { %v6246_v13 = vpop.f32.mrf.mxu0  ;;  %2391 = vmatpush.bf16.msra.mxu1 %v5298_v25  ;;  %v5299_v25 = vld [vmem:[#allocation7 + $0x48] sm:$0xff] }
 0x258   : > { %v1711_v31 = vadd.f32 %v1689_v24, %v1581_v30 }
 0x25a   : > { %v6248_v18 = vadd.f32 %v1819_v28, %v1711_v31 }
 0x25b   : > { %v6250_v46 = vpop.f32.mrf.mxu3 }
 0x25c   : > { %v6252_v50 = vpop.f32.mrf.mxu2 }
 0x25d   : > { %v6256_v29 = vpop.f32.mrf.mxu1 }
 0x25f   : > { %v1694_v44 = vpop.f32.mrf.mxu0 }
 0x260   : > { %4774 = vmatmul.msk.bf16.gmra.mxu3 %vm696_vm0, %v1865_v53  ;;  %v5301_v53 = vld [vmem:[#allocation7 + $0x58] sm:$0xff] }
 0x261   : > { %2513 = vmatpush.bf16.msra.mxu3 %v5301_v53 }
 0x263   : > { %v1434_v56 = vpop.f32.mrf.mxu3 }
 0x264   : > { %v1564_v57 = vpop.f32.mrf.mxu2  ;;  %v1453_v62 = vadd.f32 %v1434_v56, %v6158_v54  ;;  %v5297_v54 = vld [vmem:[#allocation7 + $0x38] sm:$0xff] }
 0x265   : > { %v1824_v0 = vpop.f32.mrf.mxu1  ;;  %2392 = vmatpush.bf16.msra.mxu1 %v5297_v54  ;;  %v6279_v54 = vld [vmem:[%s6982_s5] ss:$0 sm:$0xff] }
 0x266   : > { %v1583_v5 = vadd.f32 %v1564_v57, %v1453_v62  ;;  %v5300_v62 = vld [vmem:[#allocation7 + $0x50] sm:$0xff] }
 0x267   : > { %v6260_v6 = vpop.f32.mrf.mxu0  ;;  %2514 = vmatpush.bf16.msra.mxu3 %v5300_v62 }
 0x268   : > { %v1713_v9 = vadd.f32 %v1694_v44, %v1583_v5 }
 0x269   : > { %2393 = vmatpush.bf16.msra.mxu1 %v5296_v36 }
 0x26a   : > { %v6262_v22 = vadd.f32 %v1824_v0, %v1713_v9  ;;  %v5304_v9 = vld [vmem:[#allocation7 + $0x70] sm:$0xff] }
 0x26b   : > { %v6264_v24 = vpop.f32.mrf.mxu3  ;;  %2635 = vmatpush.bf16.msra.mxu2 %v5304_v9  ;;  %2515 = vmatpush.bf16.msra.mxu3 %v5299_v25 }
 0x26c   : > { %v6266_v1 = vpop.f32.mrf.mxu2 }
 0x26d   : > { %v6268_v4 = vpop.f32.mrf.mxu1 }
 0x26e   : > { %7015 = vst [vmem:[#allocation25_spill] sm:$0xff] %v6268_v4 }
 0x26f   : > { %v1699_v26 = vpop.f32.mrf.mxu0 }
 0x273   : > { %v1439_v28 = vpop.f32.mrf.mxu3 }
 0x274   : > { %v1569_v30 = vpop.f32.mrf.mxu2  ;;  %v1455_v31 = vadd.f32 %v1439_v28, %v6177_v19  ;;  %v1574_v19 = vadd.f32 %v6191_v47, %v6194_v51 }
 0x275   : > { %v1829_v32 = vpop.f32.mrf.mxu1 }
 0x276   : > { %v1585_v44 = vadd.f32 %v1569_v30, %v1455_v31  ;;  %v5307_v30 = vld [vmem:[#allocation7 + $0x88] sm:$0xff]  ;;  %v1704_v31 = vadd.f32 %v6184_v40, %v1574_v19  ;;  %v1576_v40 = vadd.f32 %v6210_v15, %v6213_v20 }
 0x277   : > { %v1701_v56 = vpop.f32.mrf.mxu0  ;;  %2757 = vmatpush.bf16.msra.mxu0 %v5307_v30 }
 0x278   : > { %v1715_v57 = vadd.f32 %v1699_v26, %v1585_v44  ;;  %v1834_v53 = vadd.f32 %v6196_v55, %v1704_v31  ;;  %v1045_v55 = vadd.f32 %v6109_v17, %v6107_v45  ;;  %v2031_v45 = vpop.permute.xlu1 %2030 }
 0x27a   : > { %v6272_v0 = vadd.f32 %v1829_v32, %v1715_v57  ;;  %v1188_v17 = vadd.f32 %v6102_v41, %v1045_v55 }
 0x27b   : > { %v1441_v5 = vpop.f32.mrf.mxu3 }
 0x27c   : > { %v1571_v3 = vpop.f32.mrf.mxu2  ;;  %v2103_v5 = vld [vmem:[#allocation3] sm:$0xff] }
 0x27d   : > { %v1831_v4 = vpop.f32.mrf.mxu1  ;;  %v2320_v3 = vld [vmem:[#allocation3 + $0x2] sm:$0xff] }
 0x27e   : > { %v2021_v4 = vpop.permute.xlu0 %2020 }
 0x280   : > { %v2036_v41 = vpop.permute.xlu1 %2035 }
 0x283   : > { %v1929_v26 = vpop.f32.mrf.mxu3 }
 0x284   : > { %v1963_v28 = vadd.f32 %v1929_v26, %v6186_v43  ;;  %v2129_v43 = vld [vmem:[#allocation3 + $0x1] sm:$0xff] }
 0x286   : > { %v1980_v32 = vadd.f32 %v6279_v54, %v1963_v28  ;;  %v2026_v62 = vpop.permute.xlu0 %2025 }
 0x288   : > { %v1993_v36 = vmax.f32 %v1980_v32, 0.0 }
 0x28a   : > { %v2078_v44 = vmul.f32 %v2021_v4, %v1993_v36 }
 0x28b   : > { %v1931_v47 = vpop.f32.mrf.mxu3 }
 0x28c   : > { %2090 = vst.msk [vmem:[#allocation3 + $0xb] sm:$0xff] %vm821_vm2, %v2078_v44  ;;  %v1964_v51 = vadd.f32 %v1931_v47, %v1834_v53  ;;  %v1706_v44 = vadd.f32 %v6203_v7, %v1576_v40 }
 0x28e   : > { %v1981_v56 = vadd.f32 %v6279_v54, %v1964_v51 }
 0x290   : > { %v1994_v57 = vmax.f32 %v1981_v56, 0.0  ;;  %v1318_v56 = vadd.f32 %v6111_v49, %v1188_v17  ;;  %v1050_v49 = vadd.f32 %v6123_v60, %v6121_v8  ;;  %v2041_v8 = vpop.permute.xlu2 %2040 }
 0x292   : > { %v2079_v9 = vmul.f32 %v2026_v62, %v1994_v57  ;;  %v6289_v25 = vpack.c.bf16 %v1994_v57, %v1993_v36  ;;  %v1836_v36 = vadd.f32 %v6215_v21, %v1706_v44  ;;  %v1448_v62 = vadd.f32 %v6226_v39, %v1318_v56 }
 0x293   : > { %v1934_v19 = vpop.f32.mrf.mxu3  ;;  %v2130_v26 = vld [vmem:[#allocation3 + $0x9] sm:$0xff]  ;;  %v1190_v60 = vadd.f32 %v6116_v63, %v1050_v49 }
 0x294   : > { %v2104_v28 = vld [vmem:[#allocation3 + $0x8] sm:$0xff]  ;;  %2091 = vst.msk [vmem:[#allocation3 + $0x13] sm:$0xff] %vm821_vm2, %v2079_v9  ;;  %v1965_v31 = vadd.f32 %v1934_v19, %v6205_v10  ;;  %v2142_v32 = vpack.c.bf16 %v2130_v26, %v2129_v43 }
 0x295   : > { %v2321_v30 = vld [vmem:[#allocation3 + $0xa] sm:$0xff]  ;;  %v2116_v4 = vpack.c.bf16 %v2104_v28, %v2103_v5 }
 0x296   : > { %v2333_v53 = vpack.c.bf16 %v2321_v30, %v2320_v3  ;;  %v1982_v15 = vadd.f32 %v6279_v54, %v1965_v31  ;;  %4787 = vmatmul.msk.bf16.vlgmr.msrb.gmra.mxu2 %vm821_vm2, %v2142_v32  ;;  %v1578_v3 = vadd.f32 %v6228_v42, %v1448_v62  ;;  %v5303_v42 = vld [vmem:[#allocation7 + $0x68] sm:$0xff] }
 0x297   : > { %4806 = vmatmul.msk.bf16.vlgmr.msrb.gmra.mxu0 %vm821_vm2, %v2116_v4  ;;  %2636 = vmatpush.bf16.msra.mxu2 %v5303_v42 }
 0x298   : > { %4825 = vmatmul.msk.bf16.vlgmr.msra.gmra.mxu1 %vm821_vm2, %v2333_v53  ;;  %v1995_v20 = vmax.f32 %v1982_v15, 0.0  ;;  %v5306_v53 = vld [vmem:[#allocation7 + $0x80] sm:$0xff]  ;;  %v1708_v44 = vadd.f32 %v6222_v33, %v1578_v3  ;;  %v1320_v33 = vadd.f32 %v6125_v12, %v1190_v60  ;;  %v1055_v12 = vadd.f32 %v6143_v35, %v6141_v34 }
 0x299   : > { %2758 = vmatpush.bf16.msra.mxu0 %v5306_v53 }
 0x29a   : > { %v2080_v10 = vmul.f32 %v2031_v45, %v1995_v20  ;;  %v1838_v45 = vadd.f32 %v6230_v48, %v1708_v44  ;;  %v1192_v34 = vadd.f32 %v6133_v27, %v1055_v12  ;;  %v2056_v44 = vpop.permute.xlu1 %2055 }
 0x29b   : > { %v1936_v47 = vpop.f32.mrf.mxu3  ;;  %v2443_v51 = vld [vmem:[#allocation3 + $0x12] sm:$0xff] }
 0x29c   : > { %2092 = vst.msk [vmem:[#allocation3 + $0x1b] sm:$0xff] %vm821_vm2, %v2080_v10  ;;  %v1966_v7 = vadd.f32 %v1936_v47, %v1836_v36  ;;  %v2455_v57 = vpack.c.bf16 %v2443_v51, %v2321_v30  ;;  %v2131_v9 = vld [vmem:[#allocation3 + $0x11] sm:$0xff] }
 0x29d   : > { %v2105_v55 = vld [vmem:[#allocation3 + $0x10] sm:$0xff] }
 0x29e   : > { %v1983_v43 = vadd.f32 %v6279_v54, %v1966_v7  ;;  %4844 = vmatmul.msk.bf16.vlgmr.msra.gmra.mxu3 %vm821_vm2, %v2455_v57  ;;  %v2046_v7 = vpop.permute.xlu2 %2045 }
 0x2a0   : > { %v1996_v5 = vmax.f32 %v1983_v43, 0.0 }
 0x2a2   : > { %v2081_v21 = vmul.f32 %v2036_v41, %v1996_v5  ;;  %v6308_v40 = vpack.c.bf16 %v1996_v5, %v1995_v20 }
 0x2a3   : > { %v1939_v19 = vpop.f32.mrf.mxu3  ;;  %v2132_v26 = vld [vmem:[#allocation3 + $0x19] sm:$0xff] }
 0x2a4   : > { %v2106_v28 = vld [vmem:[#allocation3 + $0x18] sm:$0xff]  ;;  %2093 = vst.msk [vmem:[#allocation3 + $0x23] sm:$0xff] %vm821_vm2, %v2081_v21  ;;  %v1967_v30 = vadd.f32 %v1939_v19, %v6224_v37  ;;  %v2143_v31 = vpack.c.bf16 %v2132_v26, %v2131_v9 }
 0x2a5   : > { %v2323_v39 = vld [vmem:[#allocation3 + $0x1a] sm:$0xff]  ;;  %v2117_v32 = vpack.c.bf16 %v2106_v28, %v2105_v55  ;;  %v2051_v28 = vpop.permute.xlu0 %2050 }
 0x2a6   : > { %v2334_v4 = vpack.c.bf16 %v2323_v39, %v2443_v51  ;;  %v1984_v15 = vadd.f32 %v6279_v54, %v1967_v30  ;;  %4788 = vmatmul.msk.bf16.gmra.mxu2 %vm821_vm2, %v2143_v31  ;;  %v1450_v51 = vadd.f32 %v6238_v14, %v1320_v33 }
 0x2a7   : > { %4807 = vmatmul.msk.bf16.gmra.mxu0 %vm821_vm2, %v2117_v32  ;;  %v1322_v32 = vadd.f32 %v6145_v38, %v1192_v34  ;;  %v1060_v38 = vadd.f32 %v6169_v61, %v6167_v58 }
 0x2a8   : > { %4826 = vmatmul.msk.bf16.gmra.mxu1 %vm821_vm2, %v2334_v4  ;;  %v1997_v37 = vmax.f32 %v1984_v15, 0.0  ;;  %v1580_v57 = vadd.f32 %v6240_v16, %v1450_v51 }
 0x2a9   : > { %v1452_v42 = vadd.f32 %v6250_v46, %v1322_v32  ;;  %v1194_v58 = vadd.f32 %v6156_v52, %v1060_v38  ;;  %v7016_v32 = vld [vmem:[#allocation25_spill] sm:$0xff] }
 0x2aa   : > { %v2082_v17 = vmul.f32 %v2041_v8, %v1997_v37  ;;  %v1710_v16 = vadd.f32 %v6234_v2, %v1580_v57  ;;  %v5305_v57 = vld [vmem:[#allocation7 + $0x78] sm:$0xff] }
 0x2ab   : > { %v1941_v20 = vpop.f32.mrf.mxu3  ;;  %v2445_v36 = vld [vmem:[#allocation3 + $0x22] sm:$0xff]  ;;  %v1582_v15 = vadd.f32 %v6252_v50, %v1452_v42  ;;  %2759 = vmatpush.bf16.msra.mxu0 %v5305_v57 }
 0x2ac   : > { %2094 = vst.msk [vmem:[#allocation3 + $0x2b] sm:$0xff] %vm821_vm2, %v2082_v17  ;;  %v1968_v10 = vadd.f32 %v1941_v20, %v1838_v45  ;;  %v2456_v47 = vpack.c.bf16 %v2445_v36, %v2323_v39  ;;  %v2133_v43 = vld [vmem:[#allocation3 + $0x21] sm:$0xff]  ;;  %v1840_v39 = vadd.f32 %v6242_v23, %v1710_v16 }
 0x2ad   : > { %v2107_v5 = vld [vmem:[#allocation3 + $0x20] sm:$0xff]  ;;  %v1712_v51 = vadd.f32 %v6246_v13, %v1582_v15  ;;  %v1324_v13 = vadd.f32 %v6171_v59, %v1194_v58  ;;  %v5313_v15 = vld [vmem:[#allocation7 + $0xb8] sm:$0xff]  ;;  %v5312_v58 = vld [vmem:[#allocation7 + $0xb0] sm:$0xff] }
 0x2ae   : > { %v1985_v56 = vadd.f32 %v6279_v54, %v1968_v10  ;;  %4845 = vmatmul.msk.bf16.gmra.mxu3 %vm821_vm2, %v2456_v47  ;;  %v5302_v50 = vld [vmem:[#allocation7 + $0x60] sm:$0xff] }
 0x2af   : > { %2637 = vmatpush.bf16.msra.mxu2 %v5302_v50  ;;  %3001 = vmatpush.bf16.msrb.mxu3 %v5313_v15 }
 0x2b0   : > { %v1998_v63 = vmax.f32 %v1985_v56, 0.0 }
 0x2b2   : > { %v2083_v48 = vmul.f32 %v2046_v7, %v1998_v63  ;;  %v6327_v62 = vpack.c.bf16 %v1998_v63, %v1997_v37  ;;  %v2061_v63 = vpop.permute.xlu2 %2060 }
 0x2b3   : > { %v1944_v41 = vpop.f32.mrf.mxu3  ;;  %v2134_v3 = vld [vmem:[#allocation3 + $0x29] sm:$0xff]  ;;  %3002 = vmatpush.bf16.msrb.mxu3 %v5312_v58 }
 0x2b4   : > { %v2108_v21 = vld [vmem:[#allocation3 + $0x28] sm:$0xff]  ;;  %2095 = vst.msk [vmem:[#allocation3 + $0x33] sm:$0xff] %vm821_vm2, %v2083_v48  ;;  %v1969_v9 = vadd.f32 %v1944_v41, %v6236_v11  ;;  %v2144_v55 = vpack.c.bf16 %v2134_v3, %v2133_v43  ;;  %v1454_v41 = vadd.f32 %v6264_v24, %v1324_v13 }
 0x2b5   : > { %v2325_v14 = vld [vmem:[#allocation3 + $0x2a] sm:$0xff]  ;;  %v2118_v49 = vpack.c.bf16 %v2108_v21, %v2107_v5  ;;  %v2066_v21 = vpop.permute.xlu0 %2065 }
 0x2b6   : > { %v2335_v19 = vpack.c.bf16 %v2325_v14, %v2445_v36  ;;  %v1986_v26 = vadd.f32 %v6279_v54, %v1969_v9  ;;  %4789 = vmatmul.msk.bf16.gmra.mxu2 %vm821_vm2, %v2144_v55 }
 0x2b7   : > { %4808 = vmatmul.msk.bf16.gmra.mxu0 %vm821_vm2, %v2118_v49 }
 0x2b8   : > { %4827 = vmatmul.msk.bf16.gmra.mxu1 %vm821_vm2, %v2335_v19  ;;  %v1999_v35 = vmax.f32 %v1986_v26, 0.0 }
 0x2ba   : > { %v2084_v11 = vmul.f32 %v2051_v28, %v1999_v35 }
 0x2bb   : > { %v1946_v30 = vpop.f32.mrf.mxu3  ;;  %v2447_v31 = vld [vmem:[#allocation3 + $0x32] sm:$0xff] }
 0x2bc   : > { %2096 = vst.msk [vmem:[#allocation3 + $0x3b] sm:$0xff] %vm821_vm2, %v2084_v11  ;;  %v1970_v2 = vadd.f32 %v1946_v30, %v1840_v39  ;;  %v2457_v4 = vpack.c.bf16 %v2447_v31, %v2325_v14  ;;  %v2135_v60 = vld [vmem:[#allocation3 + $0x31] sm:$0xff]  ;;  %v5310_v11 = vld [vmem:[#allocation7 + $0xa0] sm:$0xff] }
 0x2bd   : > { %v2109_v37 = vld [vmem:[#allocation3 + $0x30] sm:$0xff]  ;;  %2879 = vmatpush.bf16.msrb.mxu1 %v5310_v11  ;;  %v5315_v11 = vld [vmem:[#allocation7 + $0xc8] sm:$0xff] }
 0x2be   : > { %v1987_v53 = vadd.f32 %v6279_v54, %v1970_v2  ;;  %4846 = vmatmul.msk.bf16.gmra.mxu3 %vm821_vm2, %v2457_v4 }
 0x2c0   : > { %v2000_v27 = vmax.f32 %v1987_v53, 0.0 }
 0x2c2   : > { %v2085_v23 = vmul.f32 %v2056_v44, %v2000_v27  ;;  %v6346_v8 = vpack.c.bf16 %v2000_v27, %v1999_v35  ;;  %v5309_v44 = vld [vmem:[#allocation7 + $0x98] sm:$0xff] }
 0x2c3   : > { %v1949_v45 = vpop.f32.mrf.mxu3  ;;  %v2136_v17 = vld [vmem:[#allocation3 + $0x39] sm:$0xff]  ;;  %2880 = vmatpush.bf16.msrb.mxu1 %v5309_v44  ;;  %v2933_v44 = vld [vmem:[#allocation3 + $0x2d] sm:$0xff] }
 0x2c4   : > { %v2110_v20 = vld [vmem:[#allocation3 + $0x38] sm:$0xff]  ;;  %2097 = vst.msk [vmem:[#allocation3 + $0x43] sm:$0xff] %vm821_vm2, %v2085_v23  ;;  %v1971_v36 = vadd.f32 %v1949_v45, %v6248_v18  ;;  %v2145_v33 = vpack.c.bf16 %v2136_v17, %v2135_v60  ;;  %v1842_v18 = vadd.f32 %v6256_v29, %v1712_v51  ;;  %v1584_v29 = vadd.f32 %v6266_v1, %v1454_v41  ;;  %v2076_v60 = vpop.permute.xlu2 %2075 }
 0x2c5   : > { %v2327_v46 = vld [vmem:[#allocation3 + $0x3a] sm:$0xff]  ;;  %v2119_v10 = vpack.c.bf16 %v2110_v20, %v2109_v37  ;;  %v5308_v37 = vld [vmem:[#allocation7 + $0x90] sm:$0xff] }
 0x2c6   : > { %v2336_v47 = vpack.c.bf16 %v2327_v46, %v2447_v31  ;;  %v1988_v56 = vadd.f32 %v6279_v54, %v1971_v36  ;;  %4790 = vmatmul.msk.bf16.gmra.mxu2 %vm821_vm2, %v2145_v33  ;;  %v1714_v39 = vadd.f32 %v6260_v6, %v1584_v29  ;;  %v2071_v31 = vpop.permute.xlu1 %2070  ;;  %v2565_v29 = vld [vmem:[#allocation3 + $0x13] sm:$0xff] }
 0x2c7   : > { %4809 = vmatmul.msk.bf16.gmra.mxu0 %vm821_vm2, %v2119_v10  ;;  %2881 = vmatpush.bf16.msrb.mxu1 %v5308_v37 }
 0x2c8   : > { %4828 = vmatmul.msk.bf16.gmra.mxu1 %vm821_vm2, %v2336_v47  ;;  %v2001_v61 = vmax.f32 %v1988_v56, 0.0  ;;  %v1844_v2 = vadd.f32 %v7016_v32, %v1714_v39  ;;  %v5316_v56 = vld [vmem:[#allocation7 + $0xd0] sm:$0xff] }
 0x2c9   : > { %3123 = vmatpush.bf16.msrb.mxu2 %v5316_v56  ;;  %v2930_v39 = vld [vmem:[#allocation3 + $0x15] sm:$0xff]  ;;  %v2811_v32 = vld [vmem:[#allocation3 + $0x2c] sm:$0xff] }
 0x2ca   : > { %v2086_v7 = vmul.f32 %v2061_v63, %v2001_v61  ;;  %v5348_v63 = vld [vmem:[#allocation10 + $0x68] sm:$0xf0] }
 0x2cb   : > { %v1951_v48 = vpop.f32.mrf.mxu3  ;;  %v2449_v43 = vld [vmem:[#allocation3 + $0x42] sm:$0xff] }
 0x2cc   : > { %2098 = vst.msk [vmem:[#allocation3 + $0x4b] sm:$0xff] %vm821_vm2, %v2086_v7  ;;  %v1972_v5 = vadd.f32 %v1951_v48, %v1842_v18  ;;  %v2458_v12 = vpack.c.bf16 %v2449_v43, %v2327_v46  ;;  %v2137_v55 = vld [vmem:[#allocation3 + $0x41] sm:$0xff] }
 0x2cd   : > { %v2111_v59 = vld [vmem:[#allocation3 + $0x40] sm:$0xff]  ;;  %v5311_v18 = vld [vmem:[#allocation7 + $0xa8] sm:$0xff]  ;;  %3124 = vmatpush.bf16.msrb.mxu2 %v5315_v11 }
 0x2ce   : > { %v1989_v3 = vadd.f32 %v6279_v54, %v1972_v5  ;;  %4847 = vmatmul.msk.bf16.gmra.mxu3 %vm821_vm2, %v2458_v12  ;;  %v2813_v58 = vld [vmem:[#allocation3 + $0x3c] sm:$0xff] }
 0x2cf   : > { %3003 = vmatpush.bf16.msrb.mxu3 %v5311_v18  ;;  %v2570_v11 = vld [vmem:[#allocation3 + $0x3b] sm:$0xff] }
 0x2d0   : > { %v2002_v52 = vmax.f32 %v1989_v3, 0.0 }
 0x2d2   : > { %v2087_v14 = vmul.f32 %v2066_v21, %v2002_v52  ;;  %v6365_v9 = vpack.c.bf16 %v2002_v52, %v2001_v61  ;;  %v4996_v61 = vld [vmem:[#allocation10 + $0x60] sm:$0xf] }
 0x2d3   : > { %v1954_v49 = vpop.f32.mrf.mxu3  ;;  %v2138_v19 = vld [vmem:[#allocation3 + $0x49] sm:$0xff]  ;;  %v4997_v7 = vor.u32 %v5348_v63, %v4996_v61 }
 0x2d4   : > { %v2112_v16 = vld [vmem:[#allocation3 + $0x48] sm:$0xff]  ;;  %2099 = vst.msk [vmem:[#allocation3 + $0x53] sm:$0xff] %vm821_vm2, %v2087_v14  ;;  %v1973_v24 = vadd.f32 %v1954_v49, %v6262_v22  ;;  %v2146_v34 = vpack.c.bf16 %v2138_v19, %v2137_v55  ;;  %v2687_v14 = vld [vmem:[#allocation3 + $0x14] sm:$0xff]  ;;  %v2809_v55 = vld [vmem:[#allocation3 + $0x1c] sm:$0xff] }
 0x2d5   : > { %v2329_v26 = vld [vmem:[#allocation3 + $0x4a] sm:$0xff]  ;;  %v2120_v35 = vpack.c.bf16 %v2112_v16, %v2111_v59  ;;  %3380 = vmatpush.bf16.msrb.mxu0 %v4997_v7 }
 0x2d6   : > { %v2337_v28 = vpack.c.bf16 %v2329_v26, %v2449_v43  ;;  %v1990_v1 = vadd.f32 %v6279_v54, %v1973_v24  ;;  %4791 = vmatmul.msk.bf16.gmra.mxu2 %vm821_vm2, %v2146_v34  ;;  %v2454_v52 = vld [vmem:[#allocation3 + $0x6a] sm:$0xf]  ;;  %v5345_v24 = vld [vmem:[#allocation10 + $0x50] sm:$0xf0]  ;;  %v2821_v34 = vpack.c.bf16 %v2809_v55, %v2687_v14 }
 0x2d7   : > { %4810 = vmatmul.msk.bf16.gmra.mxu0 %vm821_vm2, %v2120_v35  ;;  %v2461_v21 = vpack.c.bf16 %v2454_v52, %v2454_v52  ;;  %v2564_v59 = vld [vmem:[#allocation3 + $0xb] sm:$0xff]  ;;  %v2934_v52 = vld [vmem:[#allocation3 + $0x35] sm:$0xff] }
 0x2d8   : > { %4829 = vmatmul.msk.bf16.gmra.mxu1 %vm821_vm2, %v2337_v28  ;;  %v2003_v30 = vmax.f32 %v1990_v1, 0.0  ;;  %v2686_v49 = vld [vmem:[#allocation3 + $0xc] sm:$0xff]  ;;  %v2577_v19 = vpack.c.bf16 %v2565_v29, %v2564_v59  ;;  %v2931_v28 = vld [vmem:[#allocation3 + $0x1d] sm:$0xff] }
 0x2d9   : > { %v2699_v16 = vpack.c.bf16 %v2687_v14, %v2686_v49  ;;  %v2943_v1 = vpack.c.bf16 %v2931_v28, %v2930_v39  ;;  %v2568_v63 = vld [vmem:[#allocation3 + $0x2b] sm:$0xff]  ;;  %v5314_v39 = vld [vmem:[#allocation7 + $0xc0] sm:$0xff] }
 0x2da   : > { %v2088_v22 = vmul.f32 %v2071_v31, %v2003_v30  ;;  %v2689_v31 = vld [vmem:[#allocation3 + $0x24] sm:$0xff]  ;;  %v5339_v59 = vld [vmem:[#allocation10 + $0x20] sm:$0xf0]  ;;  %3125 = vmatpush.bf16.msrb.mxu2 %v5314_v39 }
 0x2db   : > { %v1956_v4 = vpop.f32.mrf.mxu3  ;;  %v2451_v42 = vld [vmem:[#allocation3 + $0x52] sm:$0xff] }
 0x2dc   : > { %2100 = vst.msk [vmem:[#allocation3 + $0x5b] sm:$0xff] %vm821_vm2, %v2088_v22  ;;  %v1974_v6 = vadd.f32 %v1956_v4, %v1844_v2  ;;  %v2459_v53 = vpack.c.bf16 %v2451_v42, %v2329_v26  ;;  %v2139_v17 = vld [vmem:[#allocation3 + $0x51] sm:$0xff]  ;;  %v2566_v22 = vld [vmem:[#allocation3 + $0x1b] sm:$0xff] }
 0x2dd   : > { %v2113_v20 = vld [vmem:[#allocation3 + $0x50] sm:$0xff] }
 0x2de   : > { %v1991_v27 = vadd.f32 %v6279_v54, %v1974_v6  ;;  %4848 = vmatmul.msk.bf16.gmra.mxu3 %vm821_vm2, %v2459_v53  ;;  %v4984_v26 = vld [vmem:[#allocation10 + $0x48] sm:$0xf]  ;;  %v2700_v6 = vpack.c.bf16 %v2689_v31, %v2809_v55  ;;  %v2822_v53 = vpack.c.bf16 %v2811_v32, %v2689_v31  ;;  %v4960_v55 = vld [vmem:[#allocation10 + $0x18] sm:$0xf] }
 0x2df   : > { %v4985_v35 = vor.u32 %v5345_v24, %v4984_v26  ;;  %v4961_v49 = vor.u32 %v5339_v59, %v4960_v55  ;;  %v2571_v26 = vld [vmem:[#allocation3 + $0x43] sm:$0xff]  ;;  %v2815_v28 = vld [vmem:[#allocation3 + $0x4c] sm:$0xff] }
 0x2e0   : > { %v2004_v23 = vmax.f32 %v1991_v27, 0.0  ;;  %v2693_v24 = vld [vmem:[#allocation3 + $0x44] sm:$0xff]  ;;  %v2580_v31 = vpack.c.bf16 %v2571_v26, %v2570_v11 }
 0x2e1   : > { %3381 = vmatpush.bf16.msrb.mxu0 %v4985_v35 }
 0x2e2   : > { %v2089_v38 = vmul.f32 %v2076_v60, %v2004_v23  ;;  %v6378_v45 = vpack.c.bf16 %v2004_v23, %v2003_v30  ;;  %v2567_v30 = vld [vmem:[#allocation3 + $0x23] sm:$0xff]  ;;  %v4972_v23 = vld [vmem:[#allocation10 + $0x30] sm:$0xf] }
 0x2e3   : > { %v1959_v46 = vpop.f32.mrf.mxu3  ;;  %v2140_v36 = vld [vmem:[#allocation3 + $0x59] sm:$0xff]  ;;  %v5342_v60 = vld [vmem:[#allocation10 + $0x38] sm:$0xf0] }
 0x2e4   : > { %v2114_v33 = vld [vmem:[#allocation3 + $0x58] sm:$0xff]  ;;  %2102 = vst.msk [vmem:[#allocation3 + $0x63] sm:$0x1] %vm2101_vm4, %v2089_v38  ;;  %v6381_v54 = vadd.f32 %v1959_v46, %v6272_v0  ;;  %v2147_v47 = vpack.c.bf16 %v2140_v36, %v2139_v17  ;;  %v2932_v38 = vld [vmem:[#allocation3 + $0x25] sm:$0xff]  ;;  %v4973_v17 = vor.u32 %v5342_v60, %v4972_v23 }
 0x2e5   : > { %v2331_v10 = vld [vmem:[#allocation3 + $0x5a] sm:$0xff]  ;;  %v2121_v50 = vpack.c.bf16 %v2114_v33, %v2113_v20  ;;  %v2944_v46 = vpack.c.bf16 %v2933_v44, %v2932_v38 }
 0x2e6   : > { %v2338_v51 = vpack.c.bf16 %v2331_v10, %v2451_v42  ;;  %4792 = vmatmul.msk.bf16.gmra.mxu2 %vm821_vm2, %v2147_v47  ;;  %v2578_v42 = vpack.c.bf16 %v2567_v30, %v2566_v22  ;;  %3382 = vmatpush.bf16.msrb.mxu0 %v4973_v17  ;;  %v2569_v47 = vld [vmem:[#allocation3 + $0x33] sm:$0xff]  ;;  %v2824_v22 = vpack.c.bf16 %v2815_v28, %v2693_v24 }
 0x2e7   : > { %4811 = vmatmul.msk.bf16.gmra.mxu0 %vm821_vm2, %v2121_v50  ;;  %v2691_v50 = vld [vmem:[#allocation3 + $0x34] sm:$0xff]  ;;  %v2579_v7 = vpack.c.bf16 %v2569_v47, %v2568_v63 }
 0x2e8   : > { %4830 = vmatmul.msk.bf16.gmra.mxu1 %vm821_vm2, %v2338_v51 }
 0x2ea   : > { %3383 = vmatpush.bf16.msrb.mxu0 %v4961_v49  ;;  %v2938_v49 = vld [vmem:[#allocation3 + $0x55] sm:$0xff] }
 0x2eb   : > { %v2453_v0 = vld [vmem:[#allocation3 + $0x62] sm:$0xff]  ;;  %v1961_v57 = vpop.f32.mrf.mxu3 }
 0x2ec   : > { %v2460_v48 = vpack.c.bf16 %v2453_v0, %v2331_v10  ;;  %v2141_v43 = vld [vmem:[#allocation3 + $0x61] sm:$0xf]  ;;  %v2701_v0 = vpack.c.bf16 %v2691_v50, %v2811_v32  ;;  %v2702_v32 = vpack.c.bf16 %v2693_v24, %v2813_v58  ;;  %v5341_v24 = vld [vmem:[#allocation10 + $0x34] sm:$0xf] }
 0x2ed   : > { %v2115_v13 = vld [vmem:[#allocation3 + $0x60] sm:$0xf]  ;;  %v2148_v12 = vpack.c.bf16 %v2141_v43, %v2141_v43 }
 0x2ee   : > { %4849 = vmatmul.msk.bf16.gmra.mxu3 %vm821_vm2, %v2460_v48  ;;  %v2332_v5 = vld [vmem:[#allocation3 + $0x62] sm:$0xf]  ;;  %v2122_v41 = vpack.c.bf16 %v2115_v13, %v2115_v13  ;;  %v2823_v48 = vpack.c.bf16 %v2813_v58, %v2691_v50  ;;  %v2572_v50 = vld [vmem:[#allocation3 + $0x4b] sm:$0xff] }
 0x2ef   : > { %v2339_v3 = vpack.c.bf16 %v2332_v5, %v2332_v5  ;;  %v2935_v5 = vld [vmem:[#allocation3 + $0x3d] sm:$0xff] }
 0x2f0   : > { %v2945_v29 = vpack.c.bf16 %v2935_v5, %v2934_v52 }
 0x2f6   : > { %4793 = vmatmul.msk.bf16.gmra.mxu2 %vm821_vm2, %v2148_v12 }
 0x2f7   : > { %4812 = vmatmul.msk.bf16.gmra.mxu0 %vm821_vm2, %v2122_v41 }
 0x2f8   : > { %4831 = vmatmul.msk.bf16.gmra.mxu1 %vm821_vm2, %v2339_v3 }
 0x2fe   : > { %4850 = vmatmul.msk.bf16.gmra.mxu3 %vm821_vm2, %v2461_v21 }
 0x306   : > { %4863 = vmatmul.msk.bf16.vlgmr.msra.gmra.mxu2 %vm821_vm2, %v2577_v19 }
 0x307   : > { %4882 = vmatmul.msk.bf16.vlgmr.msra.gmra.mxu0 %vm821_vm2, %v2699_v16 }
 0x308   : > { %4901 = vmatmul.msk.bf16.vlgmr.msrb.gmra.mxu1 %vm821_vm2, %v2821_v34 }
 0x30e   : > { %4920 = vmatmul.msk.bf16.vlgmr.msrb.gmra.mxu3 %vm821_vm2, %v2943_v1 }
 0x314   : > { %v2286_v2 = vpop.f32.mrf.mxu0 }
 0x315   : > { %v2395_v4 = vpop.f32.mrf.mxu1 }
 0x316   : > { %4864 = vmatmul.msk.bf16.gmra.mxu2 %vm821_vm2, %v2578_v42 }
 0x317   : > { %4883 = vmatmul.msk.bf16.gmra.mxu0 %vm821_vm2, %v2700_v6  ;;  %v2937_v6 = vld [vmem:[#allocation3 + $0x4d] sm:$0xff] }
 0x318   : > { %4902 = vmatmul.msk.bf16.gmra.mxu1 %vm821_vm2, %v2822_v53 }
 0x319   : > { %v2204_v27 = vpop.f32.mrf.mxu2 }
 0x31a   : > { %v2287_v15 = vadd.f32 %v2286_v2, %v2204_v27 }
 0x31c   : > { %v2288_v37 = vpop.f32.mrf.mxu0  ;;  %v2429_v36 = vadd.f32 %v2395_v4, %v2287_v15  ;;  %v2936_v15 = vld [vmem:[#allocation3 + $0x45] sm:$0xff] }
 0x31d   : > { %v2397_v20 = vpop.f32.mrf.mxu1  ;;  %v2946_v60 = vpack.c.bf16 %v2937_v6, %v2936_v15  ;;  %v2697_v15 = vld [vmem:[#allocation3 + $0x64] sm:$0xff] }
 0x31e   : > { %4921 = vmatmul.msk.bf16.gmra.mxu3 %vm821_vm2, %v2944_v46  ;;  %v2695_v46 = vld [vmem:[#allocation3 + $0x54] sm:$0xff] }
 0x321   : > { %v2206_v33 = vpop.f32.mrf.mxu2  ;;  %v2517_v10 = vpop.f32.mrf.mxu3 }
 0x322   : > { %v2289_v51 = vadd.f32 %v2288_v37, %v2206_v33  ;;  %v6399_v56 = vadd.f32 %v2517_v10, %v2429_v36  ;;  %v6417_v10 = vld [vmem:[#allocation3 + $0x5c] sm:$0xff] }
 0x324   : > { %v2291_v61 = vpop.f32.mrf.mxu0  ;;  %v2430_v57 = vadd.f32 %v2397_v20, %v2289_v51  ;;  %v2573_v20 = vld [vmem:[#allocation3 + $0x53] sm:$0xff] }
 0x325   : > { %v2400_v18 = vpop.f32.mrf.mxu1  ;;  %v2581_v58 = vpack.c.bf16 %v2573_v20, %v2572_v50  ;;  %v5335_v50 = vld [vmem:[#allocation10 + $0x4] sm:$0xf] }
 0x326   : > { %4865 = vmatmul.msk.bf16.gmra.mxu2 %vm821_vm2, %v2579_v7  ;;  %v4998_v7 = vld [vmem:[#allocation10 + $0x6c] sm:$0xf0] }
 0x327   : > { %4884 = vmatmul.msk.bf16.gmra.mxu0 %vm821_vm2, %v2701_v0  ;;  %v2825_v0 = vpack.c.bf16 %v6417_v10, %v2695_v46 }
 0x328   : > { %4903 = vmatmul.msk.bf16.gmra.mxu1 %vm821_vm2, %v2823_v48  ;;  %v4948_v48 = vld [vmem:[#allocation10] sm:$0xf] }
 0x329   : > { %v2209_v43 = vpop.f32.mrf.mxu2  ;;  %v2519_v13 = vpop.f32.mrf.mxu3 }
 0x32a   : > { %v2292_v12 = vadd.f32 %v2291_v61, %v2209_v43  ;;  %v6404_v41 = vadd.f32 %v2519_v13, %v2430_v57  ;;  %v2703_v61 = vpack.c.bf16 %v2695_v46, %v2815_v28  ;;  %v5336_v43 = vld [vmem:[#allocation10 + $0x8] sm:$0xf0]  ;;  %v5004_v28 = vld [vmem:[#allocation10 + $0x68] sm:$0xf] }
 0x32b   : > { %v5344_v13 = vld [vmem:[#allocation10 + $0x4c] sm:$0xf]  ;;  %v4949_v5 = vor.u32 %v5336_v43, %v4948_v48  ;;  %v5333_v48 = vld [vmem:[#allocation9 + $0x80] sm:$0xf0] }
 0x32c   : > { %v2293_v3 = vpop.f32.mrf.mxu0  ;;  %v2431_v14 = vadd.f32 %v2400_v18, %v2292_v12  ;;  %v5347_v18 = vld [vmem:[#allocation10 + $0x64] sm:$0xf]  ;;  %v4986_v12 = vld [vmem:[#allocation10 + $0x54] sm:$0xf0] }
 0x32d   : > { %v2402_v21 = vpop.f32.mrf.mxu1  ;;  %v5001_v57 = vor.u32 %v5347_v18, %v4998_v7  ;;  %3384 = vmatpush.bf16.msrb.mxu0 %v4949_v5  ;;  %v2940_v18 = vld [vmem:[#allocation3 + $0x65] sm:$0xff]  ;;  %v2941_v7 = vld [vmem:[#allocation3 + $0x6d] sm:$0xff] }
 0x32e   : > { %4922 = vmatmul.msk.bf16.gmra.mxu3 %vm821_vm2, %v2945_v29  ;;  %v4989_v29 = vor.u32 %v5344_v13, %v4986_v12  ;;  %v5340_v13 = vld [vmem:[#allocation10 + $0x28] sm:$0xf0] }
 0x32f   : > { %3420 = vmatpush.bf16.msra.mxu1 %v5001_v57  ;;  %v5089_v57 = vld [vmem:[#allocation9 + $0x78] sm:$0xf] }
 0x330   : > { %v5090_v43 = vor.u32 %v5333_v48, %v5089_v57  ;;  %v3053_v57 = vld [vmem:[#allocation3 + $0x1e] sm:$0xff] }
 0x331   : > { %v2211_v19 = vpop.f32.mrf.mxu2  ;;  %v2522_v16 = vpop.f32.mrf.mxu3 }
 0x332   : > { %v2294_v34 = vadd.f32 %v2293_v3, %v2211_v19  ;;  %v6407_v35 = vadd.f32 %v2522_v16, %v2431_v14  ;;  %3616 = vmatpush.bf16.msra.mxu2 %v5090_v43 }
 0x333   : > { %3421 = vmatpush.bf16.msra.mxu1 %v4989_v29  ;;  %v2948_v29 = vpack.c.bf16 %v2941_v7, %v2940_v18 }
 0x334   : > { %v2296_v1 = vpop.f32.mrf.mxu0  ;;  %v2432_v2 = vadd.f32 %v2402_v21, %v2294_v34  ;;  %v2939_v21 = vld [vmem:[#allocation3 + $0x5d] sm:$0xff]  ;;  %v4974_v34 = vld [vmem:[#allocation10 + $0x3c] sm:$0xf0] }
 0x335   : > { %v2405_v30 = vpop.f32.mrf.mxu1  ;;  %v2947_v16 = vpack.c.bf16 %v2939_v21, %v2938_v49  ;;  %v4977_v39 = vor.u32 %v5341_v24, %v4974_v34  ;;  %v5091_v34 = vld [vmem:[#allocation9 + $0x84] sm:$0xf0] }
 0x336   : > { %4866 = vmatmul.msk.bf16.gmra.mxu2 %vm821_vm2, %v2580_v31  ;;  %v4962_v31 = vld [vmem:[#allocation10 + $0x24] sm:$0xf0] }
 0x337   : > { %4885 = vmatmul.msk.bf16.gmra.mxu0 %vm821_vm2, %v2702_v32  ;;  %v4992_v32 = vld [vmem:[#allocation10 + $0x50] sm:$0xf]  ;;  %3422 = vmatpush.bf16.msra.mxu1 %v4977_v39  ;;  %v2576_v39 = vld [vmem:[#allocation3 + $0x6b] sm:$0xf] }
 0x338   : > { %4904 = vmatmul.msk.bf16.gmra.mxu1 %vm821_vm2, %v2824_v22  ;;  %v2819_v22 = vld [vmem:[#allocation3 + $0x6c] sm:$0xff] }
 0x339   : > { %v2214_v4 = vpop.f32.mrf.mxu2  ;;  %v2524_v42 = vpop.f32.mrf.mxu3 }
 0x33a   : > { %v2297_v53 = vadd.f32 %v2296_v1, %v2214_v4  ;;  %v6412_v27 = vadd.f32 %v2524_v42, %v2432_v2  ;;  %v5349_v1 = vld [vmem:[#allocation10 + $0x70] sm:$0xf0]  ;;  %v5346_v2 = vld [vmem:[#allocation10 + $0x58] sm:$0xf0] }
 0x33b   : > { %v5005_v11 = vor.u32 %v5349_v1, %v5004_v28  ;;  %v4993_v42 = vor.u32 %v5346_v2, %v4992_v32  ;;  %v2698_v1 = vld [vmem:[#allocation3 + $0x6c] sm:$0xf] }
 0x33c   : > { %v2298_v44 = vpop.f32.mrf.mxu0  ;;  %v2433_v37 = vadd.f32 %v2405_v30, %v2297_v53  ;;  %v5338_v30 = vld [vmem:[#allocation10 + $0x1c] sm:$0xf] }
 0x33d   : > { %v2407_v23 = vpop.f32.mrf.mxu1  ;;  %3460 = vmatpush.bf16.msra.mxu3 %v5005_v11  ;;  %v4965_v4 = vor.u32 %v5338_v30, %v4962_v31  ;;  %v2820_v11 = vld [vmem:[#allocation3 + $0x74] sm:$0xf] }
 0x33e   : > { %4923 = vmatmul.msk.bf16.gmra.mxu3 %vm821_vm2, %v2946_v60 }
 0x33f   : > { %3423 = vmatpush.bf16.msra.mxu1 %v4965_v4  ;;  %v2705_v4 = vpack.c.bf16 %v2698_v1, %v2698_v1  ;;  %v3055_v1 = vld [vmem:[#allocation3 + $0x2e] sm:$0xff] }
 0x341   : > { %v2216_v38 = vpop.f32.mrf.mxu2  ;;  %v2527_v17 = vpop.f32.mrf.mxu3  ;;  %3461 = vmatpush.bf16.msra.mxu3 %v4993_v42 }
 0x342   : > { %v2299_v36 = vadd.f32 %v2298_v44, %v2216_v38  ;;  %v6415_v33 = vadd.f32 %v2527_v17, %v2433_v37  ;;  %v2575_v44 = vld [vmem:[#allocation3 + $0x63] sm:$0xff]  ;;  %v2574_v38 = vld [vmem:[#allocation3 + $0x5b] sm:$0xff]  ;;  %v2826_v17 = vpack.c.bf16 %v2819_v22, %v2697_v15  ;;  %v2583_v22 = vpack.c.bf16 %v2576_v39, %v2576_v39 }
 0x343   : > { %v2582_v46 = vpack.c.bf16 %v2575_v44, %v2574_v38 }
 0x344   : > { %v2301_v47 = vpop.f32.mrf.mxu0  ;;  %v2434_v63 = vadd.f32 %v2407_v23, %v2299_v36  ;;  %v2704_v36 = vpack.c.bf16 %v2697_v15, %v6417_v10  ;;  %v4968_v10 = vld [vmem:[#allocation10 + $0x20] sm:$0xf]  ;;  %v2942_v15 = vld [vmem:[#allocation3 + $0x75] sm:$0xf] }
 0x345   : > { %v2410_v51 = vpop.f32.mrf.mxu1 }
 0x346   : > { %4867 = vmatmul.msk.bf16.gmra.mxu2 %vm821_vm2, %v2581_v58  ;;  %v4980_v58 = vld [vmem:[#allocation10 + $0x38] sm:$0xf] }
 0x347   : > { %4886 = vmatmul.msk.bf16.gmra.mxu0 %vm821_vm2, %v2703_v61 }
 0x348   : > { %4905 = vmatmul.msk.bf16.gmra.mxu1 %vm821_vm2, %v2825_v0 }
 0x349   : > { %v2219_v3 = vpop.f32.mrf.mxu2  ;;  %v2529_v52 = vpop.f32.mrf.mxu3 }
 0x34a   : > { %v2302_v14 = vadd.f32 %v2301_v47, %v2219_v3  ;;  %v6423_v55 = vadd.f32 %v2529_v52, %v2434_v63  ;;  %v5343_v63 = vld [vmem:[#allocation10 + $0x40] sm:$0xf0]  ;;  %v4969_v3 = vor.u32 %v5340_v13, %v4968_v10  ;;  %v3052_v13 = vld [vmem:[#allocation3 + $0x16] sm:$0xff] }
 0x34b   : > { %v4981_v0 = vor.u32 %v5343_v63, %v4980_v58  ;;  %v5079_v63 = vld [vmem:[#allocation9 + $0x6c] sm:$0xf0] }
 0x34c   : > { %v2303_v59 = vpop.f32.mrf.mxu0  ;;  %v2435_v26 = vadd.f32 %v2410_v51, %v2302_v14  ;;  %v4950_v51 = vld [vmem:[#allocation10 + $0xc] sm:$0xf0] }
 0x34d   : > { %v2412_v19 = vpop.f32.mrf.mxu1  ;;  %v4953_v61 = vor.u32 %v5335_v50, %v4950_v51  ;;  %3462 = vmatpush.bf16.msra.mxu3 %v4981_v0  ;;  %v5077_v50 = vld [vmem:[#allocation9 + $0x60] sm:$0xf]  ;;  %v5330_v51 = vld [vmem:[#allocation9 + $0x68] sm:$0xf0] }
 0x34e   : > { %4924 = vmatmul.msk.bf16.gmra.mxu3 %vm821_vm2, %v2947_v16  ;;  %v5337_v16 = vld [vmem:[#allocation10 + $0x10] sm:$0xf0]  ;;  %v5078_v58 = vor.u32 %v5330_v51, %v5077_v50 }
 0x34f   : > { %3424 = vmatpush.bf16.msra.mxu1 %v4953_v61  ;;  %v5329_v61 = vld [vmem:[#allocation9 + $0x64] sm:$0xf] }
 0x350   : > { %3617 = vmatpush.bf16.msra.mxu2 %v5078_v58  ;;  %v5082_v18 = vor.u32 %v5329_v61, %v5079_v63  ;;  %v3057_v51 = vld [vmem:[#allocation3 + $0x3e] sm:$0xff] }
 0x351   : > { %v2221_v6 = vpop.f32.mrf.mxu2  ;;  %v2532_v53 = vpop.f32.mrf.mxu3  ;;  %3463 = vmatpush.bf16.msra.mxu3 %v4969_v3 }
 0x352   : > { %v2304_v23 = vadd.f32 %v2303_v59, %v2221_v6  ;;  %v6426_v60 = vadd.f32 %v2532_v53, %v2435_v26  ;;  %v5332_v26 = vld [vmem:[#allocation9 + $0x7c] sm:$0xf]  ;;  %v2827_v6 = vpack.c.bf16 %v2820_v11, %v2820_v11 }
 0x353   : > { %v5094_v28 = vor.u32 %v5332_v26, %v5091_v34  ;;  %v5065_v26 = vld [vmem:[#allocation9 + $0x48] sm:$0xf] }
 0x354   : > { %v2306_v37 = vpop.f32.mrf.mxu0  ;;  %v2436_v47 = vadd.f32 %v2412_v19, %v2304_v23  ;;  %v4956_v19 = vld [vmem:[#allocation10 + $0x8] sm:$0xf] }
 0x355   : > { %v2415_v20 = vpop.f32.mrf.mxu1  ;;  %v4957_v24 = vor.u32 %v5337_v16, %v4956_v19  ;;  %3656 = vmatpush.bf16.msra.mxu0 %v5094_v28 }
 0x356   : > { %4868 = vmatmul.msk.bf16.gmra.mxu2 %vm821_vm2, %v2582_v46 }
 0x357   : > { %4887 = vmatmul.msk.bf16.gmra.mxu0 %vm821_vm2, %v2704_v36  ;;  %3464 = vmatpush.bf16.msra.mxu3 %v4957_v24  ;;  %v5327_v24 = vld [vmem:[#allocation9 + $0x50] sm:$0xf0] }
 0x358   : > { %4906 = vmatmul.msk.bf16.gmra.mxu1 %vm821_vm2, %v2826_v17  ;;  %v5066_v34 = vor.u32 %v5327_v24, %v5065_v26 }
 0x359   : > { %v2224_v5 = vpop.f32.mrf.mxu2  ;;  %v2534_v12 = vpop.f32.mrf.mxu3  ;;  %3657 = vmatpush.bf16.msra.mxu0 %v5082_v18 }
 0x35a   : > { %v2307_v52 = vadd.f32 %v2306_v37, %v2224_v5  ;;  %v6432_v21 = vadd.f32 %v2534_v12, %v2436_v47  ;;  %v3065_v12 = vpack.c.bf16 %v3053_v57, %v3052_v13  ;;  %3618 = vmatpush.bf16.msra.mxu2 %v5066_v34  ;;  %v5323_v57 = vld [vmem:[#allocation9 + $0x34] sm:$0xf] }
 0x35c   : > { %v2308_v14 = vpop.f32.mrf.mxu0  ;;  %v2437_v49 = vadd.f32 %v2415_v20, %v2307_v52  ;;  %v2949_v20 = vpack.c.bf16 %v2942_v15, %v2942_v15 }
 0x35d   : > { %v2417_v59 = vpop.f32.mrf.mxu1 }
 0x35e   : > { %4925 = vmatmul.msk.bf16.gmra.mxu3 %vm821_vm2, %v2948_v29 }
 0x361   : > { %v2226_v30 = vpop.f32.mrf.mxu2  ;;  %v2537_v31 = vpop.f32.mrf.mxu3 }
 0x362   : > { %v2309_v32 = vadd.f32 %v2308_v14, %v2226_v30  ;;  %v6435_v2 = vadd.f32 %v2537_v31, %v2437_v49  ;;  %v3054_v31 = vld [vmem:[#allocation3 + $0x26] sm:$0xff] }
 0x364   : > { %v2311_v42 = vpop.f32.mrf.mxu0  ;;  %v2438_v44 = vadd.f32 %v2417_v59, %v2309_v32 }
 0x365   : > { %v2420_v53 = vpop.f32.mrf.mxu1 }
 0x366   : > { %4869 = vmatmul.msk.bf16.gmra.mxu2 %vm821_vm2, %v2583_v22  ;;  %v3066_v22 = vpack.c.bf16 %v3055_v1, %v3054_v31  ;;  %v5321_v31 = vld [vmem:[#allocation9 + $0x20] sm:$0xf0] }
 0x367   : > { %4888 = vmatmul.msk.bf16.gmra.mxu0 %vm821_vm2, %v2705_v4  ;;  %v5326_v4 = vld [vmem:[#allocation9 + $0x4c] sm:$0xf] }
 0x368   : > { %4907 = vmatmul.msk.bf16.gmra.mxu1 %vm821_vm2, %v2827_v6 }
 0x369   : > { %v2229_v23 = vpop.f32.mrf.mxu2  ;;  %v2539_v37 = vpop.f32.mrf.mxu3 }
 0x36a   : > { %v2312_v38 = vadd.f32 %v2311_v42, %v2229_v23  ;;  %v6440_v17 = vadd.f32 %v2539_v37, %v2438_v44  ;;  %v5067_v42 = vld [vmem:[#allocation9 + $0x54] sm:$0xf0] }
 0x36b   : > { %v5070_v6 = vor.u32 %v5326_v4, %v5067_v42 }
 0x36c   : > { %v2313_v46 = vpop.f32.mrf.mxu0  ;;  %v2439_v47 = vadd.f32 %v2420_v53, %v2312_v38 }
 0x36d   : > { %v2422_v36 = vpop.f32.mrf.mxu1  ;;  %3658 = vmatpush.bf16.msra.mxu0 %v5070_v6 }
 0x36e   : > { %4926 = vmatmul.msk.bf16.gmra.mxu3 %vm821_vm2, %v2949_v20  ;;  %v5053_v20 = vld [vmem:[#allocation9 + $0x30] sm:$0xf] }
 0x371   : > { %v2231_v7 = vpop.f32.mrf.mxu2  ;;  %v2542_v0 = vpop.f32.mrf.mxu3 }
 0x372   : > { %v2314_v48 = vadd.f32 %v2313_v46, %v2231_v7  ;;  %v6443_v10 = vadd.f32 %v2542_v0, %v2439_v47  ;;  %v5324_v46 = vld [vmem:[#allocation9 + $0x38] sm:$0xf0] }
 0x374   : > { %v2316_v43 = vpop.f32.mrf.mxu0  ;;  %v2440_v3 = vadd.f32 %v2422_v36, %v2314_v48  ;;  %v5054_v36 = vor.u32 %v5324_v46, %v5053_v20  ;;  %v5055_v48 = vld [vmem:[#allocation9 + $0x3c] sm:$0xf0]  ;;  %v5334_v20 = vld [vmem:[#allocation9 + $0x88] sm:$0xf0] }
 0x375   : > { %v2425_v5 = vpop.f32.mrf.mxu1 }
 0x376   : > { %4939 = vmatmul.msk.bf16.vlgmr.msrb.gmra.mxu2 %vm821_vm2, %v3065_v12 }
 0x377   : > { %5006 = vmatmul.msk.bf16.vlgmr.msrb.gmra.mxu0 %vm3355_vm5, %v6289_v25  ;;  %3619 = vmatpush.bf16.msra.mxu2 %v5054_v36 }
 0x378   : > { %5013 = vmatmul.msk.bf16.vlgmr.msra.gmra.mxu1 %vm3355_vm5, %v6289_v25 }
 0x379   : > { %v2234_v52 = vpop.f32.mrf.mxu2  ;;  %v2544_v29 = vpop.f32.mrf.mxu3 }
 0x37a   : > { %v2317_v14 = vadd.f32 %v2316_v43, %v2234_v52  ;;  %v6450_v59 = vadd.f32 %v2544_v29, %v2440_v3 }
 0x37c   : > { %v2318_v49 = vpop.f32.mrf.mxu0  ;;  %v2441_v16 = vadd.f32 %v2425_v5, %v2317_v14 }
 0x37d   : > { %v2427_v19 = vpop.f32.mrf.mxu1 }
 0x37e   : > { %5020 = vmatmul.msk.bf16.vlgmr.msra.gmra.mxu3 %vm3355_vm5, %v6289_v25 }
 0x381   : > { %v2236_v28 = vpop.f32.mrf.mxu2  ;;  %v2547_v39 = vpop.f32.mrf.mxu3 }
 0x382   : > { %v6454_v11 = vadd.f32 %v2547_v39, %v2441_v16  ;;  %v3059_v16 = vld [vmem:[#allocation3 + $0x4e] sm:$0xff]  ;;  %v3058_v28 = vld [vmem:[#allocation3 + $0x46] sm:$0xff] }
 0x383   : > { %v3068_v1 = vpack.c.bf16 %v3059_v16, %v3058_v28  ;;  %v5317_v16 = vld [vmem:[#allocation9 + $0x4] sm:$0xf] }
 0x384   : > { %v2761_v30 = vpop.f32.mrf.mxu0 }
 0x385   : > { %v2883_v32 = vpop.f32.mrf.mxu1 }
 0x386   : > { %4940 = vmatmul.msk.bf16.gmra.mxu2 %vm821_vm2, %v3066_v22  ;;  %v5043_v22 = vld [vmem:[#allocation9 + $0x24] sm:$0xf0] }
 0x387   : > { %5007 = vmatmul.msk.bf16.gmra.mxu0 %vm3355_vm5, %v6308_v40 }
 0x388   : > { %5014 = vmatmul.msk.bf16.gmra.mxu1 %vm3355_vm5, %v6308_v40 }
 0x389   : > { %v2549_v25 = vpop.f32.mrf.mxu3  ;;  %v2639_v53 = vpop.f32.mrf.mxu2 }
 0x38a   : > { %v2673_v44 = vadd.f32 %v2639_v53, %v6399_v56  ;;  %v3056_v56 = vld [vmem:[#allocation3 + $0x36] sm:$0xff] }
 0x38b   : > { %v3067_v0 = vpack.c.bf16 %v3057_v51, %v3056_v56 }
 0x38c   : > { %v2763_v15 = vpop.f32.mrf.mxu0  ;;  %v2795_v23 = vadd.f32 %v2761_v30, %v2673_v44  ;;  %v5041_v30 = vld [vmem:[#allocation9 + $0x18] sm:$0xf] }
 0x38d   : > { %v2885_v37 = vpop.f32.mrf.mxu1 }
 0x38e   : > { %5021 = vmatmul.msk.bf16.gmra.mxu3 %vm3355_vm5, %v6308_v40  ;;  %v2917_v38 = vadd.f32 %v2883_v32, %v2795_v23  ;;  %v5058_v40 = vor.u32 %v5323_v57, %v5055_v48  ;;  %v5042_v32 = vor.u32 %v5321_v31, %v5041_v30  ;;  %v5331_v57 = vld [vmem:[#allocation9 + $0x70] sm:$0xf0]  ;;  %v5049_v30 = vld [vmem:[#allocation9 + $0x20] sm:$0xf]  ;;  %v5322_v31 = vld [vmem:[#allocation9 + $0x28] sm:$0xf0] }
 0x390   : > { %3659 = vmatpush.bf16.msra.mxu0 %v5058_v40  ;;  %3620 = vmatpush.bf16.msra.mxu2 %v5042_v32  ;;  %v5318_v40 = vld [vmem:[#allocation9 + $0x8] sm:$0xf0] }
 0x391   : > { %v2641_v47 = vpop.f32.mrf.mxu2  ;;  %v3005_v50 = vpop.f32.mrf.mxu3  ;;  %v3062_v32 = vld [vmem:[#allocation3 + $0x66] sm:$0xff] }
 0x392   : > { %v2674_v58 = vadd.f32 %v2641_v47, %v6404_v41  ;;  %v6465_v61 = vadd.f32 %v3005_v50, %v2917_v38  ;;  %v5097_v38 = vld [vmem:[#allocation9 + $0x80] sm:$0xf]  ;;  %v3061_v50 = vld [vmem:[#allocation3 + $0x5e] sm:$0xff] }
 0x393   : > { %v5098_v46 = vor.u32 %v5334_v20, %v5097_v38  ;;  %v5360_v20 = vld [vmem:[#allocation12 + $0x50] sm:$0xf0] }
 0x394   : > { %v2766_v63 = vpop.f32.mrf.mxu0  ;;  %v2796_v18 = vadd.f32 %v2763_v15, %v2674_v58 }
 0x395   : > { %v2888_v7 = vpop.f32.mrf.mxu1  ;;  %3696 = vmatpush.bf16.msrb.mxu1 %v5098_v46  ;;  %v5359_v46 = vld [vmem:[#allocation12 + $0x4c] sm:$0xf] }
 0x396   : > { %4941 = vmatmul.msk.bf16.gmra.mxu2 %vm821_vm2, %v3067_v0  ;;  %v2918_v43 = vadd.f32 %v2885_v37, %v2796_v18  ;;  %v5085_v0 = vld [vmem:[#allocation9 + $0x68] sm:$0xf] }
 0x397   : > { %5008 = vmatmul.msk.bf16.gmra.mxu0 %vm3355_vm5, %v6327_v62  ;;  %v5086_v48 = vor.u32 %v5331_v57, %v5085_v0 }
 0x398   : > { %5015 = vmatmul.msk.bf16.gmra.mxu1 %vm3355_vm5, %v6327_v62 }
 0x399   : > { %v2644_v41 = vpop.f32.mrf.mxu2  ;;  %v3007_v13 = vpop.f32.mrf.mxu3  ;;  %3697 = vmatpush.bf16.msrb.mxu1 %v5086_v48  ;;  %v5361_v48 = vld [vmem:[#allocation12 + $0x58] sm:$0xf0] }
 0x39a   : > { %v2675_v5 = vadd.f32 %v2644_v41, %v6407_v35  ;;  %v6473_v12 = vadd.f32 %v3007_v13, %v2918_v43  ;;  %v5073_v41 = vld [vmem:[#allocation9 + $0x50] sm:$0xf]  ;;  %v5328_v13 = vld [vmem:[#allocation9 + $0x58] sm:$0xf0] }
 0x39c   : > { %v2768_v3 = vpop.f32.mrf.mxu0  ;;  %v2797_v52 = vadd.f32 %v2766_v63, %v2675_v5  ;;  %v3060_v63 = vld [vmem:[#allocation3 + $0x56] sm:$0xff]  ;;  %v5074_v5 = vor.u32 %v5328_v13, %v5073_v41 }
 0x39d   : > { %v2890_v29 = vpop.f32.mrf.mxu1  ;;  %v3064_v41 = vld [vmem:[#allocation3 + $0x76] sm:$0xf] }
 0x39e   : > { %5022 = vmatmul.msk.bf16.gmra.mxu3 %vm3355_vm5, %v6327_v62  ;;  %v2919_v14 = vadd.f32 %v2888_v7, %v2797_v52  ;;  %v3069_v7 = vpack.c.bf16 %v3061_v50, %v3060_v63  ;;  %3698 = vmatpush.bf16.msrb.mxu1 %v5074_v5 }
 0x3a1   : > { %v2646_v49 = vpop.f32.mrf.mxu2  ;;  %v3010_v19 = vpop.f32.mrf.mxu3 }
 0x3a2   : > { %v2676_v26 = vadd.f32 %v2646_v49, %v6412_v27  ;;  %v6478_v24 = vadd.f32 %v3010_v19, %v2919_v14  ;;  %v5320_v27 = vld [vmem:[#allocation9 + $0x1c] sm:$0xf] }
 0x3a3   : > { %v5046_v4 = vor.u32 %v5320_v27, %v5043_v22 }
 0x3a4   : > { %v2771_v34 = vpop.f32.mrf.mxu0  ;;  %v2798_v39 = vadd.f32 %v2768_v3, %v2676_v26  ;;  %v5031_v26 = vld [vmem:[#allocation9 + $0xc] sm:$0xf0] }
 0x3a5   : > { %v2893_v35 = vpop.f32.mrf.mxu1  ;;  %3660 = vmatpush.bf16.msra.mxu0 %v5046_v4  ;;  %v5034_v28 = vor.u32 %v5317_v16, %v5031_v26 }
 0x3a6   : > { %4942 = vmatmul.msk.bf16.gmra.mxu2 %vm821_vm2, %v3068_v1  ;;  %v2920_v62 = vadd.f32 %v2890_v29, %v2798_v39  ;;  %v5325_v39 = vld [vmem:[#allocation9 + $0x40] sm:$0xf0] }
 0x3a7   : > { %5009 = vmatmul.msk.bf16.gmra.mxu0 %vm3355_vm5, %v6346_v8 }
 0x3a8   : > { %5016 = vmatmul.msk.bf16.gmra.mxu1 %vm3355_vm5, %v6346_v8 }
 0x3a9   : > { %v2649_v42 = vpop.f32.mrf.mxu2  ;;  %v3012_v6 = vpop.f32.mrf.mxu3  ;;  %3661 = vmatpush.bf16.msra.mxu0 %v5034_v28 }
 0x3aa   : > { %v2677_v25 = vadd.f32 %v2649_v42, %v6415_v33  ;;  %v6486_v53 = vadd.f32 %v3012_v6, %v2920_v62  ;;  %v3063_v62 = vld [vmem:[#allocation3 + $0x6e] sm:$0xff] }
 0x3ab   : > { %v3070_v6 = vpack.c.bf16 %v3063_v62, %v3062_v32 }
 0x3ac   : > { %v2773_v44 = vpop.f32.mrf.mxu0  ;;  %v2799_v15 = vadd.f32 %v2771_v34, %v2677_v25  ;;  %v5061_v34 = vld [vmem:[#allocation9 + $0x38] sm:$0xf] }
 0x3ad   : > { %v2895_v23 = vpop.f32.mrf.mxu1  ;;  %v5062_v1 = vor.u32 %v5325_v39, %v5061_v34 }
 0x3ae   : > { %5023 = vmatmul.msk.bf16.gmra.mxu3 %vm3355_vm5, %v6346_v8  ;;  %v2921_v37 = vadd.f32 %v2893_v35, %v2799_v15  ;;  %v5029_v8 = vld [vmem:[#allocation9] sm:$0xf] }
 0x3af   : > { %3699 = vmatpush.bf16.msrb.mxu1 %v5062_v1 }
 0x3b1   : > { %v2651_v36 = vpop.f32.mrf.mxu2  ;;  %v3015_v47 = vpop.f32.mrf.mxu3 }
 0x3b2   : > { %v2678_v51 = vadd.f32 %v2651_v36, %v6423_v55  ;;  %v6491_v33 = vadd.f32 %v3015_v47, %v2921_v37  ;;  %v5030_v55 = vor.u32 %v5318_v40, %v5029_v8  ;;  %v5160_v47 = vld [vmem:[#allocation12 + $0x54] sm:$0xf0]  ;;  %v5166_v8 = vld [vmem:[#allocation12 + $0x50] sm:$0xf] }
 0x3b3   : > { %v5167_v40 = vor.u32 %v5361_v48, %v5166_v8 }
 0x3b4   : > { %v2776_v58 = vpop.f32.mrf.mxu0  ;;  %v2800_v56 = vadd.f32 %v2773_v44, %v2678_v51  ;;  %3621 = vmatpush.bf16.msra.mxu2 %v5030_v55 }
 0x3b5   : > { %v2898_v18 = vpop.f32.mrf.mxu1  ;;  %3926 = vmatpush.bf16.msrb.mxu0 %v5167_v40 }
 0x3b6   : > { %4943 = vmatmul.msk.bf16.gmra.mxu2 %vm821_vm2, %v3069_v7  ;;  %v6496_v43 = vadd.f32 %v2895_v23, %v2800_v56  ;;  %v5319_v23 = vld [vmem:[#allocation9 + $0x10] sm:$0xf0] }
 0x3b7   : > { %5010 = vmatmul.msk.bf16.gmra.mxu0 %vm3355_vm5, %v6365_v9 }
 0x3b8   : > { %5017 = vmatmul.msk.bf16.gmra.mxu1 %vm3355_vm5, %v6365_v9 }
 0x3b9   : > { %v2654_v3 = vpop.f32.mrf.mxu2  ;;  %v6500_v52 = vpop.f32.mrf.mxu3 }
 0x3ba   : > { %v2679_v29 = vadd.f32 %v2654_v3, %v6426_v60  ;;  %v5050_v60 = vor.u32 %v5322_v31, %v5049_v30  ;;  %v5146_v30 = vld [vmem:[#allocation12 + $0x30] sm:$0xf]  ;;  %v5357_v31 = vld [vmem:[#allocation12 + $0x38] sm:$0xf0] }
 0x3bb   : > { %v5147_v32 = vor.u32 %v5357_v31, %v5146_v30  ;;  %v3209_v31 = vld [vmem:[#allocation2 + $0x33] sm:$0xff] }
 0x3bc   : > { %v2778_v14 = vpop.f32.mrf.mxu0  ;;  %v2801_v49 = vadd.f32 %v2776_v58, %v2679_v29  ;;  %3700 = vmatpush.bf16.msrb.mxu1 %v5050_v60  ;;  %v5163_v58 = vor.u32 %v5359_v46, %v5160_v47  ;;  %v5122_v46 = vld [vmem:[#allocation12] sm:$0xf] }
 0x3bd   : > { %v2900_v19 = vpop.f32.mrf.mxu1 }
 0x3be   : > { %5024 = vmatmul.msk.bf16.gmra.mxu3 %vm3355_vm5, %v6365_v9  ;;  %v2923_v35 = vadd.f32 %v2898_v18, %v2801_v49  ;;  %v5037_v9 = vld [vmem:[#allocation9 + $0x8] sm:$0xf]  ;;  %3886 = vmatpush.bf16.msrb.mxu2 %v5163_v58  ;;  %v5351_v58 = vld [vmem:[#allocation12 + $0x8] sm:$0xf0] }
 0x3bf   : > { %v5038_v37 = vor.u32 %v5319_v23, %v5037_v9  ;;  %v5477_v18 = vld [vmem:[%s6982_s5] ss:$0 sm:$0xff]  ;;  %v5134_v9 = vld [vmem:[#allocation12 + $0x18] sm:$0xf]  ;;  %v5354_v23 = vld [vmem:[#allocation12 + $0x20] sm:$0xf0] }
 0x3c0   : > { %v1992_v7 = vadd.f32 %v5477_v18, %v6381_v54 }
 0x3c1   : > { %v2656_v27 = vpop.f32.mrf.mxu2  ;;  %v3020_v22 = vpop.f32.mrf.mxu3  ;;  %3701 = vmatpush.bf16.msrb.mxu1 %v5038_v37 }
 0x3c2   : > { %v2680_v4 = vadd.f32 %v2656_v27, %v6432_v21  ;;  %v6506_v42 = vadd.f32 %v3020_v22, %v2923_v35  ;;  %v5158_v21 = vld [vmem:[#allocation12 + $0x48] sm:$0xf]  ;;  %v3205_v27 = vld [vmem:[#allocation2 + $0x13] sm:$0xff] }
 0x3c3   : > { %v5159_v36 = vor.u32 %v5360_v20, %v5158_v21  ;;  %v5135_v21 = vor.u32 %v5354_v23, %v5134_v9  ;;  %v5356_v20 = vld [vmem:[#allocation12 + $0x34] sm:$0xf] }
 0x3c4   : > { %v2781_v25 = vpop.f32.mrf.mxu0  ;;  %v2802_v44 = vadd.f32 %v2778_v14, %v2680_v4  ;;  %v3071_v14 = vpack.c.bf16 %v3064_v41, %v3064_v41 }
 0x3c5   : > { %v2903_v15 = vpop.f32.mrf.mxu1  ;;  %3846 = vmatpush.bf16.msrb.mxu3 %v5159_v36 }
 0x3c6   : > { %4944 = vmatmul.msk.bf16.gmra.mxu2 %vm821_vm2, %v3070_v6  ;;  %v6511_v38 = vadd.f32 %v2900_v19, %v2802_v44 }
 0x3c7   : > { %5011 = vmatmul.msk.bf16.gmra.mxu0 %vm3355_vm5, %v6378_v45 }
 0x3c8   : > { %5018 = vmatmul.msk.bf16.gmra.mxu1 %vm3355_vm5, %v6378_v45 }
 0x3c9   : > { %v2659_v50 = vpop.f32.mrf.mxu2  ;;  %v6515_v51 = vpop.f32.mrf.mxu3  ;;  %3847 = vmatpush.bf16.msrb.mxu3 %v5147_v32 }
 0x3ca   : > { %v2681_v63 = vadd.f32 %v2659_v50, %v6435_v2  ;;  %v2005_v2 = vmax.f32 %v1992_v7, 0.0  ;;  %v5123_v7 = vor.u32 %v5351_v58, %v5122_v46  ;;  %v3211_v58 = vld [vmem:[#allocation2 + $0x43] sm:$0xff] }
 0x3cc   : > { %v2783_v56 = vpop.f32.mrf.mxu0  ;;  %v2803_v0 = vadd.f32 %v2781_v25, %v2681_v63  ;;  %v3254_v49 = vpack.c.bf16 %v2005_v2, %v2005_v2  ;;  %v3204_v25 = vld [vmem:[#allocation2 + $0xb] sm:$0xff]  ;;  %v5154_v63 = vld [vmem:[#allocation12 + $0x38] sm:$0xf]  ;;  %v3207_v2 = vld [vmem:[#allocation2 + $0x23] sm:$0xff] }
 0x3cd   : > { %v2905_v57 = vpop.f32.mrf.mxu1  ;;  %3848 = vmatpush.bf16.msrb.mxu3 %v5135_v21 }
 0x3ce   : > { %5025 = vmatmul.msk.bf16.gmra.mxu3 %vm3355_vm5, %v6378_v45  ;;  %v2925_v55 = vadd.f32 %v2903_v15, %v2803_v0  ;;  %v3217_v15 = vpack.c.bf16 %v3205_v27, %v3204_v25 }
 0x3d1   : > { %v2661_v13 = vpop.f32.mrf.mxu2  ;;  %v3025_v5 = vpop.f32.mrf.mxu3  ;;  %3849 = vmatpush.bf16.msrb.mxu3 %v5123_v7  ;;  %v3210_v7 = vld [vmem:[#allocation2 + $0x3b] sm:$0xff] }
 0x3d2   : > { %v2682_v3 = vadd.f32 %v2661_v13, %v6440_v17  ;;  %v6525_v29 = vadd.f32 %v3025_v5, %v2925_v55 }
 0x3d4   : > { %v2786_v54 = vpop.f32.mrf.mxu0  ;;  %v2804_v19 = vadd.f32 %v2783_v56, %v2682_v3  ;;  %v5358_v56 = vld [vmem:[#allocation12 + $0x40] sm:$0xf0]  ;;  %v3206_v3 = vld [vmem:[#allocation2 + $0x1b] sm:$0xff] }
 0x3d5   : > { %v2908_v16 = vpop.f32.mrf.mxu1  ;;  %v5155_v0 = vor.u32 %v5358_v56, %v5154_v63 }
 0x3d6   : > { %4945 = vmatmul.msk.bf16.gmra.mxu2 %vm821_vm2, %v3071_v14  ;;  %v6529_v45 = vadd.f32 %v2905_v57, %v2804_v19 }
 0x3d7   : > { %5012 = vmatmul.msk.bf16.gmra.mxu0 %vm3355_vm5, %v3254_v49 }
 0x3d8   : > { %5019 = vmatmul.msk.bf16.gmra.mxu1 %vm3355_vm5, %v3254_v49  ;;  %3927 = vmatpush.bf16.msrb.mxu0 %v5155_v0 }
 0x3d9   : > { %v2664_v26 = vpop.f32.mrf.mxu2  ;;  %v6532_v34 = vpop.f32.mrf.mxu3 }
 0x3da   : > { %v2683_v17 = vadd.f32 %v2664_v26, %v6443_v10 }
 0x3dc   : > { %v2788_v28 = vpop.f32.mrf.mxu0  ;;  %v2805_v39 = vadd.f32 %v2786_v54, %v2683_v17  ;;  %v6564_v17 = vld [vmem:[%s6984_s7] ss:$0 sm:$0xff] }
 0x3dd   : > { %v2910_v35 = vpop.f32.mrf.mxu1 }
 0x3de   : > { %5026 = vmatmul.msk.bf16.gmra.mxu3 %vm3355_vm5, %v3254_v49  ;;  %v2927_v1 = vadd.f32 %v2908_v16, %v2805_v39  ;;  %v5136_v39 = vld [vmem:[#allocation12 + $0x24] sm:$0xf0] }
 0x3e1   : > { %v2666_v62 = vpop.f32.mrf.mxu2  ;;  %v3030_v60 = vpop.f32.mrf.mxu3 }
 0x3e2   : > { %v2684_v22 = vadd.f32 %v2666_v62, %v6450_v59  ;;  %v6537_v4 = vadd.f32 %v3030_v60, %v2927_v1  ;;  %v5148_v59 = vld [vmem:[#allocation12 + $0x3c] sm:$0xf0] }
 0x3e3   : > { %v5151_v50 = vor.u32 %v5356_v20, %v5148_v59 }
 0x3e4   : > { %v2791_v6 = vpop.f32.mrf.mxu0  ;;  %v2806_v10 = vadd.f32 %v2788_v28, %v2684_v22  ;;  %v5353_v28 = vld [vmem:[#allocation12 + $0x1c] sm:$0xf] }
 0x3e5   : > { %v2913_v44 = vpop.f32.mrf.mxu1  ;;  %3887 = vmatpush.bf16.msrb.mxu2 %v5151_v50 }
 0x3e6   : > { %5099 = vmatmul.msk.bf16.vlgmr.msra.gmra.mxu2 %vm804_vm1, %v3217_v15  ;;  %v6541_v37 = vadd.f32 %v2910_v35, %v2806_v10  ;;  %v5139_v35 = vor.u32 %v5353_v28, %v5136_v39  ;;  %v5352_v28 = vld [vmem:[#allocation12 + $0x10] sm:$0xf0]  ;;  %v3044_v39 = vadd.f32 %v6500_v52, %v6496_v43 }
 0x3e7   : > { %5106 = vmatmul.msk.bf16.vlgmr.msra.gmra.mxu0 %vm804_vm1, %v3217_v15 }
 0x3e8   : > { %5113 = vmatmul.msk.bf16.vlgmr.msrb.gmra.mxu1 %vm804_vm1, %v3217_v15  ;;  %v5142_v15 = vld [vmem:[#allocation12 + $0x20] sm:$0xf] }
 0x3e9   : > { %v2669_v36 = vpop.f32.mrf.mxu2  ;;  %v6544_v47 = vpop.f32.mrf.mxu3  ;;  %3888 = vmatpush.bf16.msrb.mxu2 %v5139_v35 }
 0x3ea   : > { %v2685_v18 = vadd.f32 %v2669_v36, %v6454_v11  ;;  %v3218_v11 = vpack.c.bf16 %v3207_v2, %v3206_v3 }
 0x3ec   : > { %v2793_v57 = vpop.f32.mrf.mxu0  ;;  %v2807_v8 = vadd.f32 %v2791_v6, %v2685_v18 }
 0x3ed   : > { %v2915_v48 = vpop.f32.mrf.mxu1 }
 0x3ee   : > { %v2929_v40 = vadd.f32 %v2913_v44, %v2807_v8  ;;  %v3220_v8 = vpack.c.bf16 %v3211_v58, %v3210_v7  ;;  %v3214_v58 = vld [vmem:[#allocation2 + $0x5b] sm:$0xff] }
 0x3f1   : > { %v2671_v55 = vpop.f32.mrf.mxu2  ;;  %v3035_v41 = vpop.f32.mrf.mxu3 }
 0x3f2   : > { %v6547_v13 = vadd.f32 %v3035_v41, %v2929_v40 }
 0x3f4   : > { %v6549_v5 = vpop.f32.mrf.mxu0 }
 0x3f5   : > { %v6551_v14 = vpop.f32.mrf.mxu1 }
 0x3f6   : > { %5100 = vmatmul.msk.bf16.gmra.mxu2 %vm804_vm1, %v3218_v11 }
 0x3f7   : > { %5107 = vmatmul.msk.bf16.gmra.mxu0 %vm804_vm1, %v3218_v11 }
 0x3f8   : > { %5114 = vmatmul.msk.bf16.gmra.mxu1 %vm804_vm1, %v3218_v11  ;;  %v5350_v11 = vld [vmem:[#allocation12 + $0x4] sm:$0xf] }
 0x3f9   : > { %v3037_v54 = vpop.f32.mrf.mxu3  ;;  %v3127_v49 = vpop.f32.mrf.mxu2 }
 0x3fa   : > { %v3161_v26 = vadd.f32 %v3127_v49, %v6465_v61  ;;  %v3208_v61 = vld [vmem:[#allocation2 + $0x2b] sm:$0xff] }
 0x3fb   : > { %v3219_v6 = vpack.c.bf16 %v3209_v31, %v3208_v61  ;;  %v5124_v54 = vld [vmem:[#allocation12 + $0xc] sm:$0xf0] }
 0x3fc   : > { %v6556_v19 = vpop.f32.mrf.mxu0  ;;  %v3178_v32 = vadd.f32 %v6564_v17, %v3161_v26  ;;  %v5127_v49 = vor.u32 %v5350_v11, %v5124_v54  ;;  %v5130_v26 = vld [vmem:[#allocation12 + $0x8] sm:$0xf] }
 0x3fd   : > { %v6558_v16 = vpop.f32.mrf.mxu1  ;;  %v5131_v35 = vor.u32 %v5352_v28, %v5130_v26 }
 0x3fe   : > { %v3191_v25 = vmax.f32 %v3178_v32, 0.0  ;;  %v3212_v32 = vld [vmem:[#allocation2 + $0x4b] sm:$0xff]  ;;  %3889 = vmatpush.bf16.msrb.mxu2 %v5127_v49 }
 0x401   : > { %v3129_v1 = vpop.f32.mrf.mxu2  ;;  %v6566_v30 = vpop.f32.mrf.mxu3 }
 0x402   : > { %v3162_v62 = vadd.f32 %v3129_v1, %v6473_v12  ;;  %v5355_v12 = vld [vmem:[#allocation12 + $0x28] sm:$0xf0] }
 0x403   : > { %v5143_v21 = vor.u32 %v5355_v12, %v5142_v15 }
 0x404   : > { %v6570_v60 = vpop.f32.mrf.mxu0  ;;  %v3179_v27 = vadd.f32 %v6564_v17, %v3162_v62  ;;  %v3213_v62 = vld [vmem:[#allocation2 + $0x53] sm:$0xff] }
 0x405   : > { %v6573_v22 = vpop.f32.mrf.mxu1  ;;  %3928 = vmatpush.bf16.msrb.mxu0 %v5143_v21 }
 0x406   : > { %v3192_v10 = vmax.f32 %v3179_v27, 0.0  ;;  %5101 = vmatmul.msk.bf16.gmra.mxu2 %vm804_vm1, %v3219_v6 }
 0x407   : > { %5108 = vmatmul.msk.bf16.gmra.mxu0 %vm804_vm1, %v3219_v6 }
 0x408   : > { %5115 = vmatmul.msk.bf16.gmra.mxu1 %vm804_vm1, %v3219_v6  ;;  %v6578_v44 = vpack.c.bf16 %v3192_v10, %v3191_v25  ;;  %v3221_v10 = vpack.c.bf16 %v3213_v62, %v3212_v32 }
 0x409   : > { %v3132_v9 = vpop.f32.mrf.mxu2  ;;  %v6580_v23 = vpop.f32.mrf.mxu3  ;;  %3929 = vmatpush.bf16.msrb.mxu0 %v5131_v35  ;;  %v3216_v35 = vld [vmem:[#allocation2 + $0x6b] sm:$0xf] }
 0x40a   : > { %5168 = vmatmul.msk.bf16.vlgmr.msrb.gmra.mxu3 %vm696_vm0, %v6578_v44  ;;  %v3163_v46 = vadd.f32 %v3132_v9, %v6478_v24 }
 0x40c   : > { %v6584_v20 = vpop.f32.mrf.mxu0  ;;  %v3180_v63 = vadd.f32 %v6564_v17, %v3163_v46 }
 0x40d   : > { %v6586_v59 = vpop.f32.mrf.mxu1 }
 0x40e   : > { %v3193_v48 = vmax.f32 %v3180_v63, 0.0  ;;  %v3215_v63 = vld [vmem:[#allocation2 + $0x63] sm:$0xff] }
 0x411   : > { %v3134_v36 = vpop.f32.mrf.mxu2  ;;  %v6589_v50 = vpop.f32.mrf.mxu3 }
 0x412   : > { %v3164_v56 = vadd.f32 %v3134_v36, %v6486_v53 }
 0x414   : > { %v6593_v18 = vpop.f32.mrf.mxu0  ;;  %v3181_v0 = vadd.f32 %v6564_v17, %v3164_v56  ;;  %v3046_v56 = vadd.f32 %v6515_v51, %v6511_v38 }
 0x415   : > { %v6596_v57 = vpop.f32.mrf.mxu1 }
 0x416   : > { %v3194_v40 = vmax.f32 %v3181_v0, 0.0  ;;  %5102 = vmatmul.msk.bf16.gmra.mxu2 %vm804_vm1, %v3220_v8 }
 0x417   : > { %5109 = vmatmul.msk.bf16.gmra.mxu0 %vm804_vm1, %v3220_v8 }
 0x418   : > { %5116 = vmatmul.msk.bf16.gmra.mxu1 %vm804_vm1, %v3220_v8  ;;  %v6601_v24 = vpack.c.bf16 %v3194_v40, %v3193_v48  ;;  %v3222_v40 = vpack.c.bf16 %v3215_v63, %v3214_v58 }
 0x419   : > { %v3137_v55 = vpop.f32.mrf.mxu2  ;;  %v6603_v53 = vpop.f32.mrf.mxu3 }
 0x41a   : > { %5169 = vmatmul.msk.bf16.gmra.mxu3 %vm696_vm0, %v6601_v24  ;;  %v3165_v3 = vadd.f32 %v3137_v55, %v6491_v33 }
 0x41c   : > { %v6607_v41 = vpop.f32.mrf.mxu0  ;;  %v3182_v61 = vadd.f32 %v6564_v17, %v3165_v3 }
 0x41d   : > { %v6609_v2 = vpop.f32.mrf.mxu1 }
 0x41e   : > { %v3195_v15 = vmax.f32 %v3182_v61, 0.0 }
 0x421   : > { %v3139_v1 = vpop.f32.mrf.mxu2  ;;  %v6614_v31 = vpop.f32.mrf.mxu3 }
 0x422   : > { %v3166_v27 = vadd.f32 %v3139_v1, %v3044_v39  ;;  %v3048_v1 = vadd.f32 %v6532_v34, %v6529_v45 }
 0x424   : > { %v6617_v33 = vpop.f32.mrf.mxu0  ;;  %v3183_v6 = vadd.f32 %v6564_v17, %v3166_v27 }
 0x425   : > { %v6620_v25 = vpop.f32.mrf.mxu1 }
 0x426   : > { %v3196_v43 = vmax.f32 %v3183_v6, 0.0  ;;  %5103 = vmatmul.msk.bf16.gmra.mxu2 %vm804_vm1, %v3221_v10  ;;  %v3223_v6 = vpack.c.bf16 %v3216_v35, %v3216_v35 }
 0x427   : > { %5110 = vmatmul.msk.bf16.gmra.mxu0 %vm804_vm1, %v3221_v10 }
 0x428   : > { %5117 = vmatmul.msk.bf16.gmra.mxu1 %vm804_vm1, %v3221_v10  ;;  %v6625_v52 = vpack.c.bf16 %v3196_v43, %v3195_v15 }
 0x429   : > { %v3142_v12 = vpop.f32.mrf.mxu2  ;;  %v6627_v9 = vpop.f32.mrf.mxu3 }
 0x42a   : > { %5170 = vmatmul.msk.bf16.gmra.mxu3 %vm696_vm0, %v6625_v52  ;;  %v3167_v36 = vadd.f32 %v3142_v12, %v6506_v42 }
 0x42c   : > { %v6631_v21 = vpop.f32.mrf.mxu0  ;;  %v3184_v8 = vadd.f32 %v6564_v17, %v3167_v36 }
 0x42d   : > { %v6633_v46 = vpop.f32.mrf.mxu1 }
 0x42e   : > { %v3197_v54 = vmax.f32 %v3184_v8, 0.0 }
 0x431   : > { %v3144_v7 = vpop.f32.mrf.mxu2  ;;  %v6638_v0 = vpop.f32.mrf.mxu3 }
 0x432   : > { %v3168_v48 = vadd.f32 %v3144_v7, %v3046_v56  ;;  %v3050_v7 = vadd.f32 %v6544_v47, %v6541_v37 }
 0x434   : > { %v6641_v55 = vpop.f32.mrf.mxu0  ;;  %v3185_v3 = vadd.f32 %v6564_v17, %v3168_v48 }
 0x435   : > { %v6644_v11 = vpop.f32.mrf.mxu1 }
 0x436   : > { %7017 = vst [vmem:[#allocation25_spill] sm:$0xff] %v6644_v11  ;;  %v3198_v42 = vmax.f32 %v3185_v3, 0.0  ;;  %5104 = vmatmul.msk.bf16.gmra.mxu2 %vm804_vm1, %v3222_v40 }
 0x437   : > { %5111 = vmatmul.msk.bf16.gmra.mxu0 %vm804_vm1, %v3222_v40 }
 0x438   : > { %5118 = vmatmul.msk.bf16.gmra.mxu1 %vm804_vm1, %v3222_v40  ;;  %v6649_v38 = vpack.c.bf16 %v3198_v42, %v3197_v54 }
 0x439   : > { %v3147_v51 = vpop.f32.mrf.mxu2  ;;  %v6651_v49 = vpop.f32.mrf.mxu3 }
 0x43a   : > { %5171 = vmatmul.msk.bf16.gmra.mxu3 %vm696_vm0, %v6649_v38  ;;  %v3169_v39 = vadd.f32 %v3147_v51, %v6525_v29 }
 0x43c   : > { %v6655_v26 = vpop.f32.mrf.mxu0  ;;  %v3186_v61 = vadd.f32 %v6564_v17, %v3169_v39 }
 0x43d   : > { %v6657_v28 = vpop.f32.mrf.mxu1 }
 0x43e   : > { %7018 = vst [vmem:[#allocation26_spill] sm:$0xff] %v6657_v28  ;;  %v3199_v12 = vmax.f32 %v3186_v61, 0.0 }
 0x441   : > { %v3149_v32 = vpop.f32.mrf.mxu2  ;;  %v6662_v62 = vpop.f32.mrf.mxu3 }
 0x442   : > { %7019 = vst [vmem:[#allocation27_spill] sm:$0xff] %v6662_v62  ;;  %v3170_v27 = vadd.f32 %v3149_v32, %v3048_v1 }
 0x444   : > { %v3411_v10 = vpop.f32.mrf.mxu0  ;;  %v3187_v15 = vadd.f32 %v6564_v17, %v3170_v27 }
 0x445   : > { %v3451_v43 = vpop.f32.mrf.mxu1 }
 0x446   : > { %v3200_v36 = vmax.f32 %v3187_v15, 0.0  ;;  %5105 = vmatmul.msk.bf16.gmra.mxu2 %vm804_vm1, %v3223_v6 }
 0x447   : > { %5112 = vmatmul.msk.bf16.gmra.mxu0 %vm804_vm1, %v3223_v6 }
 0x448   : > { %5119 = vmatmul.msk.bf16.gmra.mxu1 %vm804_vm1, %v3223_v6  ;;  %v6669_v29 = vpack.c.bf16 %v3200_v36, %v3199_v12 }
 0x449   : > { %v3152_v45 = vpop.f32.mrf.mxu2  ;;  %v6671_v34 = vpop.f32.mrf.mxu3 }
 0x44a   : > { %7020 = vst [vmem:[#allocation28_spill] sm:$0xff] %v6671_v34  ;;  %5172 = vmatmul.msk.bf16.gmra.mxu3 %vm696_vm0, %v6669_v29  ;;  %v3171_v56 = vadd.f32 %v3152_v45, %v6537_v4 }
 0x44c   : > { %v3412_v58 = vpop.f32.mrf.mxu0  ;;  %v3188_v40 = vadd.f32 %v6564_v17, %v3171_v56 }
 0x44d   : > { %v3452_v63 = vpop.f32.mrf.mxu1 }
 0x44e   : > { %v3201_v39 = vmax.f32 %v3188_v40, 0.0 }
 0x451   : > { %v3154_v8 = vpop.f32.mrf.mxu2  ;;  %v3491_v48 = vpop.f32.mrf.mxu3 }
 0x452   : > { %v3172_v3 = vadd.f32 %v3154_v8, %v3050_v7 }
 0x454   : > { %v3414_v54 = vpop.f32.mrf.mxu0  ;;  %v3189_v42 = vadd.f32 %v6564_v17, %v3172_v3 }
 0x455   : > { %v3454_v51 = vpop.f32.mrf.mxu1 }
 0x456   : > { %v3202_v35 = vmax.f32 %v3189_v42, 0.0  ;;  %5175 = vmatmul.msk.bf16.vlgmr.msrb.gmra.mxu2 %vm696_vm0, %v6578_v44 }
 0x457   : > { %5182 = vmatmul.msk.bf16.vlgmr.msrb.gmra.mxu0 %vm696_vm0, %v6578_v44 }
 0x458   : > { %v6684_v4 = vpack.c.bf16 %v3202_v35, %v3201_v39 }
 0x459   : > { %v3157_v37 = vpop.f32.mrf.mxu2  ;;  %v3492_v47 = vpop.f32.mrf.mxu3 }
 0x45a   : > { %5173 = vmatmul.msk.bf16.gmra.mxu3 %vm696_vm0, %v6684_v4  ;;  %v3173_v32 = vadd.f32 %v3157_v37, %v6547_v13 }
 0x45c   : > { %v3415_v1 = vpop.f32.mrf.mxu0  ;;  %v3190_v27 = vadd.f32 %v6564_v17, %v3173_v32 }
 0x45d   : > { %v3455_v61 = vpop.f32.mrf.mxu1 }
 0x45e   : > { %v3203_v43 = vmax.f32 %v3190_v27, 0.0 }
 0x460   : > { %v6698_v44 = vpack.c.bf16 %v3203_v43, %v3203_v43 }
 0x461   : > { %v3159_v6 = vpop.f32.mrf.mxu2  ;;  %v3494_v10 = vpop.f32.mrf.mxu3 }
 0x464   : > { %v6690_v15 = vpop.f32.mrf.mxu0 }
 0x465   : > { %v6692_v12 = vpop.f32.mrf.mxu1 }
 0x466   : > { %5176 = vmatmul.msk.bf16.gmra.mxu2 %vm696_vm0, %v6601_v24 }
 0x467   : > { %5183 = vmatmul.msk.bf16.gmra.mxu0 %vm696_vm0, %v6601_v24 }
 0x469   : > { %v3495_v36 = vpop.f32.mrf.mxu3  ;;  %v3623_v13 = vpop.f32.mrf.mxu2 }
 0x46a   : > { %5174 = vmatmul.msk.bf16.gmra.mxu3 %vm696_vm0, %v6698_v44  ;;  %v3624_v51 = vadd.f32 %v3623_v13, %v6549_v5  ;;  %v5189_v13 = vld [vmem:[%s5908_s30 + $0x18] sm:$0xff] }
 0x46c   : > { %v6702_v17 = vpop.f32.mrf.mxu0 }
 0x46d   : > { %v6704_v45 = vpop.f32.mrf.mxu1 }
 0x471   : > { %v3625_v58 = vpop.f32.mrf.mxu2 }
 0x472   : > { %v3626_v5 = vadd.f32 %v3625_v58, %v6556_v19  ;;  %v4049_v58 = vrot.slane %v5189_v13, 6 }
 0x474   : > { %v6706_v63 = vpop.f32.mrf.mxu0 }
 0x475   : > { %v6708_v56 = vpop.f32.mrf.mxu1 }
 0x476   : > { %5177 = vmatmul.msk.bf16.gmra.mxu2 %vm696_vm0, %v6625_v52 }
 0x477   : > { %5184 = vmatmul.msk.bf16.gmra.mxu0 %vm696_vm0, %v6625_v52  ;;  %v6729_v52 = vld [vmem:[%s6988_s11] sm:$0x7] }
 0x478   : > { %v6738_v35 = vperm.slane %v6729_v52, 0 }
 0x479   : > { %v3628_v24 = vpop.f32.mrf.mxu2 }
 0x47c   : > { %v6714_v7 = vpop.f32.mrf.mxu0 }
 0x47d   : > { %v6716_v8 = vpop.f32.mrf.mxu1 }
 0x481   : > { %v3630_v48 = vpop.f32.mrf.mxu2 }
 0x482   : > { %v3631_v13 = vadd.f32 %v3630_v48, %v6584_v20 }
 0x484   : > { %v6718_v40 = vpop.f32.mrf.mxu0 }
 0x485   : > { %v6720_v3 = vpop.f32.mrf.mxu1 }
 0x486   : > { %5178 = vmatmul.msk.bf16.gmra.mxu2 %vm696_vm0, %v6649_v38 }
 0x487   : > { %5185 = vmatmul.msk.bf16.gmra.mxu0 %vm696_vm0, %v6649_v38  ;;  %v4030_v38 = vld [vmem:[%s5908_s30] sm:$0xff] }
 0x489   : > { %v3633_v54 = vpop.f32.mrf.mxu2 }
 0x48c   : > { %v6731_v42 = vpop.f32.mrf.mxu0 }
 0x48d   : > { %v6734_v39 = vpop.f32.mrf.mxu1  ;;  %v3851_v37 = vpop.f32.mrf.mxu3 }
 0x48e   : > { %v3962_v47 = vadd.f32 %v3851_v37, %v3624_v51 }
 0x490   : > { %v4000_v1 = vadd.f32 %v6738_v35, %v3962_v47  ;;  %v3629_v47 = vadd.f32 %v3628_v24, %v6570_v60 }
 0x491   : > { %v6744_v32 = vpop.f32.mrf.mxu2 }
 0x492   : > { %v4033_v61 = vadd.f32 %v4030_v38, %v4000_v1 }
 0x494   : > { %v6746_v27 = vpop.f32.mrf.mxu0  ;;  %v4036_v6 = vmax.f32 %v4033_v61, 0.0 }
 0x495   : > { %v6749_v10 = vpop.f32.mrf.mxu1  ;;  %v3853_v43 = vpop.f32.mrf.mxu3 }
 0x496   : > { %4039 = vst [vmem:[%s6751_s17] sm:$0xff] %v4036_v6  ;;  %v3965_v36 = vadd.f32 %v3853_v43, %v3626_v5  ;;  %5179 = vmatmul.msk.bf16.gmra.mxu2 %vm696_vm0, %v6669_v29  ;;  %v5195_v6 = vld [vmem:[%s5908_s30 + $0x30] sm:$0xff] }
 0x497   : > { %5186 = vmatmul.msk.bf16.gmra.mxu0 %vm696_vm0, %v6669_v29  ;;  %v4097_v11 = vrot.slane %v5195_v6, 4 }
 0x498   : > { %v4003_v19 = vadd.f32 %v6738_v35, %v3965_v36 }
 0x499   : > { %v6759_v51 = vpop.f32.mrf.mxu2 }
 0x49a   : > { %v4055_v61 = vadd.f32 %v4049_v58, %v4003_v19 }
 0x49c   : > { %v6762_v37 = vpop.f32.mrf.mxu0  ;;  %v4061_v29 = vmax.f32 %v4055_v61, 0.0 }
 0x49d   : > { %v6765_v38 = vpop.f32.mrf.mxu1  ;;  %v3856_v1 = vpop.f32.mrf.mxu3 }
 0x49e   : > { %v3968_v5 = vadd.f32 %v3856_v1, %v3629_v47  ;;  %v4074_v47 = vrot.slane %v4061_v29, 2 }
 0x4a0   : > { %v4006_v43 = vadd.f32 %v6738_v35, %v3968_v5 }
 0x4a1   : > { %v6769_v28 = vpop.f32.mrf.mxu2 }
 0x4a2   : > { %v4058_v34 = vadd.f32 %v4049_v58, %v4006_v43  ;;  %v4103_v62 = vadd.f32 %v4097_v11, %v4006_v43  ;;  %v5201_v58 = vld [vmem:[%s5908_s30 + $0x48] sm:$0xff]  ;;  %v3634_v43 = vadd.f32 %v3633_v54, %v6593_v18 }
 0x4a3   : > { %v4145_v29 = vrot.slane %v5201_v58, 2  ;;  %v3636_v58 = vadd.f32 %v6744_v32, %v6607_v41 }
 0x4a4   : > { %v6771_v36 = vpop.f32.mrf.mxu0  ;;  %v4064_v60 = vmax.f32 %v4058_v34, 0.0  ;;  %v4109_v48 = vmax.f32 %v4103_v62, 0.0 }
 0x4a5   : > { %7021 = vst [vmem:[#allocation29_spill] sm:$0xff] %v6771_v36  ;;  %v6774_v24 = vpop.f32.mrf.mxu1  ;;  %v3858_v19 = vpop.f32.mrf.mxu3 }
 0x4a6   : > { %7022 = vst [vmem:[#allocation30_spill] sm:$0xff] %v6774_v24  ;;  %v4075_v1 = vrot.slane %v4064_v60, 2  ;;  %v3971_v5 = vadd.f32 %v3858_v19, %v3631_v13  ;;  %5180 = vmatmul.msk.bf16.gmra.mxu2 %vm696_vm0, %v6684_v4  ;;  %v4122_v36 = vrot.slane %v4109_v48, 4 }
 0x4a7   : > { %5187 = vmatmul.msk.bf16.gmra.mxu0 %vm696_vm0, %v6684_v4 }
 0x4a8   : > { %v4076_v61 = vsel %vm4073_vm6, %v4074_v47, %v4075_v1  ;;  %v4009_v20 = vadd.f32 %v6738_v35, %v3971_v5 }
 0x4a9   : > { %5192 = vst [vmem:[%s6751_s17 + $0x18] sm:$0xff] %v4076_v61  ;;  %v3643_v34 = vpop.f32.mrf.mxu2 }
 0x4aa   : > { %v4106_v6 = vadd.f32 %v4097_v11, %v4009_v20  ;;  %v4151_v47 = vadd.f32 %v4145_v29, %v4009_v20 }
 0x4ac   : > { %v6784_v60 = vpop.f32.mrf.mxu0  ;;  %v4112_v13 = vmax.f32 %v4106_v6, 0.0  ;;  %v4157_v62 = vmax.f32 %v4151_v47, 0.0 }
 0x4ad   : > { %v6787_v19 = vpop.f32.mrf.mxu1  ;;  %v3861_v4 = vpop.f32.mrf.mxu3 }
 0x4ae   : > { %v4123_v24 = vrot.slane %v4112_v13, 4  ;;  %v3974_v1 = vadd.f32 %v3861_v4, %v3634_v43  ;;  %v4170_v43 = vrot.slane %v4157_v62, 6 }
 0x4b0   : > { %v4124_v5 = vsel %vm4121_vm7, %v4122_v36, %v4123_v24  ;;  %v4012_v61 = vadd.f32 %v6738_v35, %v3974_v1  ;;  %v3639_v1 = vadd.f32 %v6759_v51, %v6617_v33  ;;  %v5219_v33 = vld [vmem:[%s5908_s30 + $0x90] sm:$0xff] }
 0x4b1   : > { %5198 = vst [vmem:[%s6751_s17 + $0x30] sm:$0xff] %v4124_v5  ;;  %v6792_v11 = vpop.f32.mrf.mxu2 }
 0x4b2   : > { %v4154_v18 = vadd.f32 %v4145_v29, %v4012_v61  ;;  %v5207_v29 = vld [vmem:[%s5908_s30 + $0x60] sm:$0xff] }
 0x4b4   : > { %v3688_v54 = vpop.f32.mrf.mxu0  ;;  %v4160_v6 = vmax.f32 %v4154_v18, 0.0 }
 0x4b5   : > { %v3728_v48 = vpop.f32.mrf.mxu1  ;;  %v3863_v20 = vpop.f32.mrf.mxu3  ;;  %v5213_v54 = vld [vmem:[%s5908_s30 + $0x78] sm:$0xff] }
 0x4b6   : > { %v4171_v36 = vrot.slane %v4160_v6, 6  ;;  %v3977_v24 = vadd.f32 %v3863_v20, %v3636_v58  ;;  %5181 = vmatmul.msk.bf16.gmra.mxu2 %vm696_vm0, %v6698_v44  ;;  %v4207_v6 = vrot.slane %v5213_v54, 6  ;;  %v3641_v20 = vadd.f32 %v6769_v28, %v6631_v21 }
 0x4b7   : > { %5188 = vmatmul.msk.bf16.gmra.mxu0 %vm696_vm0, %v6698_v44 }
 0x4b8   : > { %v4172_v13 = vsel %vm4169_vm8, %v4170_v43, %v4171_v36  ;;  %v4015_v41 = vadd.f32 %v6738_v35, %v3977_v24 }
 0x4b9   : > { %5204 = vst [vmem:[%s6751_s17 + $0x48] sm:$0xff] %v4172_v13  ;;  %v3648_v32 = vpop.f32.mrf.mxu2  ;;  %v4254_v13 = vrot.slane %v5219_v33, 4 }
 0x4ba   : > { %v4190_v4 = vadd.f32 %v5207_v29, %v4015_v41 }
 0x4bc   : > { %v3689_v47 = vpop.f32.mrf.mxu0  ;;  %v4193_v5 = vmax.f32 %v4190_v4, 0.0 }
 0x4bd   : > { %v3729_v61 = vpop.f32.mrf.mxu1  ;;  %v3866_v62 = vpop.f32.mrf.mxu3 }
 0x4be   : > { %5210 = vst [vmem:[%s6751_s17 + $0x60] sm:$0xff] %v4193_v5  ;;  %v3980_v18 = vadd.f32 %v3866_v62, %v3639_v1  ;;  %v3644_v1 = vadd.f32 %v3643_v34, %v6641_v55 }
 0x4c0   : > { %v4018_v58 = vadd.f32 %v6738_v35, %v3980_v18 }
 0x4c1   : > { %v3649_v44 = vpop.f32.mrf.mxu2 }
 0x4c2   : > { %v4213_v24 = vadd.f32 %v4207_v6, %v4018_v58  ;;  %v5225_v44 = vld [vmem:[%s5908_s30 + $0xa8] sm:$0xff] }
 0x4c3   : > { %v4301_v34 = vrot.slane %v5225_v44, 2 }
 0x4c4   : > { %v3691_v48 = vpop.f32.mrf.mxu0  ;;  %v4219_v32 = vmax.f32 %v4213_v24, 0.0 }
 0x4c5   : > { %v3731_v43 = vpop.f32.mrf.mxu1  ;;  %v3868_v36 = vpop.f32.mrf.mxu3 }
 0x4c6   : > { %v3983_v29 = vadd.f32 %v3868_v36, %v3641_v20  ;;  %v4231_v28 = vrot.slane %v4219_v32, 2  ;;  %v6821_v36 = vperm.slane %v6729_v52, 2  ;;  %v4032_v32 = vld [vmem:[%s5908_s30 + $0x10] sm:$0xff] }
 0x4c8   : > { %v4021_v51 = vadd.f32 %v6738_v35, %v3983_v29  ;;  %v3646_v29 = vadd.f32 %v6792_v11, %v6655_v26  ;;  %v6832_v11 = vperm.slane %v6729_v52, 1 }
 0x4c9   : > { %v3651_v41 = vpop.f32.mrf.mxu2 }
 0x4ca   : > { %v4216_v4 = vadd.f32 %v4207_v6, %v4021_v51  ;;  %v4260_v62 = vadd.f32 %v4254_v13, %v4021_v51  ;;  %v3704_v6 = vadd.f32 %v6692_v12, %v6566_v30 }
 0x4cc   : > { %v3692_v47 = vpop.f32.mrf.mxu0  ;;  %v4222_v5 = vmax.f32 %v4216_v4, 0.0  ;;  %v4266_v20 = vmax.f32 %v4260_v62, 0.0  ;;  %v3706_v62 = vadd.f32 %v6704_v45, %v6580_v23 }
 0x4cd   : > { %v3732_v61 = vpop.f32.mrf.mxu1  ;;  %v3871_v21 = vpop.f32.mrf.mxu3 }
 0x4ce   : > { %v4232_v18 = vrot.slane %v4222_v5, 2  ;;  %v3986_v54 = vadd.f32 %v3871_v21, %v3644_v1  ;;  %v4278_v41 = vrot.slane %v4266_v20, 4 }
 0x4d0   : > { %v4233_v58 = vsel %vm4073_vm6, %v4231_v28, %v4232_v18  ;;  %v4024_v48 = vadd.f32 %v6738_v35, %v3986_v54 }
 0x4d1   : > { %5216 = vst [vmem:[%s6751_s17 + $0x78] sm:$0xff] %v4233_v58  ;;  %v3652_v43 = vpop.f32.mrf.mxu2  ;;  %v4031_v58 = vld [vmem:[%s5908_s30 + $0x8] sm:$0xff] }
 0x4d2   : > { %v4263_v55 = vadd.f32 %v4254_v13, %v4024_v48  ;;  %v4307_v1 = vadd.f32 %v4301_v34, %v4024_v48  ;;  %v3664_v13 = vadd.f32 %v6690_v15, %v6551_v14  ;;  %v5191_v48 = vld [vmem:[%s5908_s30 + $0x28] sm:$0xff] }
 0x4d4   : > { %v3931_v24 = vpop.f32.mrf.mxu0  ;;  %v4269_v33 = vmax.f32 %v4263_v55, 0.0  ;;  %v4313_v28 = vmax.f32 %v4307_v1, 0.0 }
 0x4d5   : > { %v3964_v51 = vadd.f32 %v3931_v24, %v3704_v6  ;;  %v3873_v4 = vpop.f32.mrf.mxu3  ;;  %v3666_v6 = vadd.f32 %v6702_v17, %v6558_v16 }
 0x4d6   : > { %v4279_v47 = vrot.slane %v4269_v33, 4  ;;  %v3989_v12 = vadd.f32 %v3873_v4, %v3646_v29  ;;  %v4325_v23 = vrot.slane %v4313_v28, 6  ;;  %v4051_v29 = vrot.slane %v5191_v48, 6  ;;  %v5203_v48 = vld [vmem:[%s5908_s30 + $0x58] sm:$0xff] }
 0x4d7   : > { %v4002_v30 = vadd.f32 %v6821_v36, %v3964_v51  ;;  %v3709_v51 = vadd.f32 %v6708_v56, %v6589_v50 }
 0x4d8   : > { %v4280_v5 = vsel %vm4121_vm7, %v4278_v41, %v4279_v47  ;;  %v4027_v26 = vadd.f32 %v6738_v35, %v3989_v12 }
 0x4d9   : > { %v4035_v61 = vadd.f32 %v4032_v32, %v4002_v30  ;;  %5222 = vst [vmem:[%s6751_s17 + $0x90] sm:$0xff] %v4280_v5  ;;  %v3891_v21 = vpop.f32.mrf.mxu2  ;;  %v5190_v32 = vld [vmem:[%s5908_s30 + $0x20] sm:$0xff] }
 0x4da   : > { %v4310_v54 = vadd.f32 %v4301_v34, %v4027_v26  ;;  %v3963_v44 = vadd.f32 %v3891_v21, %v3664_v13  ;;  %v5197_v30 = vld [vmem:[%s5908_s30 + $0x40] sm:$0xff]  ;;  %v4050_v17 = vrot.slane %v5190_v32, 6 }
 0x4db   : > { %v4038_v18 = vmax.f32 %v4035_v61, 0.0  ;;  %v4099_v5 = vrot.slane %v5197_v30, 4  ;;  %v3669_v61 = vadd.f32 %v6706_v63, %v6573_v22 }
 0x4dc   : > { %v3933_v14 = vpop.f32.mrf.mxu0  ;;  %v4316_v15 = vmax.f32 %v4310_v54, 0.0  ;;  %v4001_v35 = vadd.f32 %v6832_v11, %v3963_v44 }
 0x4dd   : > { %4041 = vst.msk [vmem:[%s6751_s17 + $0x10] sm:$0xff] %vm696_vm0, %v4038_v18  ;;  %v3967_v52 = vadd.f32 %v3933_v14, %v3706_v62  ;;  %v3876_v20 = vpop.f32.mrf.mxu3  ;;  %v3711_v62 = vadd.f32 %v6716_v8, %v6603_v53 }
 0x4de   : > { %v4326_v45 = vrot.slane %v4316_v15, 6  ;;  %v4034_v43 = vadd.f32 %v4031_v58, %v4001_v35  ;;  %v5196_v35 = vld [vmem:[%s5908_s30 + $0x38] sm:$0xff] }
 0x4df   : > { %v4005_v24 = vadd.f32 %v6821_v36, %v3967_v52 }
 0x4e0   : > { %v4327_v55 = vsel %vm4169_vm8, %v4325_v23, %v4326_v45  ;;  %v4037_v34 = vmax.f32 %v4034_v43, 0.0  ;;  %v4098_v45 = vrot.slane %v5196_v35, 4 }
 0x4e1   : > { %5228 = vst [vmem:[%s6751_s17 + $0xa8] sm:$0xff] %v4327_v55  ;;  %v3893_v33 = vpop.f32.mrf.mxu2  ;;  %v4057_v47 = vadd.f32 %v4051_v29, %v4005_v24  ;;  %v4147_v55 = vrot.slane %v5203_v48, 2 }
 0x4e2   : > { %4040 = vst [vmem:[%s6751_s17 + $0x8] sm:$0xff] %v4037_v34  ;;  %v3966_v41 = vadd.f32 %v3893_v33, %v3666_v6  ;;  %v3671_v34 = vadd.f32 %v6714_v7, %v6586_v59 }
 0x4e3   : > { %v4063_v50 = vmax.f32 %v4057_v47, 0.0 }
 0x4e4   : > { %v3936_v4 = vpop.f32.mrf.mxu0  ;;  %v4004_v16 = vadd.f32 %v6832_v11, %v3966_v41 }
 0x4e5   : > { %v3970_v1 = vadd.f32 %v3936_v4, %v3709_v51  ;;  %v3877_v12 = vpop.f32.mrf.mxu3  ;;  %v4080_v58 = vrot.slane %v4063_v50, 2 }
 0x4e6   : > { %v4056_v21 = vadd.f32 %v4050_v17, %v4004_v16 }
 0x4e7   : > { %v4008_v13 = vadd.f32 %v6821_v36, %v3970_v1  ;;  %v5202_v1 = vld [vmem:[%s5908_s30 + $0x50] sm:$0xff] }
 0x4e8   : > { %v4062_v63 = vmax.f32 %v4056_v21, 0.0 }
 0x4e9   : > { %v4060_v56 = vadd.f32 %v4051_v29, %v4008_v13  ;;  %v3896_v26 = vpop.f32.mrf.mxu2  ;;  %v4105_v54 = vadd.f32 %v4099_v5, %v4008_v13  ;;  %v3714_v29 = vadd.f32 %v6720_v3, %v6614_v31  ;;  %v4146_v3 = vrot.slane %v5202_v1, 2 }
 0x4ea   : > { %v3969_v18 = vadd.f32 %v3896_v26, %v3669_v61  ;;  %v4077_v33 = vrot.slane %v4062_v63, 2  ;;  %v5209_v63 = vld [vmem:[%s5908_s30 + $0x70] sm:$0xff] }
 0x4eb   : > { %v4066_v28 = vmax.f32 %v4060_v56, 0.0  ;;  %v4111_v8 = vmax.f32 %v4105_v54, 0.0  ;;  %v3674_v56 = vadd.f32 %v6718_v40, %v6596_v57 }
 0x4ec   : > { %v3938_v44 = vpop.f32.mrf.mxu0  ;;  %v4007_v15 = vadd.f32 %v6832_v11, %v3969_v18  ;;  %v3716_v18 = vadd.f32 %v6734_v39, %v6627_v9 }
 0x4ed   : > { %v4081_v14 = vrot.slane %v4066_v28, 2  ;;  %v3973_v52 = vadd.f32 %v3938_v44, %v3711_v62  ;;  %v3879_v22 = vpop.f32.mrf.mxu3  ;;  %v4128_v32 = vrot.slane %v4111_v8, 4 }
 0x4ee   : > { %v4059_v23 = vadd.f32 %v4050_v17, %v4007_v15  ;;  %v4104_v4 = vadd.f32 %v4098_v45, %v4007_v15 }
 0x4ef   : > { %v4082_v20 = vsel %vm4073_vm6, %v4080_v58, %v4081_v14  ;;  %v4011_v53 = vadd.f32 %v6821_v36, %v3973_v52 }
 0x4f0   : > { %5194 = vst.msk [vmem:[%s6751_s17 + $0x28] sm:$0xff] %vm696_vm0, %v4082_v20  ;;  %v4065_v43 = vmax.f32 %v4059_v23, 0.0  ;;  %v4110_v61 = vmax.f32 %v4104_v4, 0.0 }
 0x4f1   : > { %v4108_v6 = vadd.f32 %v4099_v5, %v4011_v53  ;;  %v3898_v24 = vpop.f32.mrf.mxu2  ;;  %v4153_v17 = vadd.f32 %v4147_v55, %v4011_v53  ;;  %v3676_v53 = vadd.f32 %v6731_v42, %v6609_v2 }
 0x4f2   : > { %v4078_v51 = vrot.slane %v4065_v43, 2  ;;  %v3972_v47 = vadd.f32 %v3898_v24, %v3671_v34  ;;  %v4125_v14 = vrot.slane %v4110_v61, 4  ;;  %v3719_v43 = vadd.f32 %v6749_v10, %v6638_v0 }
 0x4f3   : > { %v4114_v41 = vmax.f32 %v4108_v6, 0.0  ;;  %v4159_v26 = vmax.f32 %v4153_v17, 0.0  ;;  %v3679_v10 = vadd.f32 %v6746_v27, %v6620_v25  ;;  %v5214_v17 = vld [vmem:[%s5908_s30 + $0x80] sm:$0xff]  ;;  %v3681_v61 = vadd.f32 %v6762_v37, %v6633_v46 }
 0x4f4   : > { %v3941_v30 = vpop.f32.mrf.mxu0  ;;  %v4079_v12 = vsel %vm4073_vm6, %v4077_v33, %v4078_v51  ;;  %v4010_v59 = vadd.f32 %v6832_v11, %v3972_v47  ;;  %v5208_v33 = vld [vmem:[%s5908_s30 + $0x68] sm:$0xff] }
 0x4f5   : > { %v4129_v16 = vrot.slane %v4114_v41, 4  ;;  %v3976_v13 = vadd.f32 %v3941_v30, %v3714_v29  ;;  %5193 = vst [vmem:[%s6751_s17 + $0x20] sm:$0xff] %v4079_v12  ;;  %v3880_v7 = vpop.f32.mrf.mxu3  ;;  %v4176_v52 = vrot.slane %v4159_v26, 6  ;;  %v3721_v12 = vadd.f32 %v6765_v38, %v6651_v49  ;;  %v7024_v26 = vld [vmem:[#allocation30_spill] sm:$0xff] }
 0x4f6   : > { %v4107_v50 = vadd.f32 %v4098_v45, %v4010_v59  ;;  %v4152_v54 = vadd.f32 %v4146_v3, %v4010_v59 }
 0x4f7   : > { %v4130_v31 = vsel %vm4121_vm7, %v4128_v32, %v4129_v16  ;;  %v4014_v5 = vadd.f32 %v6821_v36, %v3976_v13  ;;  %v5215_v32 = vld [vmem:[%s5908_s30 + $0x88] sm:$0xff] }
 0x4f8   : > { %5200 = vst.msk [vmem:[%s6751_s17 + $0x40] sm:$0xff] %vm696_vm0, %v4130_v31  ;;  %v4113_v21 = vmax.f32 %v4107_v50, 0.0  ;;  %v4158_v20 = vmax.f32 %v4152_v54, 0.0  ;;  %v4209_v1 = vrot.slane %v5215_v32, 6  ;;  %v5221_v31 = vld [vmem:[%s5908_s30 + $0xa0] sm:$0xff] }
 0x4f9   : > { %v4156_v62 = vadd.f32 %v4147_v55, %v4014_v5  ;;  %v3901_v28 = vpop.f32.mrf.mxu2  ;;  %v4208_v5 = vrot.slane %v5214_v17, 6  ;;  %v4256_v27 = vrot.slane %v5221_v31, 4 }
 0x4fa   : > { %v3975_v58 = vadd.f32 %v3901_v28, %v3674_v56  ;;  %v4126_v15 = vrot.slane %v4113_v21, 4  ;;  %v4173_v55 = vrot.slane %v4158_v20, 6  ;;  %v7023_v56 = vld [vmem:[#allocation27_spill] sm:$0xff] }
 0x4fb   : > { %v4162_v44 = vmax.f32 %v4156_v62, 0.0  ;;  %v3724_v62 = vadd.f32 %v7024_v26, %v7023_v56 }
 0x4fc   : > { %v3943_v35 = vpop.f32.mrf.mxu0  ;;  %v4013_v57 = vadd.f32 %v6832_v11, %v3975_v58  ;;  %v4127_v22 = vsel %vm4121_vm7, %v4125_v14, %v4126_v15 }
 0x4fd   : > { %v4177_v48 = vrot.slane %v4162_v44, 6  ;;  %v3979_v40 = vadd.f32 %v3943_v35, %v3716_v18  ;;  %5199 = vst [vmem:[%s6751_s17 + $0x38] sm:$0xff] %v4127_v22  ;;  %v5220_v35 = vld [vmem:[%s5908_s30 + $0x98] sm:$0xff] }
 0x4fe   : > { %v4155_v39 = vadd.f32 %v4146_v3, %v4013_v57 }
 0x4ff   : > { %v4178_v9 = vsel %vm4169_vm8, %v4176_v52, %v4177_v48  ;;  %v4017_v23 = vadd.f32 %v6821_v36, %v3979_v40  ;;  %v5227_v48 = vld [vmem:[%s5908_s30 + $0xb8] sm:$0xff] }
 0x500   : > { %5206 = vst.msk [vmem:[%s6751_s17 + $0x58] sm:$0xff] %vm696_vm0, %v4178_v9  ;;  %v4161_v8 = vmax.f32 %v4155_v39, 0.0  ;;  %v4303_v39 = vrot.slane %v5227_v48, 2 }
 0x501   : > { %v4192_v45 = vadd.f32 %v5209_v63, %v4017_v23  ;;  %v3903_v6 = vpop.f32.mrf.mxu2  ;;  %v4255_v63 = vrot.slane %v5220_v35, 4  ;;  %v7025_v23 = vld [vmem:[#allocation25_spill] sm:$0xff] }
 0x502   : > { %v4174_v34 = vrot.slane %v4161_v8, 6  ;;  %v3978_v29 = vadd.f32 %v3903_v6, %v3676_v53  ;;  %v7026_v53 = vld [vmem:[#allocation29_spill] sm:$0xff] }
 0x503   : > { %v4195_v24 = vmax.f32 %v4192_v45, 0.0  ;;  %v3684_v8 = vadd.f32 %v7026_v53, %v7025_v23 }
 0x504   : > { %v3946_v51 = vpop.f32.mrf.mxu0  ;;  %v4175_v41 = vsel %vm4169_vm8, %v4173_v55, %v4174_v34  ;;  %v4016_v2 = vadd.f32 %v6832_v11, %v3978_v29 }
 0x505   : > { %5212 = vst.msk [vmem:[%s6751_s17 + $0x70] sm:$0xff] %vm696_vm0, %v4195_v24  ;;  %v3982_v42 = vadd.f32 %v3946_v51, %v3719_v43  ;;  %v7027_v43 = vld [vmem:[#allocation28_spill] sm:$0xff] }
 0x506   : > { %5205 = vst [vmem:[%s6751_s17 + $0x50] sm:$0xff] %v4175_v41  ;;  %v4191_v0 = vadd.f32 %v5208_v33, %v4016_v2  ;;  %v3726_v6 = vadd.f32 %v6787_v19, %v7027_v43  ;;  %v5226_v41 = vld [vmem:[%s5908_s30 + $0xb0] sm:$0xff]  ;;  %s5372_s30 = smul.u32 192, %s5803_s25  ;;  %s4354_s25 = sshll.u32 %s6751_s17, 4  ;;  %s4355_s25 = int_to_ptr.vmem [resolvable:$true] %s4354_s25 }
 0x507   : > { %v4020_v47 = vadd.f32 %v6821_v36, %v3982_v42 }
 0x508   : > { %v4194_v4 = vmax.f32 %v4191_v0, 0.0  ;;  %s4353_s29 = scalar_lea.hbm %s6989_s12, %s5372_s30 }
 0x509   : > { %v3906_v30 = vpop.f32.mrf.mxu2  ;;  %v4215_v59 = vadd.f32 %v4209_v1, %v4020_v47  ;;  %v4302_v47 = vrot.slane %v5226_v41, 2  ;;  %s4356_s26 = sshll.u32 %s4353_s29, 4  ;;  %s4357_s26 = int_to_ptr.hbm [resolvable:$true] %s4356_s26 }
 0x50a   : > { %5211 = vst [vmem:[%s6751_s17 + $0x68] sm:$0xff] %v4194_v4  ;;  %v3981_v16 = vadd.f32 %v3906_v30, %v3679_v10  ;;  %s5642_s27 = sshra.s32 %s4357_s26, 4  ;;  %s5643_s27 = int_to_ptr.hbm [resolvable:$true] %s5642_s27 }
 0x50b   : > { %v4221_v50 = vmax.f32 %v4215_v59, 0.0  ;;  %s5644_s14 = scalar_lea.hbm %s5643_s27, 192  ;;  %p5649_p3 = scmp.lt.s32.totalorder %s5643_s27, %s6989_s12 }
 0x50c   : > { %v3948_v13 = vpop.f32.mrf.mxu0  ;;  %v4019_v3 = vadd.f32 %v6832_v11, %v3981_v16  ;;  %v7028_v16 = vld [vmem:[#allocation26_spill] sm:$0xff]  ;;  %p5645_p0 = scmp.ne.s32.totalorder %s5643_s27, %s5644_s14  ;;  %p5650_p4 = scmp.lt.s32.totalorder %s5648_s9, %s5644_s14 }
 0x50d   : > { %v3985_v7 = vadd.f32 %v3948_v13, %v3721_v12  ;;  %v4237_v58 = vrot.slane %v4221_v50, 2  ;;  %v3686_v17 = vadd.f32 %v6784_v60, %v7028_v16 }
 0x50e   : > { %v4214_v21 = vadd.f32 %v4208_v5, %v4019_v3  ;;  %p5646_p1 = pnand %p5645_p0, %p5820_p5  ;;  %p5651_p7 = por %p5650_p4, %p5649_p3 }
 0x50f   : > { %v4023_v25 = vadd.f32 %v6821_v36, %v3985_v7 }
 0x510   : > { %v4220_v46 = vmax.f32 %v4214_v21, 0.0  ;;  %p5647_p2 = pneg %p5646_p1 }
 0x511   : > { %v4218_v49 = vadd.f32 %v4209_v1, %v4023_v25  ;;  %v3908_v38 = vpop.f32.mrf.mxu2  ;;  %v4262_v54 = vadd.f32 %v4256_v27, %v4023_v25 }
 0x512   : > { %v3984_v18 = vadd.f32 %v3908_v38, %v3681_v61  ;;  %v4234_v55 = vrot.slane %v4220_v46, 2  ;;  %p5652_p8 = pnand %p5651_p7, %p5647_p2 }
 0x513   : > { %v4224_v28 = vmax.f32 %v4218_v49, 0.0  ;;  %v4268_v22 = vmax.f32 %v4262_v54, 0.0 }
 0x514   : > { %v3951_v44 = vpop.f32.mrf.mxu0  ;;  %v4022_v15 = vadd.f32 %v6832_v11, %v3984_v18 }
 0x515   : > { %v4238_v14 = vrot.slane %v4224_v28, 2  ;;  %v3988_v52 = vadd.f32 %v3951_v44, %v3724_v62  ;;  %v4284_v29 = vrot.slane %v4268_v22, 4 }
 0x516   : > { %v4217_v57 = vadd.f32 %v4208_v5, %v4022_v15  ;;  %v4261_v33 = vadd.f32 %v4255_v63, %v4022_v15 }
 0x517   : > { %v4239_v37 = vsel %vm4073_vm6, %v4237_v58, %v4238_v14  ;;  %v4026_v40 = vadd.f32 %v6821_v36, %v3988_v52 }
 0x518   : > { %5218 = vst.msk [vmem:[%s6751_s17 + $0x88] sm:$0xff] %vm696_vm0, %v4239_v37  ;;  %v4223_v20 = vmax.f32 %v4217_v57, 0.0  ;;  %v4267_v30 = vmax.f32 %v4261_v33, 0.0 }
 0x519   : > { %v4265_v9 = vadd.f32 %v4256_v27, %v4026_v40  ;;  %v3911_v45 = vpop.f32.mrf.mxu2  ;;  %v4309_v0 = vadd.f32 %v4303_v39, %v4026_v40 }
 0x51a   : > { %v4235_v34 = vrot.slane %v4223_v20, 2  ;;  %v3987_v51 = vadd.f32 %v3911_v45, %v3684_v8  ;;  %v4281_v27 = vrot.slane %v4267_v30, 4 }
 0x51b   : > { %v4271_v24 = vmax.f32 %v4265_v9, 0.0  ;;  %v4315_v13 = vmax.f32 %v4309_v0, 0.0 }
 0x51c   : > { %v3953_v2 = vpop.f32.mrf.mxu0  ;;  %v4236_v42 = vsel %vm4073_vm6, %v4234_v55, %v4235_v34  ;;  %v4025_v4 = vadd.f32 %v6832_v11, %v3987_v51 }
 0x51d   : > { %v4285_v32 = vrot.slane %v4271_v24, 4  ;;  %v3991_v10 = vadd.f32 %v3953_v2, %v3726_v6  ;;  %5217 = vst [vmem:[%s6751_s17 + $0x80] sm:$0xff] %v4236_v42  ;;  %v4331_v50 = vrot.slane %v4315_v13, 6 }
 0x51e   : > { %v4264_v12 = vadd.f32 %v4255_v63, %v4025_v4  ;;  %v4308_v3 = vadd.f32 %v4302_v47, %v4025_v4 }
 0x51f   : > { %v4286_v19 = vsel %vm4121_vm7, %v4284_v29, %v4285_v32  ;;  %v4029_v1 = vadd.f32 %v6821_v36, %v3991_v10 }
 0x520   : > { %5224 = vst.msk [vmem:[%s6751_s17 + $0xa0] sm:$0xff] %vm696_vm0, %v4286_v19  ;;  %v4270_v7 = vmax.f32 %v4264_v12, 0.0  ;;  %v4314_v56 = vmax.f32 %v4308_v3, 0.0 }
 0x521   : > { %v4312_v59 = vadd.f32 %v4303_v39, %v4029_v1  ;;  %v3913_v31 = vpop.f32.mrf.mxu2 }
 0x522   : > { %v3990_v25 = vadd.f32 %v3913_v31, %v3686_v17  ;;  %v4282_v36 = vrot.slane %v4270_v7, 4  ;;  %v4328_v28 = vrot.slane %v4314_v56, 6 }
 0x523   : > { %v4318_v5 = vmax.f32 %v4312_v59, 0.0 }
 0x524   : > { %v3956_v61 = vpop.f32.mrf.mxu0  ;;  %v4028_v38 = vadd.f32 %v6832_v11, %v3990_v25  ;;  %v4283_v60 = vsel %vm4121_vm7, %v4281_v27, %v4282_v36 }
 0x525   : > { %v4332_v49 = vrot.slane %v4318_v5, 6  ;;  %5223 = vst [vmem:[%s6751_s17 + $0x98] sm:$0xff] %v4283_v60 }
 0x526   : > { %v4311_v62 = vadd.f32 %v4302_v47, %v4028_v38 }
 0x527   : > { %v4333_v26 = vsel %vm4169_vm8, %v4331_v50, %v4332_v49 }
 0x528   : > { %5230 = vst.msk [vmem:[%s6751_s17 + $0xb8] sm:$0xff] %vm696_vm0, %v4333_v26  ;;  %v4317_v21 = vmax.f32 %v4311_v62, 0.0 }
 0x529   : > { %v3916_v11 = vpop.f32.mrf.mxu2 }
 0x52a   : > { %v4329_v18 = vrot.slane %v4317_v21, 6 }
 0x52c   : > { %v3957_v54 = vpop.f32.mrf.mxu0  ;;  %v4330_v44 = vsel %vm4169_vm8, %v4328_v28, %v4329_v18 }
 0x52d   : > { %5229 = vst [vmem:[%s6751_s17 + $0xb0] sm:$0xff] %v4330_v44 }
 0x52e   : > { %5655 = shalt.err (!%p5652_p8)
}
 0x52f   : > { %s5715_s13 = smov 384   ;;  %s5716_s15 = smov 24  }
 0x530   : > { %5393 = dma.vmem_to_hbm [thread:$0]  (%p5820_p5), %s4355_s25, 3072, %s4357_s26, %s4342_s6, %s5715_s13, %s5715_s13, %s5716_s15  }
 0x531   : > { %v3917_v58 = vpop.f32.mrf.mxu2 }
 0x534   : > { %v3959_v14 = vpop.f32.mrf.mxu0 }
 0x539   : > { %v3919_v15 = vpop.f32.mrf.mxu2 }
 0x53c   : > { %v3960_v35 = vpop.f32.mrf.mxu0 }
 0x541   : > { %v3920_v52 = vpop.f32.mrf.mxu2 }
 0x542 PF: > { %s7030_s19 = sld [smem:[#allocation20_spill]] }
 0x543   : > { %s7031_s16 = sld [smem:[#allocation18_spill]] }
 0x548   : > { %p5425_p9 = scmp.ge.s32.totalorder %s7030_s19, 2 }
 0x549   : > { %s4371_s30 = sand.u32 1, %s7031_s16  }
 0x54a   : > { %p5412_p10 = pnand %p5425_p9, %p5824_p6  ;;  %s4372_s20 = scalar_lea.sflag [#allocation6], %s4371_s30 }
 0x54c   : > { %p5413_p11 = pneg %p5412_p10 }
 0x54e   : > { %5685 = dma.done.wait (%p5413_p11), %s4372_s20, 3072  }
 0x54f   : > { %5687 = vsyncadd (%p5413_p11), %s4372_s20, 4294964224  ;;  %s7033_s24 = sld [smem:[#allocation21_spill]]  ;;  %s7036_s21 = smov %s5694_s22 }
 0x550   : > { %s7034_s28 = sld [smem:[#allocation19_spill]] }
 0x551   : > { %s7035_s23 = sld [smem:[#allocation22_spill]] }
 0x555   : > { %p25_p5 = scmp.ge.s32.totalorder %s7033_s24, 4  }
 0x556   : > { %s7037_s22 = smov %s7034_s28 }
 0x557   :  { %27 = sbr.rel (!%p25_p5) target bundleno = 10 (0xa), region = 154 }
 0x55c   :  { %4378 = vsyncpa [#allocation5], 1 }
 0x55d   :  { %4380 = vsyncpa [#allocation5 + $0x1], 1 }
 0x55e   :  { %4381 = vsyncpa [#allocation8], 1 }
 0x55f   :  { %4382 = vsyncpa [#allocation11], 1 }
 0x560   :  { %4383 = vsyncpa [#allocation6], 1 }
 0x561   :  { %4385 = vsyncpa [#allocation6 + $0x1], 1 }

</bundles_post_ra>
